<compile_context>
chip_gen: v7x
topology: tpu7x:2x2x1
jax: 0.10.0
libtpu: 0.0.40
codegen_flags: <defaults>
</compile_context>

<pallas_src>
import functools

import jax
import jax.numpy as jnp
from jax.experimental import pallas as pl
from jax.experimental.pallas import tpu as pltpu


def _round_up(v, m):
    return -(-v // m) * m


def _pick_c_chunk(C, HW, itemsize, target_bytes=4 << 20):
    """Largest channel chunk whose (cc, H*W) input block stays under target_bytes."""
    max_cc = max(1, target_bytes // max(1, HW * itemsize))
    if C <= max_cc:
        return C
    cc = (int(max_cc) // 8) * 8
    while cc >= 8:
        if C % cc == 0:
            return cc
        cc -= 8
    return C  # no clean multiple-of-8 divisor under the target; whole-C blocks


def _sa_kernel(w_ref, x_ref, o_ref, pool_ref, pad_ref, *, H, W, K, pad):
    """Grid = (batch, channel-chunk).  One channel chunk of one image per step.

    w_ref   : (2*K*K,) f32 SMEM.  [0:K*K] mean-plane taps (pre-divided by C),
              [K*K:2*K*K] max-plane taps.
    x_ref   : (cc, H*W) native-dtype VMEM block (lane-dense channel chunk).
    o_ref   : (H, W) attention map, written only on the last chunk.
    pool_ref: (2, H*W) f32 scratch: row 0 running channel sum, row 1 running max.
    pad_ref : (2, H+2*pad, W+2*pad) f32 scratch: zero-haloed mean/max planes.
    """
    c = pl.program_id(1)
    last_c = pl.num_programs(1) - 1

    # ---- lane-dense channel reduction of this chunk (VPU), accumulate in f32 ----
    xc = x_ref[...].astype(jnp.float32)                 # (cc, H*W)
    part_sum = jnp.sum(xc, axis=0, keepdims=True)       # (1, H*W)
    part_max = jnp.max(xc, axis=0, keepdims=True)       # (1, H*W)

    @pl.when(c == 0)
    def _init():
        pool_ref[0:1, :] = part_sum
        pool_ref[1:2, :] = part_max

    @pl.when(c > 0)
    def _accum():
        pool_ref[0:1, :] = pool_ref[0:1, :] + part_sum
        pool_ref[1:2, :] = jnp.maximum(pool_ref[1:2, :], part_max)

    # ---- epilogue: 7x7 (2 -> 1) conv + sigmoid, once per image ----
    @pl.when(c == last_c)
    def _epilogue():
        # Zero-haloed planes: zero the small scratch once, then copy the pooled rows in
        # (this is the flat -> 2-D relayout, done on just 2 tiny planes per image).
        pad_ref[...] = jnp.zeros_like(pad_ref)
        for h in range(H):
            lo = h * W
            pad_ref[0, pad + h:pad + h + 1, pad:pad + W] = pool_ref[0:1, lo:lo + W]
            pad_ref[1, pad + h:pad + h + 1, pad:pad + W] = pool_ref[1:2, lo:lo + W]

        # Hoist all conv-tap scalars out of SMEM before the tap loop.
        w_mean = [w_ref[t] for t in range(K * K)]
        w_max = [w_ref[K * K + t] for t in range(K * K)]

        # kw lane shift hoisted: 7 shifted slab loads per plane, then sublane slices.
        # Two independent accumulators (mean / max planes) keep VPU ILP.
        acc_m = jnp.zeros((H, W), jnp.float32)
        acc_x = jnp.zeros((H, W), jnp.float32)
        for kw in range(K):
            m_slab = pad_ref[0, :, kw:kw + W]            # (H+2*pad, W)
            x_slab = pad_ref[1, :, kw:kw + W]
            for kh in range(K):
                t = kh * K + kw
                acc_m = acc_m + w_mean[t] * m_slab[kh:kh + H, :]
                acc_x = acc_x + w_max[t] * x_slab[kh:kh + H, :]

        o_ref[...] = jax.nn.sigmoid(acc_m + acc_x).astype(o_ref.dtype)


def spatial_attention(x, w, *, kernel_size=7, c_chunk=None):
    """x: (N, C, H, W) float (f32 or bf16); w: (1, 2, K, K) torch Conv2d weight.

    Returns sigmoid(conv(cat([mean_c(x), max_c(x)]))) of shape (N, 1, H, W), dtype x.dtype.
    """
    assert kernel_size in (3, 7), "kernel size must be 3 or 7"
    pad = 3 if kernel_size == 7 else 1
    x = jnp.asarray(x)                      # NOTE: no dtype cast — consume native dtype
    N, C, H, W = x.shape
    K = kernel_size
    HW = H * W
    itemsize = jnp.dtype(x.dtype).itemsize

    if c_chunk is None:
        c_chunk = _pick_c_chunk(C, HW, itemsize)
    assert C % c_chunk == 0, "c_chunk must divide C"
    assert c_chunk == C or c_chunk % 8 == 0, "c_chunk must be C or a multiple of 8"
    n_chunks = C // c_chunk

    # Fold the 1/C mean scaling into the mean-plane taps (exact up to f32 rounding).
    w = jnp.asarray(w, jnp.float32)
    w_flat = jnp.concatenate([w[0, 0].reshape(K * K) * (1.0 / C),
                              w[0, 1].reshape(K * K)])

    # Free metadata reshape: lane-dense (N, C, H*W) view for the channel reduction.
    x_flat = x.reshape(N, C, HW)

    # VMEM budget: double-buffered input block + output block + scratch + headroom.
    blk_bytes = _round_up(c_chunk, 8) * _round_up(HW, 128) * itemsize
    out_bytes = _round_up(H, 8) * _round_up(W, 128) * itemsize
    scratch_bytes = (_round_up(2, 8) * _round_up(HW, 128)
                     + _round_up(2 * (H + 2 * pad), 8) * _round_up(W + 2 * pad, 128)) * 4
    vmem_limit = int(min(48 << 20,
                         max(16 << 20,
                             2 * blk_bytes + 2 * out_bytes + scratch_bytes + (4 << 20))))

    kern = functools.partial(_sa_kernel, H=H, W=W, K=K, pad=pad)
    out = pl.pallas_call(
        kern,
        out_shape=jax.ShapeDtypeStruct((N, H, W), x.dtype),
        grid=(N, n_chunks),
        in_specs=[
            pl.BlockSpec(memory_space=pltpu.MemorySpace.SMEM),           # conv taps
            pl.BlockSpec((None, c_chunk, HW), lambda n, c: (n, c, 0)),   # channel chunk
        ],
        out_specs=pl.BlockSpec((None, H, W), lambda n, c: (n, 0, 0)),    # resident over c
        scratch_shapes=[
            pltpu.VMEM((2, HW), jnp.float32),                        # running sum / max
            pltpu.VMEM((2, H + 2 * pad, W + 2 * pad), jnp.float32),  # zero-haloed planes
        ],
        compiler_params=pltpu.CompilerParams(
            dimension_semantics=("parallel", "arbitrary"),
            vmem_limit_bytes=vmem_limit),
    )(w_flat, x_flat)
    return out.reshape(N, 1, H, W)


# ---------------------------------------------------------------------------
# Pure-XLA reference (for correctness check)
# ---------------------------------------------------------------------------
def sa_reference(x, w):
    x = jnp.asarray(x).astype(jnp.float32)
    avg = jnp.mean(x, axis=1, keepdims=True)
    mx = jnp.max(x, axis=1, keepdims=True)
    a = jnp.concatenate([avg, mx], axis=1)                    # (N, 2, H, W)
    pad = (w.shape[-1] - 1) // 2
    y = jax.lax.conv_general_dilated(
        a, jnp.asarray(w, jnp.float32), window_strides=(1, 1),
        padding=((pad, pad), (pad, pad)),
        dimension_numbers=("NCHW", "OIHW", "NCHW"))
    return jax.nn.sigmoid(y)


# ---------------------------------------------------------------------------
if __name__ == "__main__":
    key = jax.random.PRNGKey(0)
    kx, kw = jax.random.split(key)

    N, C, H, W = 2, 64, 16, 16
    K = 7
    x = jax.random.normal(kx, (N, C, H, W), jnp.float32)
    w = jax.random.normal(kw, (1, 2, K, K), jnp.float32) * (2.0 / (2 * K * K)) ** 0.5

    ref = jax.block_until_ready(sa_reference(x, w))

    # Default path (single channel chunk at this small size).
    fwd = jax.jit(functools.partial(spatial_attention, kernel_size=K))
    out = jax.block_until_ready(fwd(x, w))
    assert out.shape == (N, 1, H, W)
    assert bool(jnp.all(jnp.isfinite(out)))
    err = float(jnp.max(jnp.abs(out - ref)))
    assert err < 1e-4, f"f32 single-chunk max abs err vs reference: {err}"

    # Multi-chunk path (exercises the running sum/max accumulator + epilogue).
    fwd_chunked = jax.jit(functools.partial(spatial_attention, kernel_size=K, c_chunk=16))
    out_c = jax.block_until_ready(fwd_chunked(x, w))
    err_c = float(jnp.max(jnp.abs(out_c - ref)))
    assert err_c < 1e-4, f"f32 chunked max abs err vs reference: {err_c}"

    # Native bf16 activations: no wrapper cast, reduction still accumulates in f32.
    xb = x.astype(jnp.bfloat16)
    ref_b = jax.block_until_ready(sa_reference(xb, w))
    out_b = jax.block_until_ready(fwd_chunked(xb, w))
    assert out_b.dtype == jnp.bfloat16
    err_b = float(jnp.max(jnp.abs(out_b.astype(jnp.float32) - ref_b)))
    assert err_b < 1.5e-2, f"bf16 chunked max abs err vs reference: {err_b}"

    print("KERNEL_OK")
</pallas_src>

<mosaic_0001>
module attributes {stable_mosaic.version = 11 : i64} {
  func.func @_sa_kernel(%arg0: i32, %arg1: i32, %arg2: memref<98xf32, #tpu.memory_space<smem>>, %arg3: memref<1x64x256xf32, #tpu.memory_space<vmem>>, %arg4: memref<1x16x16xf32, #tpu.memory_space<vmem>>, %arg5: memref<2x256xf32, #tpu.memory_space<vmem>>, %arg6: memref<2x22x22xf32, #tpu.memory_space<vmem>>) attributes {dimension_semantics = [#tpu.dimension_semantics<parallel>, #tpu.dimension_semantics<arbitrary>], iteration_bounds = array<i64: 2, 1>, scalar_prefetch = 0 : i64, scratch_operands = 2 : i64, tpu.core_type = #tpu.core_type<tc>, window_params = [{transform_indices = @transform_0, window_bounds = array<i64: 98>}, {transform_indices = @transform_1, window_bounds = array<i64: 1, 64, 256>}, {transform_indices = @transform_2, window_bounds = array<i64: 1, 16, 16>}]} {
    %c0 = arith.constant 0 : index
    %c0_0 = arith.constant 0 : index
    %c0_1 = arith.constant 0 : index
    %0 = vector.load %arg3[%c0, %c0_0, %c0_1] : memref<1x64x256xf32, #tpu.memory_space<vmem>>, vector<1x64x256xf32>
    %1 = vector.shape_cast %0 : vector<1x64x256xf32> to vector<64x256xf32>
    %cst = arith.constant dense<0.000000e+00> : vector<256xf32>
    %2 = vector.multi_reduction <add>, %1, %cst [0] : vector<64x256xf32> to vector<256xf32>
    %3 = vector.shape_cast %2 : vector<256xf32> to vector<1x256xf32>
    %cst_2 = arith.constant dense<0xFF800000> : vector<256xf32>
    %4 = vector.multi_reduction <maximumf>, %1, %cst_2 [0] : vector<64x256xf32> to vector<256xf32>
    %5 = vector.shape_cast %4 : vector<256xf32> to vector<1x256xf32>
    %c0_i32 = arith.constant 0 : i32
    %6 = arith.cmpi eq, %arg1, %c0_i32 : i32
    %7 = arith.extui %6 : i1 to i32
    %c0_i32_3 = arith.constant 0 : i32
    %8 = arith.cmpi ne, %7, %c0_i32_3 : i32
    scf.if %8 {
      %c0_8 = arith.constant 0 : index
      %c0_9 = arith.constant 0 : index
      %15 = vector.load %arg5[%c0_8, %c0_9] : memref<2x256xf32, #tpu.memory_space<vmem>>, vector<1x256xf32>
      tpu.vector_store %arg5[%c0_8, %c0_9], %3 {strides = array<i32>} : memref<2x256xf32, #tpu.memory_space<vmem>>, vector<1x256xf32>,
      %c1 = arith.constant 1 : index
      %c0_10 = arith.constant 0 : index
      %16 = vector.load %arg5[%c1, %c0_10] : memref<2x256xf32, #tpu.memory_space<vmem>>, vector<1x256xf32>
      tpu.vector_store %arg5[%c1, %c0_10], %5 {strides = array<i32>} : memref<2x256xf32, #tpu.memory_space<vmem>>, vector<1x256xf32>,
    } else {
    }
    %c0_i32_4 = arith.constant 0 : i32
    %9 = arith.cmpi sgt, %arg1, %c0_i32_4 : i32
    %10 = arith.extui %9 : i1 to i32
    %c0_i32_5 = arith.constant 0 : i32
    %11 = arith.cmpi ne, %10, %c0_i32_5 : i32
    scf.if %11 {
      %c0_8 = arith.constant 0 : index
      %c0_9 = arith.constant 0 : index
      %15 = vector.load %arg5[%c0_8, %c0_9] : memref<2x256xf32, #tpu.memory_space<vmem>>, vector<1x256xf32>
      %16 = arith.addf %15, %3 : vector<1x256xf32>
      %c0_10 = arith.constant 0 : index
      %c0_11 = arith.constant 0 : index
      %17 = vector.load %arg5[%c0_10, %c0_11] : memref<2x256xf32, #tpu.memory_space<vmem>>, vector<1x256xf32>
      tpu.vector_store %arg5[%c0_10, %c0_11], %16 {strides = array<i32>} : memref<2x256xf32, #tpu.memory_space<vmem>>, vector<1x256xf32>,
      %c1 = arith.constant 1 : index
      %c0_12 = arith.constant 0 : index
      %18 = vector.load %arg5[%c1, %c0_12] : memref<2x256xf32, #tpu.memory_space<vmem>>, vector<1x256xf32>
      %19 = arith.maximumf %18, %5 : vector<1x256xf32>
      %c1_13 = arith.constant 1 : index
      %c0_14 = arith.constant 0 : index
      %20 = vector.load %arg5[%c1_13, %c0_14] : memref<2x256xf32, #tpu.memory_space<vmem>>, vector<1x256xf32>
      tpu.vector_store %arg5[%c1_13, %c0_14], %19 {strides = array<i32>} : memref<2x256xf32, #tpu.memory_space<vmem>>, vector<1x256xf32>,
    } else {
    }
    %c0_i32_6 = arith.constant 0 : i32
    %12 = arith.cmpi eq, %arg1, %c0_i32_6 : i32
    %13 = arith.extui %12 : i1 to i32
    %c0_i32_7 = arith.constant 0 : i32
    %14 = arith.cmpi ne, %13, %c0_i32_7 : i32
    scf.if %14 {
      %cst_8 = arith.constant 0.000000e+00 : f32
      %15 = vector.broadcast %cst_8 : f32 to vector<2x22x22xf32>
      %c0_9 = arith.constant 0 : index
      %c0_10 = arith.constant 0 : index
      %c0_11 = arith.constant 0 : index
      %16 = vector.load %arg6[%c0_9, %c0_10, %c0_11] : memref<2x22x22xf32, #tpu.memory_space<vmem>>, vector<2x22x22xf32>
      tpu.vector_store %arg6[%c0_9, %c0_10, %c0_11], %15 {strides = array<i32>} : memref<2x22x22xf32, #tpu.memory_space<vmem>>, vector<2x22x22xf32>,
      %c0_12 = arith.constant 0 : index
      %c0_13 = arith.constant 0 : index
      %17 = vector.load %arg5[%c0_12, %c0_13] : memref<2x256xf32, #tpu.memory_space<vmem>>, vector<1x16xf32>
      %c0_14 = arith.constant 0 : index
      %c3 = arith.constant 3 : index
      %c3_15 = arith.constant 3 : index
      %18 = vector.load %arg6[%c0_14, %c3, %c3_15] : memref<2x22x22xf32, #tpu.memory_space<vmem>>, vector<1x1x16xf32>
      %19 = vector.shape_cast %18 : vector<1x1x16xf32> to vector<1x16xf32>
      %20 = vector.shape_cast %17 : vector<1x16xf32> to vector<1x1x16xf32>
      tpu.vector_store %arg6[%c0_14, %c3, %c3_15], %20 {strides = array<i32>} : memref<2x22x22xf32, #tpu.memory_space<vmem>>, vector<1x1x16xf32>,
      %c1 = arith.constant 1 : index
      %c0_16 = arith.constant 0 : index
      %21 = vector.load %arg5[%c1, %c0_16] : memref<2x256xf32, #tpu.memory_space<vmem>>, vector<1x16xf32>
      %c1_17 = arith.constant 1 : index
      %c3_18 = arith.constant 3 : index
      %c3_19 = arith.constant 3 : index
      %22 = vector.load %arg6[%c1_17, %c3_18, %c3_19] : memref<2x22x22xf32, #tpu.memory_space<vmem>>, vector<1x1x16xf32>
      %23 = vector.shape_cast %22 : vector<1x1x16xf32> to vector<1x16xf32>
      %24 = vector.shape_cast %21 : vector<1x16xf32> to vector<1x1x16xf32>
      tpu.vector_store %arg6[%c1_17, %c3_18, %c3_19], %24 {strides = array<i32>} : memref<2x22x22xf32, #tpu.memory_space<vmem>>, vector<1x1x16xf32>,
      %c0_20 = arith.constant 0 : index
      %c16 = arith.constant 16 : index
      %25 = vector.load %arg5[%c0_20, %c16] : memref<2x256xf32, #tpu.memory_space<vmem>>, vector<1x16xf32>
      %c0_21 = arith.constant 0 : index
      %c4 = arith.constant 4 : index
      %c3_22 = arith.constant 3 : index
      %26 = vector.load %arg6[%c0_21, %c4, %c3_22] : memref<2x22x22xf32, #tpu.memory_space<vmem>>, vector<1x1x16xf32>
      %27 = vector.shape_cast %26 : vector<1x1x16xf32> to vector<1x16xf32>
      %28 = vector.shape_cast %25 : vector<1x16xf32> to vector<1x1x16xf32>
      tpu.vector_store %arg6[%c0_21, %c4, %c3_22], %28 {strides = array<i32>} : memref<2x22x22xf32, #tpu.memory_space<vmem>>, vector<1x1x16xf32>,
      %c1_23 = arith.constant 1 : index
      %c16_24 = arith.constant 16 : index
      %29 = vector.load %arg5[%c1_23, %c16_24] : memref<2x256xf32, #tpu.memory_space<vmem>>, vector<1x16xf32>
      %c1_25 = arith.constant 1 : index
      %c4_26 = arith.constant 4 : index
      %c3_27 = arith.constant 3 : index
      %30 = vector.load %arg6[%c1_25, %c4_26, %c3_27] : memref<2x22x22xf32, #tpu.memory_space<vmem>>, vector<1x1x16xf32>
      %31 = vector.shape_cast %30 : vector<1x1x16xf32> to vector<1x16xf32>
      %32 = vector.shape_cast %29 : vector<1x16xf32> to vector<1x1x16xf32>
      tpu.vector_store %arg6[%c1_25, %c4_26, %c3_27], %32 {strides = array<i32>} : memref<2x22x22xf32, #tpu.memory_space<vmem>>, vector<1x1x16xf32>,
      %c0_28 = arith.constant 0 : index
      %c32 = arith.constant 32 : index
      %33 = vector.load %arg5[%c0_28, %c32] : memref<2x256xf32, #tpu.memory_space<vmem>>, vector<1x16xf32>
      %c0_29 = arith.constant 0 : index
      %c5 = arith.constant 5 : index
      %c3_30 = arith.constant 3 : index
      %34 = vector.load %arg6[%c0_29, %c5, %c3_30] : memref<2x22x22xf32, #tpu.memory_space<vmem>>, vector<1x1x16xf32>
      %35 = vector.shape_cast %34 : vector<1x1x16xf32> to vector<1x16xf32>
      %36 = vector.shape_cast %33 : vector<1x16xf32> to vector<1x1x16xf32>
      tpu.vector_store %arg6[%c0_29, %c5, %c3_30], %36 {strides = array<i32>} : memref<2x22x22xf32, #tpu.memory_space<vmem>>, vector<1x1x16xf32>,
      %c1_31 = arith.constant 1 : index
      %c32_32 = arith.constant 32 : index
      %37 = vector.load %arg5[%c1_31, %c32_32] : memref<2x256xf32, #tpu.memory_space<vmem>>, vector<1x16xf32>
      %c1_33 = arith.constant 1 : index
      %c5_34 = arith.constant 5 : index
      %c3_35 = arith.constant 3 : index
      %38 = vector.load %arg6[%c1_33, %c5_34, %c3_35] : memref<2x22x22xf32, #tpu.memory_space<vmem>>, vector<1x1x16xf32>
      %39 = vector.shape_cast %38 : vector<1x1x16xf32> to vector<1x16xf32>
      %40 = vector.shape_cast %37 : vector<1x16xf32> to vector<1x1x16xf32>
      tpu.vector_store %arg6[%c1_33, %c5_34, %c3_35], %40 {strides = array<i32>} : memref<2x22x22xf32, #tpu.memory_space<vmem>>, vector<1x1x16xf32>,
      %c0_36 = arith.constant 0 : index
      %c48 = arith.constant 48 : index
      %41 = vector.load %arg5[%c0_36, %c48] : memref<2x256xf32, #tpu.memory_space<vmem>>, vector<1x16xf32>
      %c0_37 = arith.constant 0 : index
      %c6 = arith.constant 6 : index
      %c3_38 = arith.constant 3 : index
      %42 = vector.load %arg6[%c0_37, %c6, %c3_38] : memref<2x22x22xf32, #tpu.memory_space<vmem>>, vector<1x1x16xf32>
      %43 = vector.shape_cast %42 : vector<1x1x16xf32> to vector<1x16xf32>
      %44 = vector.shape_cast %41 : vector<1x16xf32> to vector<1x1x16xf32>
      tpu.vector_store %arg6[%c0_37, %c6, %c3_38], %44 {strides = array<i32>} : memref<2x22x22xf32, #tpu.memory_space<vmem>>, vector<1x1x16xf32>,
      %c1_39 = arith.constant 1 : index
      %c48_40 = arith.constant 48 : index
      %45 = vector.load %arg5[%c1_39, %c48_40] : memref<2x256xf32, #tpu.memory_space<vmem>>, vector<1x16xf32>
      %c1_41 = arith.constant 1 : index
      %c6_42 = arith.constant 6 : index
      %c3_43 = arith.constant 3 : index
      %46 = vector.load %arg6[%c1_41, %c6_42, %c3_43] : memref<2x22x22xf32, #tpu.memory_space<vmem>>, vector<1x1x16xf32>
      %47 = vector.shape_cast %46 : vector<1x1x16xf32> to vector<1x16xf32>
      %48 = vector.shape_cast %45 : vector<1x16xf32> to vector<1x1x16xf32>
      tpu.vector_store %arg6[%c1_41, %c6_42, %c3_43], %48 {strides = array<i32>} : memref<2x22x22xf32, #tpu.memory_space<vmem>>, vector<1x1x16xf32>,
      %c0_44 = arith.constant 0 : index
      %c64 = arith.constant 64 : index
      %49 = vector.load %arg5[%c0_44, %c64] : memref<2x256xf32, #tpu.memory_space<vmem>>, vector<1x16xf32>
      %c0_45 = arith.constant 0 : index
      %c7 = arith.constant 7 : index
      %c3_46 = arith.constant 3 : index
      %50 = vector.load %arg6[%c0_45, %c7, %c3_46] : memref<2x22x22xf32, #tpu.memory_space<vmem>>, vector<1x1x16xf32>
      %51 = vector.shape_cast %50 : vector<1x1x16xf32> to vector<1x16xf32>
      %52 = vector.shape_cast %49 : vector<1x16xf32> to vector<1x1x16xf32>
      tpu.vector_store %arg6[%c0_45, %c7, %c3_46], %52 {strides = array<i32>} : memref<2x22x22xf32, #tpu.memory_space<vmem>>, vector<1x1x16xf32>,
      %c1_47 = arith.constant 1 : index
      %c64_48 = arith.constant 64 : index
      %53 = vector.load %arg5[%c1_47, %c64_48] : memref<2x256xf32, #tpu.memory_space<vmem>>, vector<1x16xf32>
      %c1_49 = arith.constant 1 : index
      %c7_50 = arith.constant 7 : index
      %c3_51 = arith.constant 3 : index
      %54 = vector.load %arg6[%c1_49, %c7_50, %c3_51] : memref<2x22x22xf32, #tpu.memory_space<vmem>>, vector<1x1x16xf32>
      %55 = vector.shape_cast %54 : vector<1x1x16xf32> to vector<1x16xf32>
      %56 = vector.shape_cast %53 : vector<1x16xf32> to vector<1x1x16xf32>
      tpu.vector_store %arg6[%c1_49, %c7_50, %c3_51], %56 {strides = array<i32>} : memref<2x22x22xf32, #tpu.memory_space<vmem>>, vector<1x1x16xf32>,
      %c0_52 = arith.constant 0 : index
      %c80 = arith.constant 80 : index
      %57 = vector.load %arg5[%c0_52, %c80] : memref<2x256xf32, #tpu.memory_space<vmem>>, vector<1x16xf32>
      %c0_53 = arith.constant 0 : index
      %c8 = arith.constant 8 : index
      %c3_54 = arith.constant 3 : index
      %58 = vector.load %arg6[%c0_53, %c8, %c3_54] : memref<2x22x22xf32, #tpu.memory_space<vmem>>, vector<1x1x16xf32>
      %59 = vector.shape_cast %58 : vector<1x1x16xf32> to vector<1x16xf32>
      %60 = vector.shape_cast %57 : vector<1x16xf32> to vector<1x1x16xf32>
      tpu.vector_store %arg6[%c0_53, %c8, %c3_54], %60 {strides = array<i32>} : memref<2x22x22xf32, #tpu.memory_space<vmem>>, vector<1x1x16xf32>,
      %c1_55 = arith.constant 1 : index
      %c80_56 = arith.constant 80 : index
      %61 = vector.load %arg5[%c1_55, %c80_56] : memref<2x256xf32, #tpu.memory_space<vmem>>, vector<1x16xf32>
      %c1_57 = arith.constant 1 : index
      %c8_58 = arith.constant 8 : index
      %c3_59 = arith.constant 3 : index
      %62 = vector.load %arg6[%c1_57, %c8_58, %c3_59] : memref<2x22x22xf32, #tpu.memory_space<vmem>>, vector<1x1x16xf32>
      %63 = vector.shape_cast %62 : vector<1x1x16xf32> to vector<1x16xf32>
      %64 = vector.shape_cast %61 : vector<1x16xf32> to vector<1x1x16xf32>
      tpu.vector_store %arg6[%c1_57, %c8_58, %c3_59], %64 {strides = array<i32>} : memref<2x22x22xf32, #tpu.memory_space<vmem>>, vector<1x1x16xf32>,
      %c0_60 = arith.constant 0 : index
      %c96 = arith.constant 96 : index
      %65 = vector.load %arg5[%c0_60, %c96] : memref<2x256xf32, #tpu.memory_space<vmem>>, vector<1x16xf32>
      %c0_61 = arith.constant 0 : index
      %c9 = arith.constant 9 : index
      %c3_62 = arith.constant 3 : index
      %66 = vector.load %arg6[%c0_61, %c9, %c3_62] : memref<2x22x22xf32, #tpu.memory_space<vmem>>, vector<1x1x16xf32>
      %67 = vector.shape_cast %66 : vector<1x1x16xf32> to vector<1x16xf32>
      %68 = vector.shape_cast %65 : vector<1x16xf32> to vector<1x1x16xf32>
      tpu.vector_store %arg6[%c0_61, %c9, %c3_62], %68 {strides = array<i32>} : memref<2x22x22xf32, #tpu.memory_space<vmem>>, vector<1x1x16xf32>,
      %c1_63 = arith.constant 1 : index
      %c96_64 = arith.constant 96 : index
      %69 = vector.load %arg5[%c1_63, %c96_64] : memref<2x256xf32, #tpu.memory_space<vmem>>, vector<1x16xf32>
      %c1_65 = arith.constant 1 : index
      %c9_66 = arith.constant 9 : index
      %c3_67 = arith.constant 3 : index
      %70 = vector.load %arg6[%c1_65, %c9_66, %c3_67] : memref<2x22x22xf32, #tpu.memory_space<vmem>>, vector<1x1x16xf32>
      %71 = vector.shape_cast %70 : vector<1x1x16xf32> to vector<1x16xf32>
      %72 = vector.shape_cast %69 : vector<1x16xf32> to vector<1x1x16xf32>
      tpu.vector_store %arg6[%c1_65, %c9_66, %c3_67], %72 {strides = array<i32>} : memref<2x22x22xf32, #tpu.memory_space<vmem>>, vector<1x1x16xf32>,
      %c0_68 = arith.constant 0 : index
      %c112 = arith.constant 112 : index
      %73 = vector.load %arg5[%c0_68, %c112] : memref<2x256xf32, #tpu.memory_space<vmem>>, vector<1x16xf32>
      %c0_69 = arith.constant 0 : index
      %c10 = arith.constant 10 : index
      %c3_70 = arith.constant 3 : index
      %74 = vector.load %arg6[%c0_69, %c10, %c3_70] : memref<2x22x22xf32, #tpu.memory_space<vmem>>, vector<1x1x16xf32>
      %75 = vector.shape_cast %74 : vector<1x1x16xf32> to vector<1x16xf32>
      %76 = vector.shape_cast %73 : vector<1x16xf32> to vector<1x1x16xf32>
      tpu.vector_store %arg6[%c0_69, %c10, %c3_70], %76 {strides = array<i32>} : memref<2x22x22xf32, #tpu.memory_space<vmem>>, vector<1x1x16xf32>,
      %c1_71 = arith.constant 1 : index
      %c112_72 = arith.constant 112 : index
      %77 = vector.load %arg5[%c1_71, %c112_72] : memref<2x256xf32, #tpu.memory_space<vmem>>, vector<1x16xf32>
      %c1_73 = arith.constant 1 : index
      %c10_74 = arith.constant 10 : index
      %c3_75 = arith.constant 3 : index
      %78 = vector.load %arg6[%c1_73, %c10_74, %c3_75] : memref<2x22x22xf32, #tpu.memory_space<vmem>>, vector<1x1x16xf32>
      %79 = vector.shape_cast %78 : vector<1x1x16xf32> to vector<1x16xf32>
      %80 = vector.shape_cast %77 : vector<1x16xf32> to vector<1x1x16xf32>
      tpu.vector_store %arg6[%c1_73, %c10_74, %c3_75], %80 {strides = array<i32>} : memref<2x22x22xf32, #tpu.memory_space<vmem>>, vector<1x1x16xf32>,
      %c0_76 = arith.constant 0 : index
      %c128 = arith.constant 128 : index
      %81 = vector.load %arg5[%c0_76, %c128] : memref<2x256xf32, #tpu.memory_space<vmem>>, vector<1x16xf32>
      %c0_77 = arith.constant 0 : index
      %c11 = arith.constant 11 : index
      %c3_78 = arith.constant 3 : index
      %82 = vector.load %arg6[%c0_77, %c11, %c3_78] : memref<2x22x22xf32, #tpu.memory_space<vmem>>, vector<1x1x16xf32>
      %83 = vector.shape_cast %82 : vector<1x1x16xf32> to vector<1x16xf32>
      %84 = vector.shape_cast %81 : vector<1x16xf32> to vector<1x1x16xf32>
      tpu.vector_store %arg6[%c0_77, %c11, %c3_78], %84 {strides = array<i32>} : memref<2x22x22xf32, #tpu.memory_space<vmem>>, vector<1x1x16xf32>,
      %c1_79 = arith.constant 1 : index
      %c128_80 = arith.constant 128 : index
      %85 = vector.load %arg5[%c1_79, %c128_80] : memref<2x256xf32, #tpu.memory_space<vmem>>, vector<1x16xf32>
      %c1_81 = arith.constant 1 : index
      %c11_82 = arith.constant 11 : index
      %c3_83 = arith.constant 3 : index
      %86 = vector.load %arg6[%c1_81, %c11_82, %c3_83] : memref<2x22x22xf32, #tpu.memory_space<vmem>>, vector<1x1x16xf32>
      %87 = vector.shape_cast %86 : vector<1x1x16xf32> to vector<1x16xf32>
      %88 = vector.shape_cast %85 : vector<1x16xf32> to vector<1x1x16xf32>
      tpu.vector_store %arg6[%c1_81, %c11_82, %c3_83], %88 {strides = array<i32>} : memref<2x22x22xf32, #tpu.memory_space<vmem>>, vector<1x1x16xf32>,
      %c0_84 = arith.constant 0 : index
      %c144 = arith.constant 144 : index
      %89 = vector.load %arg5[%c0_84, %c144] : memref<2x256xf32, #tpu.memory_space<vmem>>, vector<1x16xf32>
      %c0_85 = arith.constant 0 : index
      %c12 = arith.constant 12 : index
      %c3_86 = arith.constant 3 : index
      %90 = vector.load %arg6[%c0_85, %c12, %c3_86] : memref<2x22x22xf32, #tpu.memory_space<vmem>>, vector<1x1x16xf32>
      %91 = vector.shape_cast %90 : vector<1x1x16xf32> to vector<1x16xf32>
      %92 = vector.shape_cast %89 : vector<1x16xf32> to vector<1x1x16xf32>
      tpu.vector_store %arg6[%c0_85, %c12, %c3_86], %92 {strides = array<i32>} : memref<2x22x22xf32, #tpu.memory_space<vmem>>, vector<1x1x16xf32>,
      %c1_87 = arith.constant 1 : index
      %c144_88 = arith.constant 144 : index
      %93 = vector.load %arg5[%c1_87, %c144_88] : memref<2x256xf32, #tpu.memory_space<vmem>>, vector<1x16xf32>
      %c1_89 = arith.constant 1 : index
      %c12_90 = arith.constant 12 : index
      %c3_91 = arith.constant 3 : index
      %94 = vector.load %arg6[%c1_89, %c12_90, %c3_91] : memref<2x22x22xf32, #tpu.memory_space<vmem>>, vector<1x1x16xf32>
      %95 = vector.shape_cast %94 : vector<1x1x16xf32> to vector<1x16xf32>
      %96 = vector.shape_cast %93 : vector<1x16xf32> to vector<1x1x16xf32>
      tpu.vector_store %arg6[%c1_89, %c12_90, %c3_91], %96 {strides = array<i32>} : memref<2x22x22xf32, #tpu.memory_space<vmem>>, vector<1x1x16xf32>,
      %c0_92 = arith.constant 0 : index
      %c160 = arith.constant 160 : index
      %97 = vector.load %arg5[%c0_92, %c160] : memref<2x256xf32, #tpu.memory_space<vmem>>, vector<1x16xf32>
      %c0_93 = arith.constant 0 : index
      %c13 = arith.constant 13 : index
      %c3_94 = arith.constant 3 : index
      %98 = vector.load %arg6[%c0_93, %c13, %c3_94] : memref<2x22x22xf32, #tpu.memory_space<vmem>>, vector<1x1x16xf32>
      %99 = vector.shape_cast %98 : vector<1x1x16xf32> to vector<1x16xf32>
      %100 = vector.shape_cast %97 : vector<1x16xf32> to vector<1x1x16xf32>
      tpu.vector_store %arg6[%c0_93, %c13, %c3_94], %100 {strides = array<i32>} : memref<2x22x22xf32, #tpu.memory_space<vmem>>, vector<1x1x16xf32>,
      %c1_95 = arith.constant 1 : index
      %c160_96 = arith.constant 160 : index
      %101 = vector.load %arg5[%c1_95, %c160_96] : memref<2x256xf32, #tpu.memory_space<vmem>>, vector<1x16xf32>
      %c1_97 = arith.constant 1 : index
      %c13_98 = arith.constant 13 : index
      %c3_99 = arith.constant 3 : index
      %102 = vector.load %arg6[%c1_97, %c13_98, %c3_99] : memref<2x22x22xf32, #tpu.memory_space<vmem>>, vector<1x1x16xf32>
      %103 = vector.shape_cast %102 : vector<1x1x16xf32> to vector<1x16xf32>
      %104 = vector.shape_cast %101 : vector<1x16xf32> to vector<1x1x16xf32>
      tpu.vector_store %arg6[%c1_97, %c13_98, %c3_99], %104 {strides = array<i32>} : memref<2x22x22xf32, #tpu.memory_space<vmem>>, vector<1x1x16xf32>,
      %c0_100 = arith.constant 0 : index
      %c176 = arith.constant 176 : index
      %105 = vector.load %arg5[%c0_100, %c176] : memref<2x256xf32, #tpu.memory_space<vmem>>, vector<1x16xf32>
      %c0_101 = arith.constant 0 : index
      %c14 = arith.constant 14 : index
      %c3_102 = arith.constant 3 : index
      %106 = vector.load %arg6[%c0_101, %c14, %c3_102] : memref<2x22x22xf32, #tpu.memory_space<vmem>>, vector<1x1x16xf32>
      %107 = vector.shape_cast %106 : vector<1x1x16xf32> to vector<1x16xf32>
      %108 = vector.shape_cast %105 : vector<1x16xf32> to vector<1x1x16xf32>
      tpu.vector_store %arg6[%c0_101, %c14, %c3_102], %108 {strides = array<i32>} : memref<2x22x22xf32, #tpu.memory_space<vmem>>, vector<1x1x16xf32>,
      %c1_103 = arith.constant 1 : index
      %c176_104 = arith.constant 176 : index
      %109 = vector.load %arg5[%c1_103, %c176_104] : memref<2x256xf32, #tpu.memory_space<vmem>>, vector<1x16xf32>
      %c1_105 = arith.constant 1 : index
      %c14_106 = arith.constant 14 : index
      %c3_107 = arith.constant 3 : index
      %110 = vector.load %arg6[%c1_105, %c14_106, %c3_107] : memref<2x22x22xf32, #tpu.memory_space<vmem>>, vector<1x1x16xf32>
      %111 = vector.shape_cast %110 : vector<1x1x16xf32> to vector<1x16xf32>
      %112 = vector.shape_cast %109 : vector<1x16xf32> to vector<1x1x16xf32>
      tpu.vector_store %arg6[%c1_105, %c14_106, %c3_107], %112 {strides = array<i32>} : memref<2x22x22xf32, #tpu.memory_space<vmem>>, vector<1x1x16xf32>,
      %c0_108 = arith.constant 0 : index
      %c192 = arith.constant 192 : index
      %113 = vector.load %arg5[%c0_108, %c192] : memref<2x256xf32, #tpu.memory_space<vmem>>, vector<1x16xf32>
      %c0_109 = arith.constant 0 : index
      %c15 = arith.constant 15 : index
      %c3_110 = arith.constant 3 : index
      %114 = vector.load %arg6[%c0_109, %c15, %c3_110] : memref<2x22x22xf32, #tpu.memory_space<vmem>>, vector<1x1x16xf32>
      %115 = vector.shape_cast %114 : vector<1x1x16xf32> to vector<1x16xf32>
      %116 = vector.shape_cast %113 : vector<1x16xf32> to vector<1x1x16xf32>
      tpu.vector_store %arg6[%c0_109, %c15, %c3_110], %116 {strides = array<i32>} : memref<2x22x22xf32, #tpu.memory_space<vmem>>, vector<1x1x16xf32>,
      %c1_111 = arith.constant 1 : index
      %c192_112 = arith.constant 192 : index
      %117 = vector.load %arg5[%c1_111, %c192_112] : memref<2x256xf32, #tpu.memory_space<vmem>>, vector<1x16xf32>
      %c1_113 = arith.constant 1 : index
      %c15_114 = arith.constant 15 : index
      %c3_115 = arith.constant 3 : index
      %118 = vector.load %arg6[%c1_113, %c15_114, %c3_115] : memref<2x22x22xf32, #tpu.memory_space<vmem>>, vector<1x1x16xf32>
      %119 = vector.shape_cast %118 : vector<1x1x16xf32> to vector<1x16xf32>
      %120 = vector.shape_cast %117 : vector<1x16xf32> to vector<1x1x16xf32>
      tpu.vector_store %arg6[%c1_113, %c15_114, %c3_115], %120 {strides = array<i32>} : memref<2x22x22xf32, #tpu.memory_space<vmem>>, vector<1x1x16xf32>,
      %c0_116 = arith.constant 0 : index
      %c208 = arith.constant 208 : index
      %121 = vector.load %arg5[%c0_116, %c208] : memref<2x256xf32, #tpu.memory_space<vmem>>, vector<1x16xf32>
      %c0_117 = arith.constant 0 : index
      %c16_118 = arith.constant 16 : index
      %c3_119 = arith.constant 3 : index
      %122 = vector.load %arg6[%c0_117, %c16_118, %c3_119] : memref<2x22x22xf32, #tpu.memory_space<vmem>>, vector<1x1x16xf32>
      %123 = vector.shape_cast %122 : vector<1x1x16xf32> to vector<1x16xf32>
      %124 = vector.shape_cast %121 : vector<1x16xf32> to vector<1x1x16xf32>
      tpu.vector_store %arg6[%c0_117, %c16_118, %c3_119], %124 {strides = array<i32>} : memref<2x22x22xf32, #tpu.memory_space<vmem>>, vector<1x1x16xf32>,
      %c1_120 = arith.constant 1 : index
      %c208_121 = arith.constant 208 : index
      %125 = vector.load %arg5[%c1_120, %c208_121] : memref<2x256xf32, #tpu.memory_space<vmem>>, vector<1x16xf32>
      %c1_122 = arith.constant 1 : index
      %c16_123 = arith.constant 16 : index
      %c3_124 = arith.constant 3 : index
      %126 = vector.load %arg6[%c1_122, %c16_123, %c3_124] : memref<2x22x22xf32, #tpu.memory_space<vmem>>, vector<1x1x16xf32>
      %127 = vector.shape_cast %126 : vector<1x1x16xf32> to vector<1x16xf32>
      %128 = vector.shape_cast %125 : vector<1x16xf32> to vector<1x1x16xf32>
      tpu.vector_store %arg6[%c1_122, %c16_123, %c3_124], %128 {strides = array<i32>} : memref<2x22x22xf32, #tpu.memory_space<vmem>>, vector<1x1x16xf32>,
      %c0_125 = arith.constant 0 : index
      %c224 = arith.constant 224 : index
      %129 = vector.load %arg5[%c0_125, %c224] : memref<2x256xf32, #tpu.memory_space<vmem>>, vector<1x16xf32>
      %c0_126 = arith.constant 0 : index
      %c17 = arith.constant 17 : index
      %c3_127 = arith.constant 3 : index
      %130 = vector.load %arg6[%c0_126, %c17, %c3_127] : memref<2x22x22xf32, #tpu.memory_space<vmem>>, vector<1x1x16xf32>
      %131 = vector.shape_cast %130 : vector<1x1x16xf32> to vector<1x16xf32>
      %132 = vector.shape_cast %129 : vector<1x16xf32> to vector<1x1x16xf32>
      tpu.vector_store %arg6[%c0_126, %c17, %c3_127], %132 {strides = array<i32>} : memref<2x22x22xf32, #tpu.memory_space<vmem>>, vector<1x1x16xf32>,
      %c1_128 = arith.constant 1 : index
      %c224_129 = arith.constant 224 : index
      %133 = vector.load %arg5[%c1_128, %c224_129] : memref<2x256xf32, #tpu.memory_space<vmem>>, vector<1x16xf32>
      %c1_130 = arith.constant 1 : index
      %c17_131 = arith.constant 17 : index
      %c3_132 = arith.constant 3 : index
      %134 = vector.load %arg6[%c1_130, %c17_131, %c3_132] : memref<2x22x22xf32, #tpu.memory_space<vmem>>, vector<1x1x16xf32>
      %135 = vector.shape_cast %134 : vector<1x1x16xf32> to vector<1x16xf32>
      %136 = vector.shape_cast %133 : vector<1x16xf32> to vector<1x1x16xf32>
      tpu.vector_store %arg6[%c1_130, %c17_131, %c3_132], %136 {strides = array<i32>} : memref<2x22x22xf32, #tpu.memory_space<vmem>>, vector<1x1x16xf32>,
      %c0_133 = arith.constant 0 : index
      %c240 = arith.constant 240 : index
      %137 = vector.load %arg5[%c0_133, %c240] : memref<2x256xf32, #tpu.memory_space<vmem>>, vector<1x16xf32>
      %c0_134 = arith.constant 0 : index
      %c18 = arith.constant 18 : index
      %c3_135 = arith.constant 3 : index
      %138 = vector.load %arg6[%c0_134, %c18, %c3_135] : memref<2x22x22xf32, #tpu.memory_space<vmem>>, vector<1x1x16xf32>
      %139 = vector.shape_cast %138 : vector<1x1x16xf32> to vector<1x16xf32>
      %140 = vector.shape_cast %137 : vector<1x16xf32> to vector<1x1x16xf32>
      tpu.vector_store %arg6[%c0_134, %c18, %c3_135], %140 {strides = array<i32>} : memref<2x22x22xf32, #tpu.memory_space<vmem>>, vector<1x1x16xf32>,
      %c1_136 = arith.constant 1 : index
      %c240_137 = arith.constant 240 : index
      %141 = vector.load %arg5[%c1_136, %c240_137] : memref<2x256xf32, #tpu.memory_space<vmem>>, vector<1x16xf32>
      %c1_138 = arith.constant 1 : index
      %c18_139 = arith.constant 18 : index
      %c3_140 = arith.constant 3 : index
      %142 = vector.load %arg6[%c1_138, %c18_139, %c3_140] : memref<2x22x22xf32, #tpu.memory_space<vmem>>, vector<1x1x16xf32>
      %143 = vector.shape_cast %142 : vector<1x1x16xf32> to vector<1x16xf32>
      %144 = vector.shape_cast %141 : vector<1x16xf32> to vector<1x1x16xf32>
      tpu.vector_store %arg6[%c1_138, %c18_139, %c3_140], %144 {strides = array<i32>} : memref<2x22x22xf32, #tpu.memory_space<vmem>>, vector<1x1x16xf32>,
      %c0_141 = arith.constant 0 : index
      %145 = memref.load %arg2[%c0_141] : memref<98xf32, #tpu.memory_space<smem>>
      %c1_142 = arith.constant 1 : index
      %146 = memref.load %arg2[%c1_142] : memref<98xf32, #tpu.memory_space<smem>>
      %c2 = arith.constant 2 : index
      %147 = memref.load %arg2[%c2] : memref<98xf32, #tpu.memory_space<smem>>
      %c3_143 = arith.constant 3 : index
      %148 = memref.load %arg2[%c3_143] : memref<98xf32, #tpu.memory_space<smem>>
      %c4_144 = arith.constant 4 : index
      %149 = memref.load %arg2[%c4_144] : memref<98xf32, #tpu.memory_space<smem>>
      %c5_145 = arith.constant 5 : index
      %150 = memref.load %arg2[%c5_145] : memref<98xf32, #tpu.memory_space<smem>>
      %c6_146 = arith.constant 6 : index
      %151 = memref.load %arg2[%c6_146] : memref<98xf32, #tpu.memory_space<smem>>
      %c7_147 = arith.constant 7 : index
      %152 = memref.load %arg2[%c7_147] : memref<98xf32, #tpu.memory_space<smem>>
      %c8_148 = arith.constant 8 : index
      %153 = memref.load %arg2[%c8_148] : memref<98xf32, #tpu.memory_space<smem>>
      %c9_149 = arith.constant 9 : index
      %154 = memref.load %arg2[%c9_149] : memref<98xf32, #tpu.memory_space<smem>>
      %c10_150 = arith.constant 10 : index
      %155 = memref.load %arg2[%c10_150] : memref<98xf32, #tpu.memory_space<smem>>
      %c11_151 = arith.constant 11 : index
      %156 = memref.load %arg2[%c11_151] : memref<98xf32, #tpu.memory_space<smem>>
      %c12_152 = arith.constant 12 : index
      %157 = memref.load %arg2[%c12_152] : memref<98xf32, #tpu.memory_space<smem>>
      %c13_153 = arith.constant 13 : index
      %158 = memref.load %arg2[%c13_153] : memref<98xf32, #tpu.memory_space<smem>>
      %c14_154 = arith.constant 14 : index
      %159 = memref.load %arg2[%c14_154] : memref<98xf32, #tpu.memory_space<smem>>
      %c15_155 = arith.constant 15 : index
      %160 = memref.load %arg2[%c15_155] : memref<98xf32, #tpu.memory_space<smem>>
      %c16_156 = arith.constant 16 : index
      %161 = memref.load %arg2[%c16_156] : memref<98xf32, #tpu.memory_space<smem>>
      %c17_157 = arith.constant 17 : index
      %162 = memref.load %arg2[%c17_157] : memref<98xf32, #tpu.memory_space<smem>>
      %c18_158 = arith.constant 18 : index
      %163 = memref.load %arg2[%c18_158] : memref<98xf32, #tpu.memory_space<smem>>
      %c19 = arith.constant 19 : index
      %164 = memref.load %arg2[%c19] : memref<98xf32, #tpu.memory_space<smem>>
      %c20 = arith.constant 20 : index
      %165 = memref.load %arg2[%c20] : memref<98xf32, #tpu.memory_space<smem>>
      %c21 = arith.constant 21 : index
      %166 = memref.load %arg2[%c21] : memref<98xf32, #tpu.memory_space<smem>>
      %c22 = arith.constant 22 : index
      %167 = memref.load %arg2[%c22] : memref<98xf32, #tpu.memory_space<smem>>
      %c23 = arith.constant 23 : index
      %168 = memref.load %arg2[%c23] : memref<98xf32, #tpu.memory_space<smem>>
      %c24 = arith.constant 24 : index
      %169 = memref.load %arg2[%c24] : memref<98xf32, #tpu.memory_space<smem>>
      %c25 = arith.constant 25 : index
      %170 = memref.load %arg2[%c25] : memref<98xf32, #tpu.memory_space<smem>>
      %c26 = arith.constant 26 : index
      %171 = memref.load %arg2[%c26] : memref<98xf32, #tpu.memory_space<smem>>
      %c27 = arith.constant 27 : index
      %172 = memref.load %arg2[%c27] : memref<98xf32, #tpu.memory_space<smem>>
      %c28 = arith.constant 28 : index
      %173 = memref.load %arg2[%c28] : memref<98xf32, #tpu.memory_space<smem>>
      %c29 = arith.constant 29 : index
      %174 = memref.load %arg2[%c29] : memref<98xf32, #tpu.memory_space<smem>>
      %c30 = arith.constant 30 : index
      %175 = memref.load %arg2[%c30] : memref<98xf32, #tpu.memory_space<smem>>
      %c31 = arith.constant 31 : index
      %176 = memref.load %arg2[%c31] : memref<98xf32, #tpu.memory_space<smem>>
      %c32_159 = arith.constant 32 : index
      %177 = memref.load %arg2[%c32_159] : memref<98xf32, #tpu.memory_space<smem>>
      %c33 = arith.constant 33 : index
      %178 = memref.load %arg2[%c33] : memref<98xf32, #tpu.memory_space<smem>>
      %c34 = arith.constant 34 : index
      %179 = memref.load %arg2[%c34] : memref<98xf32, #tpu.memory_space<smem>>
      %c35 = arith.constant 35 : index
      %180 = memref.load %arg2[%c35] : memref<98xf32, #tpu.memory_space<smem>>
      %c36 = arith.constant 36 : index
      %181 = memref.load %arg2[%c36] : memref<98xf32, #tpu.memory_space<smem>>
      %c37 = arith.constant 37 : index
      %182 = memref.load %arg2[%c37] : memref<98xf32, #tpu.memory_space<smem>>
      %c38 = arith.constant 38 : index
      %183 = memref.load %arg2[%c38] : memref<98xf32, #tpu.memory_space<smem>>
      %c39 = arith.constant 39 : index
      %184 = memref.load %arg2[%c39] : memref<98xf32, #tpu.memory_space<smem>>
      %c40 = arith.constant 40 : index
      %185 = memref.load %arg2[%c40] : memref<98xf32, #tpu.memory_space<smem>>
      %c41 = arith.constant 41 : index
      %186 = memref.load %arg2[%c41] : memref<98xf32, #tpu.memory_space<smem>>
      %c42 = arith.constant 42 : index
      %187 = memref.load %arg2[%c42] : memref<98xf32, #tpu.memory_space<smem>>
      %c43 = arith.constant 43 : index
      %188 = memref.load %arg2[%c43] : memref<98xf32, #tpu.memory_space<smem>>
      %c44 = arith.constant 44 : index
      %189 = memref.load %arg2[%c44] : memref<98xf32, #tpu.memory_space<smem>>
      %c45 = arith.constant 45 : index
      %190 = memref.load %arg2[%c45] : memref<98xf32, #tpu.memory_space<smem>>
      %c46 = arith.constant 46 : index
      %191 = memref.load %arg2[%c46] : memref<98xf32, #tpu.memory_space<smem>>
      %c47 = arith.constant 47 : index
      %192 = memref.load %arg2[%c47] : memref<98xf32, #tpu.memory_space<smem>>
      %c48_160 = arith.constant 48 : index
      %193 = memref.load %arg2[%c48_160] : memref<98xf32, #tpu.memory_space<smem>>
      %c49 = arith.constant 49 : index
      %194 = memref.load %arg2[%c49] : memref<98xf32, #tpu.memory_space<smem>>
      %c50 = arith.constant 50 : index
      %195 = memref.load %arg2[%c50] : memref<98xf32, #tpu.memory_space<smem>>
      %c51 = arith.constant 51 : index
      %196 = memref.load %arg2[%c51] : memref<98xf32, #tpu.memory_space<smem>>
      %c52 = arith.constant 52 : index
      %197 = memref.load %arg2[%c52] : memref<98xf32, #tpu.memory_space<smem>>
      %c53 = arith.constant 53 : index
      %198 = memref.load %arg2[%c53] : memref<98xf32, #tpu.memory_space<smem>>
      %c54 = arith.constant 54 : index
      %199 = memref.load %arg2[%c54] : memref<98xf32, #tpu.memory_space<smem>>
      %c55 = arith.constant 55 : index
      %200 = memref.load %arg2[%c55] : memref<98xf32, #tpu.memory_space<smem>>
      %c56 = arith.constant 56 : index
      %201 = memref.load %arg2[%c56] : memref<98xf32, #tpu.memory_space<smem>>
      %c57 = arith.constant 57 : index
      %202 = memref.load %arg2[%c57] : memref<98xf32, #tpu.memory_space<smem>>
      %c58 = arith.constant 58 : index
      %203 = memref.load %arg2[%c58] : memref<98xf32, #tpu.memory_space<smem>>
      %c59 = arith.constant 59 : index
      %204 = memref.load %arg2[%c59] : memref<98xf32, #tpu.memory_space<smem>>
      %c60 = arith.constant 60 : index
      %205 = memref.load %arg2[%c60] : memref<98xf32, #tpu.memory_space<smem>>
      %c61 = arith.constant 61 : index
      %206 = memref.load %arg2[%c61] : memref<98xf32, #tpu.memory_space<smem>>
      %c62 = arith.constant 62 : index
      %207 = memref.load %arg2[%c62] : memref<98xf32, #tpu.memory_space<smem>>
      %c63 = arith.constant 63 : index
      %208 = memref.load %arg2[%c63] : memref<98xf32, #tpu.memory_space<smem>>
      %c64_161 = arith.constant 64 : index
      %209 = memref.load %arg2[%c64_161] : memref<98xf32, #tpu.memory_space<smem>>
      %c65 = arith.constant 65 : index
      %210 = memref.load %arg2[%c65] : memref<98xf32, #tpu.memory_space<smem>>
      %c66 = arith.constant 66 : index
      %211 = memref.load %arg2[%c66] : memref<98xf32, #tpu.memory_space<smem>>
      %c67 = arith.constant 67 : index
      %212 = memref.load %arg2[%c67] : memref<98xf32, #tpu.memory_space<smem>>
      %c68 = arith.constant 68 : index
      %213 = memref.load %arg2[%c68] : memref<98xf32, #tpu.memory_space<smem>>
      %c69 = arith.constant 69 : index
      %214 = memref.load %arg2[%c69] : memref<98xf32, #tpu.memory_space<smem>>
      %c70 = arith.constant 70 : index
      %215 = memref.load %arg2[%c70] : memref<98xf32, #tpu.memory_space<smem>>
      %c71 = arith.constant 71 : index
      %216 = memref.load %arg2[%c71] : memref<98xf32, #tpu.memory_space<smem>>
      %c72 = arith.constant 72 : index
      %217 = memref.load %arg2[%c72] : memref<98xf32, #tpu.memory_space<smem>>
      %c73 = arith.constant 73 : index
      %218 = memref.load %arg2[%c73] : memref<98xf32, #tpu.memory_space<smem>>
      %c74 = arith.constant 74 : index
      %219 = memref.load %arg2[%c74] : memref<98xf32, #tpu.memory_space<smem>>
      %c75 = arith.constant 75 : index
      %220 = memref.load %arg2[%c75] : memref<98xf32, #tpu.memory_space<smem>>
      %c76 = arith.constant 76 : index
      %221 = memref.load %arg2[%c76] : memref<98xf32, #tpu.memory_space<smem>>
      %c77 = arith.constant 77 : index
      %222 = memref.load %arg2[%c77] : memref<98xf32, #tpu.memory_space<smem>>
      %c78 = arith.constant 78 : index
      %223 = memref.load %arg2[%c78] : memref<98xf32, #tpu.memory_space<smem>>
      %c79 = arith.constant 79 : index
      %224 = memref.load %arg2[%c79] : memref<98xf32, #tpu.memory_space<smem>>
      %c80_162 = arith.constant 80 : index
      %225 = memref.load %arg2[%c80_162] : memref<98xf32, #tpu.memory_space<smem>>
      %c81 = arith.constant 81 : index
      %226 = memref.load %arg2[%c81] : memref<98xf32, #tpu.memory_space<smem>>
      %c82 = arith.constant 82 : index
      %227 = memref.load %arg2[%c82] : memref<98xf32, #tpu.memory_space<smem>>
      %c83 = arith.constant 83 : index
      %228 = memref.load %arg2[%c83] : memref<98xf32, #tpu.memory_space<smem>>
      %c84 = arith.constant 84 : index
      %229 = memref.load %arg2[%c84] : memref<98xf32, #tpu.memory_space<smem>>
      %c85 = arith.constant 85 : index
      %230 = memref.load %arg2[%c85] : memref<98xf32, #tpu.memory_space<smem>>
      %c86 = arith.constant 86 : index
      %231 = memref.load %arg2[%c86] : memref<98xf32, #tpu.memory_space<smem>>
      %c87 = arith.constant 87 : index
      %232 = memref.load %arg2[%c87] : memref<98xf32, #tpu.memory_space<smem>>
      %c88 = arith.constant 88 : index
      %233 = memref.load %arg2[%c88] : memref<98xf32, #tpu.memory_space<smem>>
      %c89 = arith.constant 89 : index
      %234 = memref.load %arg2[%c89] : memref<98xf32, #tpu.memory_space<smem>>
      %c90 = arith.constant 90 : index
      %235 = memref.load %arg2[%c90] : memref<98xf32, #tpu.memory_space<smem>>
      %c91 = arith.constant 91 : index
      %236 = memref.load %arg2[%c91] : memref<98xf32, #tpu.memory_space<smem>>
      %c92 = arith.constant 92 : index
      %237 = memref.load %arg2[%c92] : memref<98xf32, #tpu.memory_space<smem>>
      %c93 = arith.constant 93 : index
      %238 = memref.load %arg2[%c93] : memref<98xf32, #tpu.memory_space<smem>>
      %c94 = arith.constant 94 : index
      %239 = memref.load %arg2[%c94] : memref<98xf32, #tpu.memory_space<smem>>
      %c95 = arith.constant 95 : index
      %240 = memref.load %arg2[%c95] : memref<98xf32, #tpu.memory_space<smem>>
      %c96_163 = arith.constant 96 : index
      %241 = memref.load %arg2[%c96_163] : memref<98xf32, #tpu.memory_space<smem>>
      %c97 = arith.constant 97 : index
      %242 = memref.load %arg2[%c97] : memref<98xf32, #tpu.memory_space<smem>>
      %cst_164 = arith.constant 0.000000e+00 : f32
      %243 = vector.broadcast %cst_164 : f32 to vector<16x16xf32>
      %cst_165 = arith.constant 0.000000e+00 : f32
      %244 = vector.broadcast %cst_165 : f32 to vector<16x16xf32>
      %c0_166 = arith.constant 0 : index
      %c0_167 = arith.constant 0 : index
      %c0_168 = arith.constant 0 : index
      %245 = vector.load %arg6[%c0_166, %c0_167, %c0_168] : memref<2x22x22xf32, #tpu.memory_space<vmem>>, vector<1x22x16xf32>
      %246 = vector.shape_cast %245 : vector<1x22x16xf32> to vector<22x16xf32>
      %c1_169 = arith.constant 1 : index
      %c0_170 = arith.constant 0 : index
      %c0_171 = arith.constant 0 : index
      %247 = vector.load %arg6[%c1_169, %c0_170, %c0_171] : memref<2x22x22xf32, #tpu.memory_space<vmem>>, vector<1x22x16xf32>
      %248 = vector.shape_cast %247 : vector<1x22x16xf32> to vector<22x16xf32>
      %249 = vector.extract_strided_slice %246 {offsets = [0, 0], sizes = [16, 16], strides = [1, 1]} : vector<22x16xf32> to vector<16x16xf32>
      %250 = vector.broadcast %145 : f32 to vector<16x16xf32>
      %251 = arith.mulf %250, %249 : vector<16x16xf32>
      %252 = arith.addf %243, %251 : vector<16x16xf32>
      %253 = vector.extract_strided_slice %248 {offsets = [0, 0], sizes = [16, 16], strides = [1, 1]} : vector<22x16xf32> to vector<16x16xf32>
      %254 = vector.broadcast %194 : f32 to vector<16x16xf32>
      %255 = arith.mulf %254, %253 : vector<16x16xf32>
      %256 = arith.addf %244, %255 : vector<16x16xf32>
      %257 = vector.extract_strided_slice %246 {offsets = [1, 0], sizes = [16, 16], strides = [1, 1]} : vector<22x16xf32> to vector<16x16xf32>
      %258 = vector.broadcast %152 : f32 to vector<16x16xf32>
      %259 = arith.mulf %258, %257 : vector<16x16xf32>
      %260 = arith.addf %252, %259 : vector<16x16xf32>
      %261 = vector.extract_strided_slice %248 {offsets = [1, 0], sizes = [16, 16], strides = [1, 1]} : vector<22x16xf32> to vector<16x16xf32>
      %262 = vector.broadcast %201 : f32 to vector<16x16xf32>
      %263 = arith.mulf %262, %261 : vector<16x16xf32>
      %264 = arith.addf %256, %263 : vector<16x16xf32>
      %265 = vector.extract_strided_slice %246 {offsets = [2, 0], sizes = [16, 16], strides = [1, 1]} : vector<22x16xf32> to vector<16x16xf32>
      %266 = vector.broadcast %159 : f32 to vector<16x16xf32>
      %267 = arith.mulf %266, %265 : vector<16x16xf32>
      %268 = arith.addf %260, %267 : vector<16x16xf32>
      %269 = vector.extract_strided_slice %248 {offsets = [2, 0], sizes = [16, 16], strides = [1, 1]} : vector<22x16xf32> to vector<16x16xf32>
      %270 = vector.broadcast %208 : f32 to vector<16x16xf32>
      %271 = arith.mulf %270, %269 : vector<16x16xf32>
      %272 = arith.addf %264, %271 : vector<16x16xf32>
      %273 = vector.extract_strided_slice %246 {offsets = [3, 0], sizes = [16, 16], strides = [1, 1]} : vector<22x16xf32> to vector<16x16xf32>
      %274 = vector.broadcast %166 : f32 to vector<16x16xf32>
      %275 = arith.mulf %274, %273 : vector<16x16xf32>
      %276 = arith.addf %268, %275 : vector<16x16xf32>
      %277 = vector.extract_strided_slice %248 {offsets = [3, 0], sizes = [16, 16], strides = [1, 1]} : vector<22x16xf32> to vector<16x16xf32>
      %278 = vector.broadcast %215 : f32 to vector<16x16xf32>
      %279 = arith.mulf %278, %277 : vector<16x16xf32>
      %280 = arith.addf %272, %279 : vector<16x16xf32>
      %281 = vector.extract_strided_slice %246 {offsets = [4, 0], sizes = [16, 16], strides = [1, 1]} : vector<22x16xf32> to vector<16x16xf32>
      %282 = vector.broadcast %173 : f32 to vector<16x16xf32>
      %283 = arith.mulf %282, %281 : vector<16x16xf32>
      %284 = arith.addf %276, %283 : vector<16x16xf32>
      %285 = vector.extract_strided_slice %248 {offsets = [4, 0], sizes = [16, 16], strides = [1, 1]} : vector<22x16xf32> to vector<16x16xf32>
      %286 = vector.broadcast %222 : f32 to vector<16x16xf32>
      %287 = arith.mulf %286, %285 : vector<16x16xf32>
      %288 = arith.addf %280, %287 : vector<16x16xf32>
      %289 = vector.extract_strided_slice %246 {offsets = [5, 0], sizes = [16, 16], strides = [1, 1]} : vector<22x16xf32> to vector<16x16xf32>
      %290 = vector.broadcast %180 : f32 to vector<16x16xf32>
      %291 = arith.mulf %290, %289 : vector<16x16xf32>
      %292 = arith.addf %284, %291 : vector<16x16xf32>
      %293 = vector.extract_strided_slice %248 {offsets = [5, 0], sizes = [16, 16], strides = [1, 1]} : vector<22x16xf32> to vector<16x16xf32>
      %294 = vector.broadcast %229 : f32 to vector<16x16xf32>
      %295 = arith.mulf %294, %293 : vector<16x16xf32>
      %296 = arith.addf %288, %295 : vector<16x16xf32>
      %297 = vector.extract_strided_slice %246 {offsets = [6, 0], sizes = [16, 16], strides = [1, 1]} : vector<22x16xf32> to vector<16x16xf32>
      %298 = vector.broadcast %187 : f32 to vector<16x16xf32>
      %299 = arith.mulf %298, %297 : vector<16x16xf32>
      %300 = arith.addf %292, %299 : vector<16x16xf32>
      %301 = vector.extract_strided_slice %248 {offsets = [6, 0], sizes = [16, 16], strides = [1, 1]} : vector<22x16xf32> to vector<16x16xf32>
      %302 = vector.broadcast %236 : f32 to vector<16x16xf32>
      %303 = arith.mulf %302, %301 : vector<16x16xf32>
      %304 = arith.addf %296, %303 : vector<16x16xf32>
      %c0_172 = arith.constant 0 : index
      %c0_173 = arith.constant 0 : index
      %c1_174 = arith.constant 1 : index
      %305 = vector.load %arg6[%c0_172, %c0_173, %c1_174] : memref<2x22x22xf32, #tpu.memory_space<vmem>>, vector<1x22x16xf32>
      %306 = vector.shape_cast %305 : vector<1x22x16xf32> to vector<22x16xf32>
      %c1_175 = arith.constant 1 : index
      %c0_176 = arith.constant 0 : index
      %c1_177 = arith.constant 1 : index
      %307 = vector.load %arg6[%c1_175, %c0_176, %c1_177] : memref<2x22x22xf32, #tpu.memory_space<vmem>>, vector<1x22x16xf32>
      %308 = vector.shape_cast %307 : vector<1x22x16xf32> to vector<22x16xf32>
      %309 = vector.extract_strided_slice %306 {offsets = [0, 0], sizes = [16, 16], strides = [1, 1]} : vector<22x16xf32> to vector<16x16xf32>
      %310 = vector.broadcast %146 : f32 to vector<16x16xf32>
      %311 = arith.mulf %310, %309 : vector<16x16xf32>
      %312 = arith.addf %300, %311 : vector<16x16xf32>
      %313 = vector.extract_strided_slice %308 {offsets = [0, 0], sizes = [16, 16], strides = [1, 1]} : vector<22x16xf32> to vector<16x16xf32>
      %314 = vector.broadcast %195 : f32 to vector<16x16xf32>
      %315 = arith.mulf %314, %313 : vector<16x16xf32>
      %316 = arith.addf %304, %315 : vector<16x16xf32>
      %317 = vector.extract_strided_slice %306 {offsets = [1, 0], sizes = [16, 16], strides = [1, 1]} : vector<22x16xf32> to vector<16x16xf32>
      %318 = vector.broadcast %153 : f32 to vector<16x16xf32>
      %319 = arith.mulf %318, %317 : vector<16x16xf32>
      %320 = arith.addf %312, %319 : vector<16x16xf32>
      %321 = vector.extract_strided_slice %308 {offsets = [1, 0], sizes = [16, 16], strides = [1, 1]} : vector<22x16xf32> to vector<16x16xf32>
      %322 = vector.broadcast %202 : f32 to vector<16x16xf32>
      %323 = arith.mulf %322, %321 : vector<16x16xf32>
      %324 = arith.addf %316, %323 : vector<16x16xf32>
      %325 = vector.extract_strided_slice %306 {offsets = [2, 0], sizes = [16, 16], strides = [1, 1]} : vector<22x16xf32> to vector<16x16xf32>
      %326 = vector.broadcast %160 : f32 to vector<16x16xf32>
      %327 = arith.mulf %326, %325 : vector<16x16xf32>
      %328 = arith.addf %320, %327 : vector<16x16xf32>
      %329 = vector.extract_strided_slice %308 {offsets = [2, 0], sizes = [16, 16], strides = [1, 1]} : vector<22x16xf32> to vector<16x16xf32>
      %330 = vector.broadcast %209 : f32 to vector<16x16xf32>
      %331 = arith.mulf %330, %329 : vector<16x16xf32>
      %332 = arith.addf %324, %331 : vector<16x16xf32>
      %333 = vector.extract_strided_slice %306 {offsets = [3, 0], sizes = [16, 16], strides = [1, 1]} : vector<22x16xf32> to vector<16x16xf32>
      %334 = vector.broadcast %167 : f32 to vector<16x16xf32>
      %335 = arith.mulf %334, %333 : vector<16x16xf32>
      %336 = arith.addf %328, %335 : vector<16x16xf32>
      %337 = vector.extract_strided_slice %308 {offsets = [3, 0], sizes = [16, 16], strides = [1, 1]} : vector<22x16xf32> to vector<16x16xf32>
      %338 = vector.broadcast %216 : f32 to vector<16x16xf32>
      %339 = arith.mulf %338, %337 : vector<16x16xf32>
      %340 = arith.addf %332, %339 : vector<16x16xf32>
      %341 = vector.extract_strided_slice %306 {offsets = [4, 0], sizes = [16, 16], strides = [1, 1]} : vector<22x16xf32> to vector<16x16xf32>
      %342 = vector.broadcast %174 : f32 to vector<16x16xf32>
      %343 = arith.mulf %342, %341 : vector<16x16xf32>
      %344 = arith.addf %336, %343 : vector<16x16xf32>
      %345 = vector.extract_strided_slice %308 {offsets = [4, 0], sizes = [16, 16], strides = [1, 1]} : vector<22x16xf32> to vector<16x16xf32>
      %346 = vector.broadcast %223 : f32 to vector<16x16xf32>
      %347 = arith.mulf %346, %345 : vector<16x16xf32>
      %348 = arith.addf %340, %347 : vector<16x16xf32>
      %349 = vector.extract_strided_slice %306 {offsets = [5, 0], sizes = [16, 16], strides = [1, 1]} : vector<22x16xf32> to vector<16x16xf32>
      %350 = vector.broadcast %181 : f32 to vector<16x16xf32>
      %351 = arith.mulf %350, %349 : vector<16x16xf32>
      %352 = arith.addf %344, %351 : vector<16x16xf32>
      %353 = vector.extract_strided_slice %308 {offsets = [5, 0], sizes = [16, 16], strides = [1, 1]} : vector<22x16xf32> to vector<16x16xf32>
      %354 = vector.broadcast %230 : f32 to vector<16x16xf32>
      %355 = arith.mulf %354, %353 : vector<16x16xf32>
      %356 = arith.addf %348, %355 : vector<16x16xf32>
      %357 = vector.extract_strided_slice %306 {offsets = [6, 0], sizes = [16, 16], strides = [1, 1]} : vector<22x16xf32> to vector<16x16xf32>
      %358 = vector.broadcast %188 : f32 to vector<16x16xf32>
      %359 = arith.mulf %358, %357 : vector<16x16xf32>
      %360 = arith.addf %352, %359 : vector<16x16xf32>
      %361 = vector.extract_strided_slice %308 {offsets = [6, 0], sizes = [16, 16], strides = [1, 1]} : vector<22x16xf32> to vector<16x16xf32>
      %362 = vector.broadcast %237 : f32 to vector<16x16xf32>
      %363 = arith.mulf %362, %361 : vector<16x16xf32>
      %364 = arith.addf %356, %363 : vector<16x16xf32>
      %c0_178 = arith.constant 0 : index
      %c0_179 = arith.constant 0 : index
      %c2_180 = arith.constant 2 : index
      %365 = vector.load %arg6[%c0_178, %c0_179, %c2_180] : memref<2x22x22xf32, #tpu.memory_space<vmem>>, vector<1x22x16xf32>
      %366 = vector.shape_cast %365 : vector<1x22x16xf32> to vector<22x16xf32>
      %c1_181 = arith.constant 1 : index
      %c0_182 = arith.constant 0 : index
      %c2_183 = arith.constant 2 : index
      %367 = vector.load %arg6[%c1_181, %c0_182, %c2_183] : memref<2x22x22xf32, #tpu.memory_space<vmem>>, vector<1x22x16xf32>
      %368 = vector.shape_cast %367 : vector<1x22x16xf32> to vector<22x16xf32>
      %369 = vector.extract_strided_slice %366 {offsets = [0, 0], sizes = [16, 16], strides = [1, 1]} : vector<22x16xf32> to vector<16x16xf32>
      %370 = vector.broadcast %147 : f32 to vector<16x16xf32>
      %371 = arith.mulf %370, %369 : vector<16x16xf32>
      %372 = arith.addf %360, %371 : vector<16x16xf32>
      %373 = vector.extract_strided_slice %368 {offsets = [0, 0], sizes = [16, 16], strides = [1, 1]} : vector<22x16xf32> to vector<16x16xf32>
      %374 = vector.broadcast %196 : f32 to vector<16x16xf32>
      %375 = arith.mulf %374, %373 : vector<16x16xf32>
      %376 = arith.addf %364, %375 : vector<16x16xf32>
      %377 = vector.extract_strided_slice %366 {offsets = [1, 0], sizes = [16, 16], strides = [1, 1]} : vector<22x16xf32> to vector<16x16xf32>
      %378 = vector.broadcast %154 : f32 to vector<16x16xf32>
      %379 = arith.mulf %378, %377 : vector<16x16xf32>
      %380 = arith.addf %372, %379 : vector<16x16xf32>
      %381 = vector.extract_strided_slice %368 {offsets = [1, 0], sizes = [16, 16], strides = [1, 1]} : vector<22x16xf32> to vector<16x16xf32>
      %382 = vector.broadcast %203 : f32 to vector<16x16xf32>
      %383 = arith.mulf %382, %381 : vector<16x16xf32>
      %384 = arith.addf %376, %383 : vector<16x16xf32>
      %385 = vector.extract_strided_slice %366 {offsets = [2, 0], sizes = [16, 16], strides = [1, 1]} : vector<22x16xf32> to vector<16x16xf32>
      %386 = vector.broadcast %161 : f32 to vector<16x16xf32>
      %387 = arith.mulf %386, %385 : vector<16x16xf32>
      %388 = arith.addf %380, %387 : vector<16x16xf32>
      %389 = vector.extract_strided_slice %368 {offsets = [2, 0], sizes = [16, 16], strides = [1, 1]} : vector<22x16xf32> to vector<16x16xf32>
      %390 = vector.broadcast %210 : f32 to vector<16x16xf32>
      %391 = arith.mulf %390, %389 : vector<16x16xf32>
      %392 = arith.addf %384, %391 : vector<16x16xf32>
      %393 = vector.extract_strided_slice %366 {offsets = [3, 0], sizes = [16, 16], strides = [1, 1]} : vector<22x16xf32> to vector<16x16xf32>
      %394 = vector.broadcast %168 : f32 to vector<16x16xf32>
      %395 = arith.mulf %394, %393 : vector<16x16xf32>
      %396 = arith.addf %388, %395 : vector<16x16xf32>
      %397 = vector.extract_strided_slice %368 {offsets = [3, 0], sizes = [16, 16], strides = [1, 1]} : vector<22x16xf32> to vector<16x16xf32>
      %398 = vector.broadcast %217 : f32 to vector<16x16xf32>
      %399 = arith.mulf %398, %397 : vector<16x16xf32>
      %400 = arith.addf %392, %399 : vector<16x16xf32>
      %401 = vector.extract_strided_slice %366 {offsets = [4, 0], sizes = [16, 16], strides = [1, 1]} : vector<22x16xf32> to vector<16x16xf32>
      %402 = vector.broadcast %175 : f32 to vector<16x16xf32>
      %403 = arith.mulf %402, %401 : vector<16x16xf32>
      %404 = arith.addf %396, %403 : vector<16x16xf32>
      %405 = vector.extract_strided_slice %368 {offsets = [4, 0], sizes = [16, 16], strides = [1, 1]} : vector<22x16xf32> to vector<16x16xf32>
      %406 = vector.broadcast %224 : f32 to vector<16x16xf32>
      %407 = arith.mulf %406, %405 : vector<16x16xf32>
      %408 = arith.addf %400, %407 : vector<16x16xf32>
      %409 = vector.extract_strided_slice %366 {offsets = [5, 0], sizes = [16, 16], strides = [1, 1]} : vector<22x16xf32> to vector<16x16xf32>
      %410 = vector.broadcast %182 : f32 to vector<16x16xf32>
      %411 = arith.mulf %410, %409 : vector<16x16xf32>
      %412 = arith.addf %404, %411 : vector<16x16xf32>
      %413 = vector.extract_strided_slice %368 {offsets = [5, 0], sizes = [16, 16], strides = [1, 1]} : vector<22x16xf32> to vector<16x16xf32>
      %414 = vector.broadcast %231 : f32 to vector<16x16xf32>
      %415 = arith.mulf %414, %413 : vector<16x16xf32>
      %416 = arith.addf %408, %415 : vector<16x16xf32>
      %417 = vector.extract_strided_slice %366 {offsets = [6, 0], sizes = [16, 16], strides = [1, 1]} : vector<22x16xf32> to vector<16x16xf32>
      %418 = vector.broadcast %189 : f32 to vector<16x16xf32>
      %419 = arith.mulf %418, %417 : vector<16x16xf32>
      %420 = arith.addf %412, %419 : vector<16x16xf32>
      %421 = vector.extract_strided_slice %368 {offsets = [6, 0], sizes = [16, 16], strides = [1, 1]} : vector<22x16xf32> to vector<16x16xf32>
      %422 = vector.broadcast %238 : f32 to vector<16x16xf32>
      %423 = arith.mulf %422, %421 : vector<16x16xf32>
      %424 = arith.addf %416, %423 : vector<16x16xf32>
      %c0_184 = arith.constant 0 : index
      %c0_185 = arith.constant 0 : index
      %c3_186 = arith.constant 3 : index
      %425 = vector.load %arg6[%c0_184, %c0_185, %c3_186] : memref<2x22x22xf32, #tpu.memory_space<vmem>>, vector<1x22x16xf32>
      %426 = vector.shape_cast %425 : vector<1x22x16xf32> to vector<22x16xf32>
      %c1_187 = arith.constant 1 : index
      %c0_188 = arith.constant 0 : index
      %c3_189 = arith.constant 3 : index
      %427 = vector.load %arg6[%c1_187, %c0_188, %c3_189] : memref<2x22x22xf32, #tpu.memory_space<vmem>>, vector<1x22x16xf32>
      %428 = vector.shape_cast %427 : vector<1x22x16xf32> to vector<22x16xf32>
      %429 = vector.extract_strided_slice %426 {offsets = [0, 0], sizes = [16, 16], strides = [1, 1]} : vector<22x16xf32> to vector<16x16xf32>
      %430 = vector.broadcast %148 : f32 to vector<16x16xf32>
      %431 = arith.mulf %430, %429 : vector<16x16xf32>
      %432 = arith.addf %420, %431 : vector<16x16xf32>
      %433 = vector.extract_strided_slice %428 {offsets = [0, 0], sizes = [16, 16], strides = [1, 1]} : vector<22x16xf32> to vector<16x16xf32>
      %434 = vector.broadcast %197 : f32 to vector<16x16xf32>
      %435 = arith.mulf %434, %433 : vector<16x16xf32>
      %436 = arith.addf %424, %435 : vector<16x16xf32>
      %437 = vector.extract_strided_slice %426 {offsets = [1, 0], sizes = [16, 16], strides = [1, 1]} : vector<22x16xf32> to vector<16x16xf32>
      %438 = vector.broadcast %155 : f32 to vector<16x16xf32>
      %439 = arith.mulf %438, %437 : vector<16x16xf32>
      %440 = arith.addf %432, %439 : vector<16x16xf32>
      %441 = vector.extract_strided_slice %428 {offsets = [1, 0], sizes = [16, 16], strides = [1, 1]} : vector<22x16xf32> to vector<16x16xf32>
      %442 = vector.broadcast %204 : f32 to vector<16x16xf32>
      %443 = arith.mulf %442, %441 : vector<16x16xf32>
      %444 = arith.addf %436, %443 : vector<16x16xf32>
      %445 = vector.extract_strided_slice %426 {offsets = [2, 0], sizes = [16, 16], strides = [1, 1]} : vector<22x16xf32> to vector<16x16xf32>
      %446 = vector.broadcast %162 : f32 to vector<16x16xf32>
      %447 = arith.mulf %446, %445 : vector<16x16xf32>
      %448 = arith.addf %440, %447 : vector<16x16xf32>
      %449 = vector.extract_strided_slice %428 {offsets = [2, 0], sizes = [16, 16], strides = [1, 1]} : vector<22x16xf32> to vector<16x16xf32>
      %450 = vector.broadcast %211 : f32 to vector<16x16xf32>
      %451 = arith.mulf %450, %449 : vector<16x16xf32>
      %452 = arith.addf %444, %451 : vector<16x16xf32>
      %453 = vector.extract_strided_slice %426 {offsets = [3, 0], sizes = [16, 16], strides = [1, 1]} : vector<22x16xf32> to vector<16x16xf32>
      %454 = vector.broadcast %169 : f32 to vector<16x16xf32>
      %455 = arith.mulf %454, %453 : vector<16x16xf32>
      %456 = arith.addf %448, %455 : vector<16x16xf32>
      %457 = vector.extract_strided_slice %428 {offsets = [3, 0], sizes = [16, 16], strides = [1, 1]} : vector<22x16xf32> to vector<16x16xf32>
      %458 = vector.broadcast %218 : f32 to vector<16x16xf32>
      %459 = arith.mulf %458, %457 : vector<16x16xf32>
      %460 = arith.addf %452, %459 : vector<16x16xf32>
      %461 = vector.extract_strided_slice %426 {offsets = [4, 0], sizes = [16, 16], strides = [1, 1]} : vector<22x16xf32> to vector<16x16xf32>
      %462 = vector.broadcast %176 : f32 to vector<16x16xf32>
      %463 = arith.mulf %462, %461 : vector<16x16xf32>
      %464 = arith.addf %456, %463 : vector<16x16xf32>
      %465 = vector.extract_strided_slice %428 {offsets = [4, 0], sizes = [16, 16], strides = [1, 1]} : vector<22x16xf32> to vector<16x16xf32>
      %466 = vector.broadcast %225 : f32 to vector<16x16xf32>
      %467 = arith.mulf %466, %465 : vector<16x16xf32>
      %468 = arith.addf %460, %467 : vector<16x16xf32>
      %469 = vector.extract_strided_slice %426 {offsets = [5, 0], sizes = [16, 16], strides = [1, 1]} : vector<22x16xf32> to vector<16x16xf32>
      %470 = vector.broadcast %183 : f32 to vector<16x16xf32>
      %471 = arith.mulf %470, %469 : vector<16x16xf32>
      %472 = arith.addf %464, %471 : vector<16x16xf32>
      %473 = vector.extract_strided_slice %428 {offsets = [5, 0], sizes = [16, 16], strides = [1, 1]} : vector<22x16xf32> to vector<16x16xf32>
      %474 = vector.broadcast %232 : f32 to vector<16x16xf32>
      %475 = arith.mulf %474, %473 : vector<16x16xf32>
      %476 = arith.addf %468, %475 : vector<16x16xf32>
      %477 = vector.extract_strided_slice %426 {offsets = [6, 0], sizes = [16, 16], strides = [1, 1]} : vector<22x16xf32> to vector<16x16xf32>
      %478 = vector.broadcast %190 : f32 to vector<16x16xf32>
      %479 = arith.mulf %478, %477 : vector<16x16xf32>
      %480 = arith.addf %472, %479 : vector<16x16xf32>
      %481 = vector.extract_strided_slice %428 {offsets = [6, 0], sizes = [16, 16], strides = [1, 1]} : vector<22x16xf32> to vector<16x16xf32>
      %482 = vector.broadcast %239 : f32 to vector<16x16xf32>
      %483 = arith.mulf %482, %481 : vector<16x16xf32>
      %484 = arith.addf %476, %483 : vector<16x16xf32>
      %c0_190 = arith.constant 0 : index
      %c0_191 = arith.constant 0 : index
      %c4_192 = arith.constant 4 : index
      %485 = vector.load %arg6[%c0_190, %c0_191, %c4_192] : memref<2x22x22xf32, #tpu.memory_space<vmem>>, vector<1x22x16xf32>
      %486 = vector.shape_cast %485 : vector<1x22x16xf32> to vector<22x16xf32>
      %c1_193 = arith.constant 1 : index
      %c0_194 = arith.constant 0 : index
      %c4_195 = arith.constant 4 : index
      %487 = vector.load %arg6[%c1_193, %c0_194, %c4_195] : memref<2x22x22xf32, #tpu.memory_space<vmem>>, vector<1x22x16xf32>
      %488 = vector.shape_cast %487 : vector<1x22x16xf32> to vector<22x16xf32>
      %489 = vector.extract_strided_slice %486 {offsets = [0, 0], sizes = [16, 16], strides = [1, 1]} : vector<22x16xf32> to vector<16x16xf32>
      %490 = vector.broadcast %149 : f32 to vector<16x16xf32>
      %491 = arith.mulf %490, %489 : vector<16x16xf32>
      %492 = arith.addf %480, %491 : vector<16x16xf32>
      %493 = vector.extract_strided_slice %488 {offsets = [0, 0], sizes = [16, 16], strides = [1, 1]} : vector<22x16xf32> to vector<16x16xf32>
      %494 = vector.broadcast %198 : f32 to vector<16x16xf32>
      %495 = arith.mulf %494, %493 : vector<16x16xf32>
      %496 = arith.addf %484, %495 : vector<16x16xf32>
      %497 = vector.extract_strided_slice %486 {offsets = [1, 0], sizes = [16, 16], strides = [1, 1]} : vector<22x16xf32> to vector<16x16xf32>
      %498 = vector.broadcast %156 : f32 to vector<16x16xf32>
      %499 = arith.mulf %498, %497 : vector<16x16xf32>
      %500 = arith.addf %492, %499 : vector<16x16xf32>
      %501 = vector.extract_strided_slice %488 {offsets = [1, 0], sizes = [16, 16], strides = [1, 1]} : vector<22x16xf32> to vector<16x16xf32>
      %502 = vector.broadcast %205 : f32 to vector<16x16xf32>
      %503 = arith.mulf %502, %501 : vector<16x16xf32>
      %504 = arith.addf %496, %503 : vector<16x16xf32>
      %505 = vector.extract_strided_slice %486 {offsets = [2, 0], sizes = [16, 16], strides = [1, 1]} : vector<22x16xf32> to vector<16x16xf32>
      %506 = vector.broadcast %163 : f32 to vector<16x16xf32>
      %507 = arith.mulf %506, %505 : vector<16x16xf32>
      %508 = arith.addf %500, %507 : vector<16x16xf32>
      %509 = vector.extract_strided_slice %488 {offsets = [2, 0], sizes = [16, 16], strides = [1, 1]} : vector<22x16xf32> to vector<16x16xf32>
      %510 = vector.broadcast %212 : f32 to vector<16x16xf32>
      %511 = arith.mulf %510, %509 : vector<16x16xf32>
      %512 = arith.addf %504, %511 : vector<16x16xf32>
      %513 = vector.extract_strided_slice %486 {offsets = [3, 0], sizes = [16, 16], strides = [1, 1]} : vector<22x16xf32> to vector<16x16xf32>
      %514 = vector.broadcast %170 : f32 to vector<16x16xf32>
      %515 = arith.mulf %514, %513 : vector<16x16xf32>
      %516 = arith.addf %508, %515 : vector<16x16xf32>
      %517 = vector.extract_strided_slice %488 {offsets = [3, 0], sizes = [16, 16], strides = [1, 1]} : vector<22x16xf32> to vector<16x16xf32>
      %518 = vector.broadcast %219 : f32 to vector<16x16xf32>
      %519 = arith.mulf %518, %517 : vector<16x16xf32>
      %520 = arith.addf %512, %519 : vector<16x16xf32>
      %521 = vector.extract_strided_slice %486 {offsets = [4, 0], sizes = [16, 16], strides = [1, 1]} : vector<22x16xf32> to vector<16x16xf32>
      %522 = vector.broadcast %177 : f32 to vector<16x16xf32>
      %523 = arith.mulf %522, %521 : vector<16x16xf32>
      %524 = arith.addf %516, %523 : vector<16x16xf32>
      %525 = vector.extract_strided_slice %488 {offsets = [4, 0], sizes = [16, 16], strides = [1, 1]} : vector<22x16xf32> to vector<16x16xf32>
      %526 = vector.broadcast %226 : f32 to vector<16x16xf32>
      %527 = arith.mulf %526, %525 : vector<16x16xf32>
      %528 = arith.addf %520, %527 : vector<16x16xf32>
      %529 = vector.extract_strided_slice %486 {offsets = [5, 0], sizes = [16, 16], strides = [1, 1]} : vector<22x16xf32> to vector<16x16xf32>
      %530 = vector.broadcast %184 : f32 to vector<16x16xf32>
      %531 = arith.mulf %530, %529 : vector<16x16xf32>
      %532 = arith.addf %524, %531 : vector<16x16xf32>
      %533 = vector.extract_strided_slice %488 {offsets = [5, 0], sizes = [16, 16], strides = [1, 1]} : vector<22x16xf32> to vector<16x16xf32>
      %534 = vector.broadcast %233 : f32 to vector<16x16xf32>
      %535 = arith.mulf %534, %533 : vector<16x16xf32>
      %536 = arith.addf %528, %535 : vector<16x16xf32>
      %537 = vector.extract_strided_slice %486 {offsets = [6, 0], sizes = [16, 16], strides = [1, 1]} : vector<22x16xf32> to vector<16x16xf32>
      %538 = vector.broadcast %191 : f32 to vector<16x16xf32>
      %539 = arith.mulf %538, %537 : vector<16x16xf32>
      %540 = arith.addf %532, %539 : vector<16x16xf32>
      %541 = vector.extract_strided_slice %488 {offsets = [6, 0], sizes = [16, 16], strides = [1, 1]} : vector<22x16xf32> to vector<16x16xf32>
      %542 = vector.broadcast %240 : f32 to vector<16x16xf32>
      %543 = arith.mulf %542, %541 : vector<16x16xf32>
      %544 = arith.addf %536, %543 : vector<16x16xf32>
      %c0_196 = arith.constant 0 : index
      %c0_197 = arith.constant 0 : index
      %c5_198 = arith.constant 5 : index
      %545 = vector.load %arg6[%c0_196, %c0_197, %c5_198] : memref<2x22x22xf32, #tpu.memory_space<vmem>>, vector<1x22x16xf32>
      %546 = vector.shape_cast %545 : vector<1x22x16xf32> to vector<22x16xf32>
      %c1_199 = arith.constant 1 : index
      %c0_200 = arith.constant 0 : index
      %c5_201 = arith.constant 5 : index
      %547 = vector.load %arg6[%c1_199, %c0_200, %c5_201] : memref<2x22x22xf32, #tpu.memory_space<vmem>>, vector<1x22x16xf32>
      %548 = vector.shape_cast %547 : vector<1x22x16xf32> to vector<22x16xf32>
      %549 = vector.extract_strided_slice %546 {offsets = [0, 0], sizes = [16, 16], strides = [1, 1]} : vector<22x16xf32> to vector<16x16xf32>
      %550 = vector.broadcast %150 : f32 to vector<16x16xf32>
      %551 = arith.mulf %550, %549 : vector<16x16xf32>
      %552 = arith.addf %540, %551 : vector<16x16xf32>
      %553 = vector.extract_strided_slice %548 {offsets = [0, 0], sizes = [16, 16], strides = [1, 1]} : vector<22x16xf32> to vector<16x16xf32>
      %554 = vector.broadcast %199 : f32 to vector<16x16xf32>
      %555 = arith.mulf %554, %553 : vector<16x16xf32>
      %556 = arith.addf %544, %555 : vector<16x16xf32>
      %557 = vector.extract_strided_slice %546 {offsets = [1, 0], sizes = [16, 16], strides = [1, 1]} : vector<22x16xf32> to vector<16x16xf32>
      %558 = vector.broadcast %157 : f32 to vector<16x16xf32>
      %559 = arith.mulf %558, %557 : vector<16x16xf32>
      %560 = arith.addf %552, %559 : vector<16x16xf32>
      %561 = vector.extract_strided_slice %548 {offsets = [1, 0], sizes = [16, 16], strides = [1, 1]} : vector<22x16xf32> to vector<16x16xf32>
      %562 = vector.broadcast %206 : f32 to vector<16x16xf32>
      %563 = arith.mulf %562, %561 : vector<16x16xf32>
      %564 = arith.addf %556, %563 : vector<16x16xf32>
      %565 = vector.extract_strided_slice %546 {offsets = [2, 0], sizes = [16, 16], strides = [1, 1]} : vector<22x16xf32> to vector<16x16xf32>
      %566 = vector.broadcast %164 : f32 to vector<16x16xf32>
      %567 = arith.mulf %566, %565 : vector<16x16xf32>
      %568 = arith.addf %560, %567 : vector<16x16xf32>
      %569 = vector.extract_strided_slice %548 {offsets = [2, 0], sizes = [16, 16], strides = [1, 1]} : vector<22x16xf32> to vector<16x16xf32>
      %570 = vector.broadcast %213 : f32 to vector<16x16xf32>
      %571 = arith.mulf %570, %569 : vector<16x16xf32>
      %572 = arith.addf %564, %571 : vector<16x16xf32>
      %573 = vector.extract_strided_slice %546 {offsets = [3, 0], sizes = [16, 16], strides = [1, 1]} : vector<22x16xf32> to vector<16x16xf32>
      %574 = vector.broadcast %171 : f32 to vector<16x16xf32>
      %575 = arith.mulf %574, %573 : vector<16x16xf32>
      %576 = arith.addf %568, %575 : vector<16x16xf32>
      %577 = vector.extract_strided_slice %548 {offsets = [3, 0], sizes = [16, 16], strides = [1, 1]} : vector<22x16xf32> to vector<16x16xf32>
      %578 = vector.broadcast %220 : f32 to vector<16x16xf32>
      %579 = arith.mulf %578, %577 : vector<16x16xf32>
      %580 = arith.addf %572, %579 : vector<16x16xf32>
      %581 = vector.extract_strided_slice %546 {offsets = [4, 0], sizes = [16, 16], strides = [1, 1]} : vector<22x16xf32> to vector<16x16xf32>
      %582 = vector.broadcast %178 : f32 to vector<16x16xf32>
      %583 = arith.mulf %582, %581 : vector<16x16xf32>
      %584 = arith.addf %576, %583 : vector<16x16xf32>
      %585 = vector.extract_strided_slice %548 {offsets = [4, 0], sizes = [16, 16], strides = [1, 1]} : vector<22x16xf32> to vector<16x16xf32>
      %586 = vector.broadcast %227 : f32 to vector<16x16xf32>
      %587 = arith.mulf %586, %585 : vector<16x16xf32>
      %588 = arith.addf %580, %587 : vector<16x16xf32>
      %589 = vector.extract_strided_slice %546 {offsets = [5, 0], sizes = [16, 16], strides = [1, 1]} : vector<22x16xf32> to vector<16x16xf32>
      %590 = vector.broadcast %185 : f32 to vector<16x16xf32>
      %591 = arith.mulf %590, %589 : vector<16x16xf32>
      %592 = arith.addf %584, %591 : vector<16x16xf32>
      %593 = vector.extract_strided_slice %548 {offsets = [5, 0], sizes = [16, 16], strides = [1, 1]} : vector<22x16xf32> to vector<16x16xf32>
      %594 = vector.broadcast %234 : f32 to vector<16x16xf32>
      %595 = arith.mulf %594, %593 : vector<16x16xf32>
      %596 = arith.addf %588, %595 : vector<16x16xf32>
      %597 = vector.extract_strided_slice %546 {offsets = [6, 0], sizes = [16, 16], strides = [1, 1]} : vector<22x16xf32> to vector<16x16xf32>
      %598 = vector.broadcast %192 : f32 to vector<16x16xf32>
      %599 = arith.mulf %598, %597 : vector<16x16xf32>
      %600 = arith.addf %592, %599 : vector<16x16xf32>
      %601 = vector.extract_strided_slice %548 {offsets = [6, 0], sizes = [16, 16], strides = [1, 1]} : vector<22x16xf32> to vector<16x16xf32>
      %602 = vector.broadcast %241 : f32 to vector<16x16xf32>
      %603 = arith.mulf %602, %601 : vector<16x16xf32>
      %604 = arith.addf %596, %603 : vector<16x16xf32>
      %c0_202 = arith.constant 0 : index
      %c0_203 = arith.constant 0 : index
      %c6_204 = arith.constant 6 : index
      %605 = vector.load %arg6[%c0_202, %c0_203, %c6_204] : memref<2x22x22xf32, #tpu.memory_space<vmem>>, vector<1x22x16xf32>
      %606 = vector.shape_cast %605 : vector<1x22x16xf32> to vector<22x16xf32>
      %c1_205 = arith.constant 1 : index
      %c0_206 = arith.constant 0 : index
      %c6_207 = arith.constant 6 : index
      %607 = vector.load %arg6[%c1_205, %c0_206, %c6_207] : memref<2x22x22xf32, #tpu.memory_space<vmem>>, vector<1x22x16xf32>
      %608 = vector.shape_cast %607 : vector<1x22x16xf32> to vector<22x16xf32>
      %609 = vector.extract_strided_slice %606 {offsets = [0, 0], sizes = [16, 16], strides = [1, 1]} : vector<22x16xf32> to vector<16x16xf32>
      %610 = vector.broadcast %151 : f32 to vector<16x16xf32>
      %611 = arith.mulf %610, %609 : vector<16x16xf32>
      %612 = arith.addf %600, %611 : vector<16x16xf32>
      %613 = vector.extract_strided_slice %608 {offsets = [0, 0], sizes = [16, 16], strides = [1, 1]} : vector<22x16xf32> to vector<16x16xf32>
      %614 = vector.broadcast %200 : f32 to vector<16x16xf32>
      %615 = arith.mulf %614, %613 : vector<16x16xf32>
      %616 = arith.addf %604, %615 : vector<16x16xf32>
      %617 = vector.extract_strided_slice %606 {offsets = [1, 0], sizes = [16, 16], strides = [1, 1]} : vector<22x16xf32> to vector<16x16xf32>
      %618 = vector.broadcast %158 : f32 to vector<16x16xf32>
      %619 = arith.mulf %618, %617 : vector<16x16xf32>
      %620 = arith.addf %612, %619 : vector<16x16xf32>
      %621 = vector.extract_strided_slice %608 {offsets = [1, 0], sizes = [16, 16], strides = [1, 1]} : vector<22x16xf32> to vector<16x16xf32>
      %622 = vector.broadcast %207 : f32 to vector<16x16xf32>
      %623 = arith.mulf %622, %621 : vector<16x16xf32>
      %624 = arith.addf %616, %623 : vector<16x16xf32>
      %625 = vector.extract_strided_slice %606 {offsets = [2, 0], sizes = [16, 16], strides = [1, 1]} : vector<22x16xf32> to vector<16x16xf32>
      %626 = vector.broadcast %165 : f32 to vector<16x16xf32>
      %627 = arith.mulf %626, %625 : vector<16x16xf32>
      %628 = arith.addf %620, %627 : vector<16x16xf32>
      %629 = vector.extract_strided_slice %608 {offsets = [2, 0], sizes = [16, 16], strides = [1, 1]} : vector<22x16xf32> to vector<16x16xf32>
      %630 = vector.broadcast %214 : f32 to vector<16x16xf32>
      %631 = arith.mulf %630, %629 : vector<16x16xf32>
      %632 = arith.addf %624, %631 : vector<16x16xf32>
      %633 = vector.extract_strided_slice %606 {offsets = [3, 0], sizes = [16, 16], strides = [1, 1]} : vector<22x16xf32> to vector<16x16xf32>
      %634 = vector.broadcast %172 : f32 to vector<16x16xf32>
      %635 = arith.mulf %634, %633 : vector<16x16xf32>
      %636 = arith.addf %628, %635 : vector<16x16xf32>
      %637 = vector.extract_strided_slice %608 {offsets = [3, 0], sizes = [16, 16], strides = [1, 1]} : vector<22x16xf32> to vector<16x16xf32>
      %638 = vector.broadcast %221 : f32 to vector<16x16xf32>
      %639 = arith.mulf %638, %637 : vector<16x16xf32>
      %640 = arith.addf %632, %639 : vector<16x16xf32>
      %641 = vector.extract_strided_slice %606 {offsets = [4, 0], sizes = [16, 16], strides = [1, 1]} : vector<22x16xf32> to vector<16x16xf32>
      %642 = vector.broadcast %179 : f32 to vector<16x16xf32>
      %643 = arith.mulf %642, %641 : vector<16x16xf32>
      %644 = arith.addf %636, %643 : vector<16x16xf32>
      %645 = vector.extract_strided_slice %608 {offsets = [4, 0], sizes = [16, 16], strides = [1, 1]} : vector<22x16xf32> to vector<16x16xf32>
      %646 = vector.broadcast %228 : f32 to vector<16x16xf32>
      %647 = arith.mulf %646, %645 : vector<16x16xf32>
      %648 = arith.addf %640, %647 : vector<16x16xf32>
      %649 = vector.extract_strided_slice %606 {offsets = [5, 0], sizes = [16, 16], strides = [1, 1]} : vector<22x16xf32> to vector<16x16xf32>
      %650 = vector.broadcast %186 : f32 to vector<16x16xf32>
      %651 = arith.mulf %650, %649 : vector<16x16xf32>
      %652 = arith.addf %644, %651 : vector<16x16xf32>
      %653 = vector.extract_strided_slice %608 {offsets = [5, 0], sizes = [16, 16], strides = [1, 1]} : vector<22x16xf32> to vector<16x16xf32>
      %654 = vector.broadcast %235 : f32 to vector<16x16xf32>
      %655 = arith.mulf %654, %653 : vector<16x16xf32>
      %656 = arith.addf %648, %655 : vector<16x16xf32>
      %657 = vector.extract_strided_slice %606 {offsets = [6, 0], sizes = [16, 16], strides = [1, 1]} : vector<22x16xf32> to vector<16x16xf32>
      %658 = vector.broadcast %193 : f32 to vector<16x16xf32>
      %659 = arith.mulf %658, %657 : vector<16x16xf32>
      %660 = arith.addf %652, %659 : vector<16x16xf32>
      %661 = vector.extract_strided_slice %608 {offsets = [6, 0], sizes = [16, 16], strides = [1, 1]} : vector<22x16xf32> to vector<16x16xf32>
      %662 = vector.broadcast %242 : f32 to vector<16x16xf32>
      %663 = arith.mulf %662, %661 : vector<16x16xf32>
      %664 = arith.addf %656, %663 : vector<16x16xf32>
      %665 = arith.addf %660, %664 : vector<16x16xf32>
      %666 = arith.negf %665 : vector<16x16xf32>
      %667 = math.exp %666 : vector<16x16xf32>
      %cst_208 = arith.constant 1.000000e+00 : f32
      %668 = vector.broadcast %cst_208 : f32 to vector<16x16xf32>
      %669 = arith.addf %668, %667 : vector<16x16xf32>
      %670 = arith.divf %668, %669 : vector<16x16xf32>
      %c0_209 = arith.constant 0 : index
      %c0_210 = arith.constant 0 : index
      %c0_211 = arith.constant 0 : index
      %671 = vector.load %arg4[%c0_209, %c0_210, %c0_211] : memref<1x16x16xf32, #tpu.memory_space<vmem>>, vector<1x16x16xf32>
      %672 = vector.shape_cast %671 : vector<1x16x16xf32> to vector<16x16xf32>
      %673 = vector.shape_cast %670 : vector<16x16xf32> to vector<1x16x16xf32>
      tpu.vector_store %arg4[%c0_209, %c0_210, %c0_211], %673 {strides = array<i32>} : memref<1x16x16xf32, #tpu.memory_space<vmem>>, vector<1x16x16xf32>,
    } else {
    }
    return
  }
  func.func @transform_0(%arg0: i32, %arg1: i32) -> i32 {
    %c0_i32 = arith.constant 0 : i32
    %c0_i32_0 = arith.constant 0 : i32
    return %c0_i32 : i32
  }
  func.func @transform_1(%arg0: i32, %arg1: i32) -> (i32, i32, i32) {
    %c0_i32 = arith.constant 0 : i32
    %c0_i32_0 = arith.constant 0 : i32
    return %arg0, %arg1, %c0_i32 : i32, i32, i32
  }
  func.func @transform_2(%arg0: i32, %arg1: i32) -> (i32, i32, i32) {
    %c0_i32 = arith.constant 0 : i32
    %c0_i32_0 = arith.constant 0 : i32
    %c0_i32_1 = arith.constant 0 : i32
    return %arg0, %c0_i32, %c0_i32_0 : i32, i32, i32
  }
}

</mosaic_0001>

<bundles_post_ra>
// kernel: spatial_attention.1
= control target key start
LH: loop header
LB: loop body
LE: loop exit
PB: predicated region body
PF: predicated region fallthrough
CT: control target
= control target key end

     0   :  { %s4925_s0 = inlined_call_operand.vmem [shape: f32[98], index: 0, kind: input, shape index: {}]   ;;  %s4926_s1 = inlined_call_operand.vmem [shape: f32[2,64,256], index: 1, kind: input, shape index: {}]   ;;  %s4927_s2 = inlined_call_operand.hbm [shape: f32[2,16,16], index: 2, kind: output, shape index: {}]  }
   0x1   :  { %4940 = sst [smem:[#allocation51_spill]] %s4925_s0 }
   0x2   :  { %4941 = sst [smem:[#allocation52_spill]] %s4926_s1 }
   0x3   :  { %7 = vsyncpa [#allocation6], 0 }
   0x4   :  { %8 = vsyncpa [#allocation5], 0 }
   0x5   :  { %10 = vsyncpa [#allocation5 + $0x1], 0  ;;  %s3102_s9 = smov 0   ;;  %s3104_s10 = smov 0  }
   0x6   :  { %s3106_s11 = smov 0   ;;  %s3108_s12 = smov 0  }
   0x7   :  { %s3110_s13 = smov 0   ;;  %s3112_s14 = smov 0  }
   0x8 LB: > { %s2716_s15 = sadd.s32 4294967295, %s3065_s14   ;;  %s2717_s16 = sadd.s32 4294967294, %s3065_s14   ;;  %s3065_s14 = sphi %s3112_s14, %s16_s14   ;;  %s3061_s13 = sphi %s3110_s13, %s5093_s13   ;;  %s3057_s12 = sphi %s3108_s12, %s5092_s12   ;;  %s3053_s11 = sphi %s3106_s11, %s5091_s11   ;;  %s3049_s10 = sphi %s3104_s10, %s5090_s10   ;;  %s3045_s9 = sphi %s3102_s9, %s5089_s9  }
   0x9   : > { %s28_s17 = sadd.s32 1, %s3061_s13  ;;  %s84_s18 = sadd.s32 1, %s3053_s11 }
   0xa   : > { %p30_p0 = scmp.ge.s32.totalorder %s28_s17, 2  ;;  %p94_p1 = scmp.ne.s32.totalorder %s3053_s11, %s3049_s10 }
   0xb   : > { %p95_p2 = scmp.eq.s32.totalorder %s2716_s15, 1  ;;  %p100_p3 = scmp.ne.s32.totalorder %s3049_s10, %s3045_s9 }
   0xc   : > { %s5095_s17 = smov (%p30_p0, %s28_s17), 0  ;;  %p101_p5 = scmp.eq.s32.totalorder %s2717_s16, 1 }
   0xd   : > { %4942 = sst [smem:[#allocation10_spill]] %s5095_s17  ;;  %p3142_p4 = por %p95_p2, %p94_p1 }
   0xe   : > { %s81_s20 = ssub.s32 %s3061_s13, %s5095_s17  ;;  %p2718_p6 = scmp.ge.s32.totalorder %s3065_s14, 1 }
   0xf   : > { %p82_p7 = scmp.eq.s32.totalorder %s81_s20, 0  ;;  %p3149_p8 = por %p101_p5, %p100_p3 }
  0x10   : > { %p108_p9 = scmp.lt.s32.totalorder %s3065_s14, 3  ;;  %p3161_p11 = scmp.eq.s32.totalorder %s2716_s15, 0 }
  0x11   : > { %s3155_s22 = scalar_select %p82_p7, %s3053_s11, %s84_s18  }
  0x12   : > { %p3157_p10 = pnand %p2718_p6, %p108_p9  ;;  %s4947_s0 = sld [smem:[#allocation51_spill]] }
  0x14   : > { %p2870_p12 = pneg %p3157_p10 }
  0x16   : > { %p2871_p13 = pnand %p3161_p11, %p2870_p12 }
  0x18   : > { %s121_s27 = sshll.u32 %s4947_s0, 4  ;;  %p2970_p1 = pneg %p2871_p13  ;;  %s122_s27 = int_to_ptr.vmem [resolvable:$true] %s121_s27 }
  0x19   : > { %s2968_s28 = scalar_lea.vmem %s122_s27, 16  ;;  %p2976_p5 = scmp.lt.s32.totalorder %s122_s27, %s122_s27 }
  0x1a   : > { %p2969_p0 = scmp.ne.s32.totalorder %s122_s27, %s2968_s28  ;;  %p2977_p6 = scmp.lt.s32.totalorder %s2968_s28, %s2968_s28 }
  0x1c   : > { %p2971_p2 = pnand %p2970_p1, %p2969_p0  ;;  %p2978_p7 = por %p2977_p6, %p2976_p5 }
  0x1e   : > { %p2972_p3 = pneg %p2971_p2 }
  0x20   : > { %p2979_p9 = pnand %p2978_p7, %p2972_p3 }
  0x22   : > { %2982 = shalt.err (!%p2979_p9)
}
  0x23   : > { %s3067_s29 = smov [#allocation4]   ;;  %148 = sbr.rel (%p3157_p10) target bundleno = 766 (0x2fe), region = 28 }
  0x24   : > { %2873 = dma.vmem_to_smem (!%p2871_p13), %s122_s27, 16, %s3067_s29, [#allocation6]  }
  0x2a   : > { %3036 = dma.done.wait (%p3161_p11), [#allocation6], 16  }
  0x2b   : > { %3038 = vsyncadd (%p3161_p11), [#allocation6], 4294967280 }
  0x2c   : > { %154 = sfence }
  0x2d   : > { %p177_p12 = scmp.lt.s32.totalorder %s3057_s12, 1  ;;  %vm356_vm0 = vcmask 179200   ;;  %v3068_v0 = vmov 0.0   ;;  %s4948_s1 = sld [smem:[#allocation52_spill]]  ;;  %v265_v44 = vlaneseq  ;;  %v3069_v48 = vmov 1966171168  }
  0x2e   : > { %361 = vst.msk [vmem:[#allocation3 + $0x18] sm:$0xff] %vm356_vm0, %v3068_v0  ;;  %357 = vst.msk [vmem:[#allocation3] sm:$0xff] %vm356_vm0, %v3068_v0  ;;  %v263_v49 = vunpack.c.l.s4 %v3069_v48  ;;  %s3070_s7 = smov 115   ;;  %s3071_s8 = smov 3   ;;  %vm359_vm2 = vcmask 177152   ;;  %vm373_vm3 = vcmask 147480  }
  0x2f   : > { %358 = vst.msk [vmem:[#allocation3 + $0x8] sm:$0xff] %vm356_vm0, %v3068_v0  ;;  %362 = vst.msk [vmem:[#allocation3 + $0x20] sm:$0xff] %vm356_vm0, %v3068_v0  ;;  %s178_s30 = scalar_select %p177_p12, %s3057_s12, 1  ;;  %v266_v55 = vshrl.u32 %v265_v44, 7  ;;  %vm279_vm1 = vcmp.lt.s32.totalorder %v265_v44, 256  ;;  %vm807_vm4 = vcmask 1046528  }
  0x30   : > { %v264_v59 = vunpack.c.0.s8 %v263_v49  ;;  %s3072_s15 = smov 99   ;;  %s3073_s16 = smov 83   ;;  %363 = vst.msk [vmem:[#allocation3 + $0x28] sm:$0x3f] %vm359_vm2, %v3068_v0  ;;  %360 = vst.msk [vmem:[#allocation3 + $0x10] sm:$0x3f] %vm359_vm2, %v3068_v0 }
  0x31   : > { %s2862_s3 = sshll.u32 %s178_s30, 7  ;;  %s3074_s18 = smov 67   ;;  %vm840_vm5 = vcmask 1045504   ;;  %vm873_vm6 = vcmask 1044480   ;;  %vm906_vm7 = vcmask 1043456   ;;  %vm939_vm8 = vcmask 1042432  }
  0x32   : > { %s3075_s20 = smov 51   ;;  %s3076_s23 = smov 35   ;;  %vm972_vm9 = vcmask 1041408   ;;  %vm2608_vm10 = vcmask 130048  }
  0x33   : > { %s185_s6 = scalar_lea.vmem %s4948_s1, %s2862_s3  ;;  %s3077_s24 = smov 19  }
  0x34   : > { %v187_v1 = vld [vmem:[%s185_s6] sm:$0xff]  ;;  %v188_v2 = vld [vmem:[%s185_s6 + $0x8] sm:$0xff]  ;;  %v189_v3 = vld [vmem:[%s185_s6 + $0x10] sm:$0xff]  ;;  %s3203_s25 = sld [smem:[#allocation4 + $0x32]]  ;;  %s3207_s26 = sld [smem:[#allocation4 + $0x33]] }
  0x35   : > { %v190_v4 = vld [vmem:[%s185_s6 + $0x18] sm:$0xff]  ;;  %v191_v5 = vld [vmem:[%s185_s6 + $0x20] sm:$0xff]  ;;  %v192_v6 = vld [vmem:[%s185_s6 + $0x28] sm:$0xff]  ;;  %v203_v7 = vadd.f32 %v189_v3, %v187_v1  ;;  %s3078_s27 = smov 127   ;;  %s3079_s28 = smov 126  }
  0x36   : > { %v193_v8 = vld [vmem:[%s185_s6 + $0x30] sm:$0xff]  ;;  %v194_v9 = vld [vmem:[%s185_s6 + $0x38] sm:$0xff]  ;;  %v195_v10 = vld [vmem:[%s185_s6 + $0x40] sm:$0xff]  ;;  %v216_v11 = vadd.f32 %v190_v4, %v188_v2  ;;  %v229_v12 = vmax.f32 %v187_v1, %v191_v5  ;;  %v242_v13 = vmax.f32 %v188_v2, %v192_v6  ;;  %s2814_s29 = sld [smem:[#allocation4 + $0x39]]  ;;  %s2821_s30 = sld [smem:[#allocation4 + $0x40]] }
  0x37   : > { %v196_v14 = vld [vmem:[%s185_s6 + $0x48] sm:$0xff]  ;;  %v197_v15 = vld [vmem:[%s185_s6 + $0x50] sm:$0xff]  ;;  %v198_v16 = vld [vmem:[%s185_s6 + $0x58] sm:$0xff]  ;;  %v230_v17 = vmax.f32 %v189_v3, %v193_v8  ;;  %v243_v18 = vmax.f32 %v190_v4, %v194_v9  ;;  %v204_v19 = vadd.f32 %v203_v7, %v191_v5  ;;  %v267_v5 = vsub.s32 %v264_v59, %v266_v55  ;;  %s2828_s3 = sld [smem:[#allocation4 + $0x47]]  ;;  %s2835_s4 = sld [smem:[#allocation4 + $0x4e]] }
  0x38   : > { %v199_v20 = vld [vmem:[%s185_s6 + $0x60] sm:$0xff]  ;;  %v200_v21 = vld [vmem:[%s185_s6 + $0x68] sm:$0xff]  ;;  %v201_v22 = vld [vmem:[%s185_s6 + $0x70] sm:$0xff]  ;;  %v217_v23 = vadd.f32 %v216_v11, %v192_v6  ;;  %v231_v24 = vmax.f32 %v229_v12, %v195_v10  ;;  %v244_v25 = vmax.f32 %v242_v13, %v196_v14  ;;  %s2842_s5 = sld [smem:[#allocation4 + $0x55]]  ;;  %s3685_s0 = sld [smem:[#allocation4 + $0xb]] }
  0x39   : > { %v202_v26 = vld [vmem:[%s185_s6 + $0x78] sm:$0xff]  ;;  %v232_v27 = vmax.f32 %v230_v17, %v197_v15  ;;  %v245_v28 = vmax.f32 %v243_v18, %v198_v16  ;;  %v205_v29 = vadd.f32 %v204_v19, %v193_v8  ;;  %s2849_s6 = sld [smem:[#allocation4 + $0x5c]]  ;;  %s3705_s1 = sld [smem:[#allocation4 + $0x58]] }
  0x3a   : > { %v218_v30 = vadd.f32 %v217_v23, %v194_v9  ;;  %v233_v31 = vmax.f32 %v231_v24, %v199_v20  ;;  %v246_v32 = vmax.f32 %v244_v25, %v200_v21  ;;  %s3707_s17 = sld [smem:[#allocation4 + $0x5f]] }
  0x3b   : > { %v234_v33 = vmax.f32 %v232_v27, %v201_v22  ;;  %v247_v34 = vmax.f32 %v245_v28, %v202_v26  ;;  %v206_v35 = vadd.f32 %v205_v29, %v195_v10 }
  0x3c   : > { %v219_v36 = vadd.f32 %v218_v30, %v196_v14 }
  0x3d   : > { %v235_v37 = vmax.f32 %v233_v31, %v234_v33  ;;  %v248_v38 = vmax.f32 %v246_v32, %v247_v34  ;;  %v207_v39 = vadd.f32 %v206_v35, %v197_v15  ;;  %v1011_v31 = vstv %s3203_s25  ;;  %s2765_s25 = sld [smem:[#allocation4 + $0x8]] }
  0x3e   : > { %v220_v40 = vadd.f32 %v219_v36, %v198_v16  ;;  %v1277_v36 = vstv %s3207_s26  ;;  %s2772_s26 = sld [smem:[#allocation4 + $0xf]] }
  0x3f   : > { %v236_v41 = vrot.slane %v235_v37, 4  ;;  %v249_v42 = vrot.slane %v248_v38, 4  ;;  %v208_v43 = vadd.f32 %v207_v39, %v199_v20 }
  0x40   : > { %v221_v45 = vadd.f32 %v220_v40, %v200_v21 }
  0x41   : > { %v237_v46 = vmax.f32 %v235_v37, %v236_v41  ;;  %v250_v47 = vmax.f32 %v248_v38, %v249_v42  ;;  %v209_v50 = vadd.f32 %v208_v43, %v201_v22 }
  0x42   : > { %v222_v51 = vadd.f32 %v221_v45, %v202_v26 }
  0x43   : > { %v238_v52 = vrot.slane %v237_v46, 2  ;;  %v251_v53 = vrot.slane %v250_v47, 2  ;;  %v210_v54 = vrot.slane %v209_v50, 4 }
  0x44   : > { %v223_v56 = vrot.slane %v222_v51, 4 }
  0x45   : > { %v239_v57 = vmax.f32 %v237_v46, %v238_v52  ;;  %v252_v58 = vmax.f32 %v250_v47, %v251_v53  ;;  %v211_v60 = vadd.f32 %v210_v54, %v209_v50  ;;  %v1044_v53 = vstv %s2814_s29  ;;  %s2779_s29 = sld [smem:[#allocation4 + $0x16]] }
  0x46   : > { %v224_v61 = vadd.f32 %v223_v56, %v222_v51 }
  0x47   : > { %v240_v62 = vrot.slane %v239_v57, 1  ;;  %v253_v63 = vrot.slane %v252_v58, 1  ;;  %v212_v1 = vrot.slane %v211_v60, 2 }
  0x48   : > { %v225_v2 = vrot.slane %v224_v61, 2 }
  0x49   : > { %v241_v3 = vmax.f32 %v239_v57, %v240_v62  ;;  %v254_v4 = vmax.f32 %v252_v58, %v253_v63  ;;  %v213_v6 = vadd.f32 %v212_v1, %v211_v60  ;;  %v1084_v58 = vstv %s2821_s30  ;;  %s2786_s30 = sld [smem:[#allocation4 + $0x1d]] }
  0x4a   : > { %v226_v7 = vadd.f32 %v225_v2, %v224_v61 }
  0x4b   : > { %v284_v8 = vcombine.low %v241_v3, %v254_v4  ;;  %v214_v9 = vrot.slane %v213_v6, 1  ;;  %v1124_v4 = vstv %s2828_s3  ;;  %s2793_s3 = sld [smem:[#allocation4 + $0x24]] }
  0x4c   : > { %v227_v10 = vrot.slane %v226_v7, 1 }
  0x4d   : > { %v291_v11 = vrot.slane %v284_v8, %v267_v5  ;;  %v215_v12 = vadd.f32 %v214_v9, %v213_v6 }
  0x4e   : > { %v228_v13 = vadd.f32 %v227_v10, %v226_v7 }
  0x4f   : > { %v298_v14 = vrot.slane %v291_v11, %v267_v5 }
  0x50   : > { %v261_v15 = vcombine.low %v215_v12, %v228_v13  ;;  %v1164_v12 = vstv %s2835_s4  ;;  %s2800_s4 = sld [smem:[#allocation4 + $0x2b]] }
  0x51   : > { %301 = vst.msk [vmem:[#allocation2 + $0x1] ss:$2 sm:$0x3] %vm279_vm1, %v298_v14 }
  0x52   : > { %v268_v16 = vrot.slane %v261_v15, %v267_v5 }
  0x54   : > { %v275_v17 = vrot.slane %v268_v16, %v267_v5 }
  0x56   : > { %281 = vst.msk [vmem:[#allocation2] ss:$2 sm:$0x3] %vm279_vm1, %v275_v17 }
  0x58   : > { %v2729_v18 = vld [vmem:[#allocation2 + $0x1] ss:$0 sm:$0xff]  ;;  %v2743_v20 = vld [vmem:[#allocation2 + $0x3] ss:$0 sm:$0xff] }
  0x59   : > { %402 = vrot.lane.b32.xlu1 %v2729_v18, %s3070_s7  ;;  %381 = vrot.lane.b32.xlu0 %v2729_v18, %s3071_s8 }
  0x5d   : > { %422 = vrot.lane.b32.xlu1 %v2729_v18, %s3072_s15  ;;  %v2726_v19 = vld [vmem:[#allocation2] ss:$0 sm:$0xff]  ;;  %v2742_v21 = vld [vmem:[#allocation2 + $0x2] ss:$0 sm:$0xff] }
  0x5e   : > { %370 = vrot.lane.b32.xlu0 %v2726_v19, %s3071_s8 }
  0x61   : > { %442 = vrot.lane.b32.xlu1 %v2729_v18, %s3073_s16 }
  0x62   : > { %412 = vrot.lane.b32.xlu0 %v2726_v19, %s3072_s15 }
  0x65   : > { %462 = vrot.lane.b32.xlu1 %v2729_v18, %s3074_s18 }
  0x66   : > { %432 = vrot.lane.b32.xlu0 %v2726_v19, %s3073_s16 }
  0x69   : > { %482 = vrot.lane.b32.xlu1 %v2729_v18, %s3075_s20 }
  0x6a   : > { %452 = vrot.lane.b32.xlu0 %v2726_v19, %s3074_s18 }
  0x6d   : > { %502 = vrot.lane.b32.xlu1 %v2729_v18, %s3076_s23 }
  0x6e   : > { %472 = vrot.lane.b32.xlu0 %v2726_v19, %s3075_s20 }
  0x71   : > { %522 = vrot.lane.b32.xlu1 %v2729_v18, %s3077_s24  ;;  %v1204_v18 = vstv %s2842_s5  ;;  %s2766_s5 = sld [smem:[#allocation4 + $0x9]] }
  0x72   : > { %492 = vrot.lane.b32.xlu0 %v2726_v19, %s3076_s23 }
  0x75   : > { %542 = vrot.lane.b32.xlu1 %v2743_v20, %s3071_s8 }
  0x76   : > { %512 = vrot.lane.b32.xlu0 %v2726_v19, %s3077_s24 }
  0x79   : > { %562 = vrot.lane.b32.xlu1 %v2743_v20, %s3070_s7 }
  0x7a   : > { %532 = vrot.lane.b32.xlu0 %v2742_v21, %s3071_s8  ;;  %s2822_s8 = sld [smem:[#allocation4 + $0x41]] }
  0x7d   : > { %582 = vrot.lane.b32.xlu1 %v2743_v20, %s3072_s15 }
  0x7e   : > { %552 = vrot.lane.b32.xlu0 %v2742_v21, %s3070_s7 }
  0x81   : > { %602 = vrot.lane.b32.xlu1 %v2743_v20, %s3073_s16 }
  0x82   : > { %572 = vrot.lane.b32.xlu0 %v2742_v21, %s3072_s15  ;;  %s2829_s15 = sld [smem:[#allocation4 + $0x48]] }
  0x85   : > { %392 = vrot.lane.b32.xlu1 %v2726_v19, %s3070_s7  ;;  %s2815_s7 = sld [smem:[#allocation4 + $0x3a]] }
  0x86   : > { %592 = vrot.lane.b32.xlu0 %v2742_v21, %s3073_s16  ;;  %s2836_s16 = sld [smem:[#allocation4 + $0x4f]] }
  0x89   : > { %622 = vrot.lane.b32.xlu1 %v2743_v20, %s3074_s18 }
  0x8a   : > { %612 = vrot.lane.b32.xlu0 %v2742_v21, %s3074_s18  ;;  %s2843_s18 = sld [smem:[#allocation4 + $0x56]] }
  0x8d   : > { %642 = vrot.lane.b32.xlu1 %v2743_v20, %s3075_s20 }
  0x8e   : > { %632 = vrot.lane.b32.xlu0 %v2742_v21, %s3075_s20  ;;  %s2850_s20 = sld [smem:[#allocation4 + $0x5d]] }
  0x91   : > { %662 = vrot.lane.b32.xlu1 %v2743_v20, %s3076_s23 }
  0x92   : > { %652 = vrot.lane.b32.xlu0 %v2742_v21, %s3076_s23  ;;  %s3326_s23 = sld [smem:[#allocation4 + $0x1]] }
  0x95   : > { %682 = vrot.lane.b32.xlu1 %v2743_v20, %s3077_s24 }
  0x96   : > { %672 = vrot.lane.b32.xlu0 %v2742_v21, %s3077_s24  ;;  %s3334_s24 = sld [smem:[#allocation4 + $0x2]] }
  0xcb   : > { %v403_v22 = vpop.permute.xlu1 %402  ;;  %v382_v23 = vpop.permute.xlu0 %381 }
  0xcc   : > { %405 = vst.msk [vmem:[#allocation3 + $0x1c] sm:$0x1] %vm373_vm3, %v403_v22  ;;  %385 = vst.msk [vmem:[#allocation3 + $0x1b] sm:$0x1] %vm373_vm3, %v382_v23 }
  0xcf   : > { %v423_v0 = vpop.permute.xlu1 %422 }
  0xd0   : > { %425 = vst.msk [vmem:[#allocation3 + $0x1d] sm:$0x1] %vm373_vm3, %v423_v0  ;;  %v371_v24 = vpop.permute.xlu0 %370 }
  0xd1   : > { %374 = vst.msk [vmem:[#allocation3 + $0x3] sm:$0x1] %vm373_vm3, %v371_v24 }
  0xd3   : > { %v443_v25 = vpop.permute.xlu1 %442 }
  0xd4   : > { %445 = vst.msk [vmem:[#allocation3 + $0x1e] sm:$0x1] %vm373_vm3, %v443_v25  ;;  %v413_v26 = vpop.permute.xlu0 %412 }
  0xd5   : > { %415 = vst.msk [vmem:[#allocation3 + $0x5] sm:$0x1] %vm373_vm3, %v413_v26 }
  0xd7   : > { %v463_v27 = vpop.permute.xlu1 %462 }
  0xd8   : > { %465 = vst.msk [vmem:[#allocation3 + $0x1f] sm:$0x1] %vm373_vm3, %v463_v27  ;;  %v433_v28 = vpop.permute.xlu0 %432  ;;  %v1244_v27 = vstv %s2849_s6  ;;  %s2773_s6 = sld [smem:[#allocation4 + $0x10]] }
  0xd9   : > { %435 = vst.msk [vmem:[#allocation3 + $0x6] sm:$0x1] %vm373_vm3, %v433_v28 }
  0xdb   : > { %v483_v29 = vpop.permute.xlu1 %482 }
  0xdc   : > { %485 = vst.msk [vmem:[#allocation3 + $0x20] sm:$0x1] %vm373_vm3, %v483_v29  ;;  %v453_v30 = vpop.permute.xlu0 %452 }
  0xdd   : > { %455 = vst.msk [vmem:[#allocation3 + $0x7] sm:$0x1] %vm373_vm3, %v453_v30 }
  0xdf   : > { %v3212_v32 = vld [vmem:[#allocation3 + $0x18] sm:$0xff]  ;;  %v503_v33 = vpop.permute.xlu1 %502 }
  0xe0   : > { %505 = vst.msk [vmem:[#allocation3 + $0x21] sm:$0x1] %vm373_vm3, %v503_v33  ;;  %v473_v34 = vpop.permute.xlu0 %472  ;;  %v1012_v35 = vmul.f32 %v1011_v31, %v3212_v32  ;;  %v1278_v39 = vmul.f32 %v1277_v36, %v3212_v32  ;;  %v1045_v55 = vmul.f32 %v1044_v53, %v3212_v32  ;;  %v1085_v2 = vmul.f32 %v1084_v58, %v3212_v32 }
  0xe1   : > { %475 = vst.msk [vmem:[#allocation3 + $0x8] sm:$0x1] %vm373_vm3, %v473_v34  ;;  %v1125_v11 = vmul.f32 %v1124_v4, %v3212_v32  ;;  %v1165_v17 = vmul.f32 %v1164_v12, %v3212_v32  ;;  %v1205_v26 = vmul.f32 %v1204_v18, %v3212_v32 }
  0xe2   : > { %1016 = vrot.lane.b32.xlu0 %v1012_v35, %s3078_s27  ;;  %v1051_v63 = vrot.slane %v1045_v55, 1  ;;  %v1091_v10 = vrot.slane %v1085_v2, 2  ;;  %v1430_v2 = vstv %s2836_s16  ;;  %s2801_s16 = sld [smem:[#allocation4 + $0x2c]] }
  0xe3   : > { %v523_v37 = vpop.permute.xlu1 %522  ;;  %v1131_v16 = vrot.slane %v1125_v11, 3  ;;  %v1171_v25 = vrot.slane %v1165_v17, 4  ;;  %v1211_v35 = vrot.slane %v1205_v26, 5  ;;  %v1470_v11 = vstv %s2843_s18  ;;  %s3434_s18 = sld [smem:[#allocation4 + $0x3]] }
  0xe4   : > { %525 = vst.msk [vmem:[#allocation3 + $0x22] sm:$0x1] %vm373_vm3, %v523_v37  ;;  %v493_v38 = vpop.permute.xlu0 %492  ;;  %v1310_v37 = vstv %s2815_s7  ;;  %s2780_s7 = sld [smem:[#allocation4 + $0x17]] }
  0xe5   : > { %495 = vst.msk [vmem:[#allocation3 + $0x9] sm:$0x1] %vm373_vm3, %v493_v38 }
  0xe6   : > { %1282 = vrot.lane.b32.xlu0 %v1278_v39, %s3079_s28 }
  0xe7   : > { %v543_v40 = vpop.permute.xlu1 %542 }
  0xe8   : > { %545 = vst.msk [vmem:[#allocation3 + $0x23] sm:$0x1] %vm373_vm3, %v543_v40  ;;  %v513_v41 = vpop.permute.xlu0 %512 }
  0xe9   : > { %515 = vst.msk [vmem:[#allocation3 + $0xa] sm:$0x1] %vm373_vm3, %v513_v41 }
  0xeb   : > { %v563_v42 = vpop.permute.xlu1 %562 }
  0xec   : > { %565 = vst.msk [vmem:[#allocation3 + $0x24] sm:$0x1] %vm373_vm3, %v563_v42  ;;  %v533_v43 = vpop.permute.xlu0 %532 }
  0xed   : > { %535 = vst.msk [vmem:[#allocation3 + $0xb] sm:$0x1] %vm373_vm3, %v533_v43 }
  0xef   : > { %v583_v44 = vpop.permute.xlu1 %582 }
  0xf0   : > { %585 = vst.msk [vmem:[#allocation3 + $0x25] sm:$0x1] %vm373_vm3, %v583_v44  ;;  %v553_v45 = vpop.permute.xlu0 %552  ;;  %v1311_v44 = vmul.f32 %v1310_v37, %v3212_v32 }
  0xf1   : > { %555 = vst.msk [vmem:[#allocation3 + $0xc] sm:$0x1] %vm373_vm3, %v553_v45 }
  0xf3   : > { %v603_v46 = vpop.permute.xlu1 %602 }
  0xf4   : > { %605 = vst.msk [vmem:[#allocation3 + $0x26] sm:$0x1] %vm373_vm3, %v603_v46  ;;  %v573_v47 = vpop.permute.xlu0 %572  ;;  %v1350_v46 = vstv %s2822_s8  ;;  %s2787_s8 = sld [smem:[#allocation4 + $0x1e]] }
  0xf5   : > { %575 = vst.msk [vmem:[#allocation3 + $0xd] sm:$0x1] %vm373_vm3, %v573_v47 }
  0xf7   : > { %v393_v48 = vpop.permute.xlu1 %392 }
  0xf8   : > { %395 = vst.msk [vmem:[#allocation3 + $0x4] sm:$0x1] %vm373_vm3, %v393_v48  ;;  %v593_v49 = vpop.permute.xlu0 %592 }
  0xf9   : > { %595 = vst.msk [vmem:[#allocation3 + $0xe] sm:$0x1] %vm373_vm3, %v593_v49 }
  0xfb   : > { %v623_v50 = vpop.permute.xlu1 %622 }
  0xfc   : > { %625 = vst.msk [vmem:[#allocation3 + $0x27] sm:$0x1] %vm373_vm3, %v623_v50  ;;  %v613_v51 = vpop.permute.xlu0 %612 }
  0xfd   : > { %615 = vst.msk [vmem:[#allocation3 + $0xf] sm:$0x1] %vm373_vm3, %v613_v51 }
  0xff   : > { %v643_v52 = vpop.permute.xlu1 %642 }
 0x100   : > { %645 = vst.msk [vmem:[#allocation3 + $0x28] sm:$0x1] %vm373_vm3, %v643_v52  ;;  %v633_v54 = vpop.permute.xlu0 %632 }
 0x101   : > { %635 = vst.msk [vmem:[#allocation3 + $0x10] sm:$0x1] %vm373_vm3, %v633_v54  ;;  %v1351_v54 = vmul.f32 %v1350_v46, %v3212_v32 }
 0x103   : > { %v3240_v56 = vld [vmem:[#allocation3 + $0x20] sm:$0xff]  ;;  %v663_v57 = vpop.permute.xlu1 %662 }
 0x104   : > { %665 = vst.msk [vmem:[#allocation3 + $0x29] sm:$0x1] %vm373_vm3, %v663_v57  ;;  %v1013_v59 = vmul.f32 %v1011_v31, %v3240_v56  ;;  %v1046_v60 = vmul.f32 %v1044_v53, %v3240_v56  ;;  %v653_v61 = vpop.permute.xlu0 %652  ;;  %v3246_v62 = vmul.f32 %v1084_v58, %v3240_v56  ;;  %v1279_v6 = vmul.f32 %v1277_v36, %v3240_v56 }
 0x105   : > { %655 = vst.msk [vmem:[#allocation3 + $0x11] sm:$0x1] %vm373_vm3, %v653_v61  ;;  %v1126_v9 = vmul.f32 %v1124_v4, %v3240_v56  ;;  %v1166_v15 = vmul.f32 %v1164_v12, %v3240_v56  ;;  %v3269_v20 = vmul.f32 %v1204_v18, %v3240_v56  ;;  %v3278_v29 = vmul.f32 %v1244_v27, %v3240_v56 }
 0x106   : > { %1018 = vrot.lane.b32.xlu1 %v1013_v59, %s3078_s27  ;;  %v1052_v1 = vrot.slane %v1046_v60, 1  ;;  %v1092_v7 = vrot.slane %v3246_v62, 2  ;;  %v1245_v36 = vmul.f32 %v1244_v27, %v3212_v32  ;;  %v3288_v39 = vmul.f32 %v1310_v37, %v3240_v56 }
 0x107   : > { %v683_v3 = vpop.permute.xlu1 %682  ;;  %v1132_v14 = vrot.slane %v1126_v9, 3  ;;  %v1172_v23 = vrot.slane %v1166_v15, 4  ;;  %v1212_v28 = vrot.slane %v3269_v20, 5  ;;  %v1252_v38 = vrot.slane %v3278_v29, 6 }
 0x108   : > { %685 = vst.msk [vmem:[#allocation3 + $0x2a] sm:$0x1] %vm373_vm3, %v683_v3  ;;  %v1053_v5 = vsel %vm807_vm4, %v1051_v63, %v1052_v1  ;;  %v673_v8 = vpop.permute.xlu0 %672  ;;  %v1093_v13 = vsel %vm840_vm5, %v1091_v10, %v1092_v7  ;;  %v1251_v45 = vrot.slane %v1245_v36, 6  ;;  %v1318_v47 = vrot.slane %v3288_v39, 1 }
 0x109   : > { %1056 = vrot.lane.b32.xlu0 %v1053_v5, %s3078_s27  ;;  %675 = vst.msk [vmem:[#allocation3 + $0x12] sm:$0x1] %vm373_vm3, %v673_v8  ;;  %v1133_v21 = vsel %vm873_vm6, %v1131_v16, %v1132_v14  ;;  %v1173_v31 = vsel %vm906_vm7, %v1171_v25, %v1172_v23  ;;  %v1213_v41 = vsel %vm939_vm8, %v1211_v35, %v1212_v28  ;;  %v1357_v63 = vrot.slane %v1351_v54, 2 }
 0x10a   : > { %1284 = vrot.lane.b32.xlu1 %v1279_v6, %s3079_s28  ;;  %v1352_v48 = vmul.f32 %v1350_v46, %v3240_v56  ;;  %v1253_v50 = vsel %vm972_vm9, %v1251_v45, %v1252_v38  ;;  %v1431_v10 = vmul.f32 %v1430_v2, %v3212_v32  ;;  %v1471_v20 = vmul.f32 %v1470_v11, %v3212_v32 }
 0x10b   : > { %v998_v36 = vstv %s3326_s23  ;;  %v1024_v45 = vstv %s2765_s25  ;;  %s2816_s23 = sld [smem:[#allocation4 + $0x3b]]  ;;  %s4928_s25 = smov 125  }
 0x10c   : > { %v1358_v57 = vrot.slane %v1352_v48, 2 }
 0x10d   : > { %1096 = vrot.lane.b32.xlu0 %v1093_v13, %s3078_s27  ;;  %v1472_v13 = vmul.f32 %v1470_v11, %v3240_v56 }
 0x10e   : > { %v1359_v3 = vsel %vm840_vm5, %v1357_v63, %v1358_v57 }
 0x10f   : > { %v3266_v19 = vld [vmem:[#allocation3 + $0x28] sm:$0x3f] }
 0x110   : > { %v1047_v22 = vmul.f32 %v1044_v53, %v3266_v19  ;;  %v1087_v0 = vmul.f32 %v1084_v58, %v3266_v19  ;;  %v1127_v34 = vmul.f32 %v1124_v4, %v3266_v19  ;;  %v1167_v43 = vmul.f32 %v1164_v12, %v3266_v19 }
 0x111   : > { %1136 = vrot.lane.b32.xlu0 %v1133_v21, %s3078_s27  ;;  %v1207_v52 = vmul.f32 %v1204_v18, %v3266_v19  ;;  %v1317_v53 = vrot.slane %v1311_v44, 1  ;;  %v1390_v58 = vstv %s2829_s15  ;;  %v1247_v61 = vmul.f32 %v1244_v27, %v3266_v19  ;;  %s2794_s15 = sld [smem:[#allocation4 + $0x25]] }
 0x112   : > { %v1054_v24 = vrot.slane %v1047_v22, 1  ;;  %v1094_v33 = vrot.slane %v1087_v0, 2  ;;  %v1134_v42 = vrot.slane %v1127_v34, 3  ;;  %v1174_v51 = vrot.slane %v1167_v43, 4 }
 0x113   : > { %v1319_v55 = vsel %vm807_vm4, %v1317_v53, %v1318_v47  ;;  %v1214_v60 = vrot.slane %v1207_v52, 5  ;;  %v1392_v62 = vmul.f32 %v1390_v58, %v3240_v56  ;;  %v1432_v4 = vmul.f32 %v1430_v2, %v3240_v56 }
 0x114   : > { %v1055_v30 = vsel %vm807_vm4, %v1052_v1, %v1054_v24  ;;  %v1095_v40 = vsel %vm840_vm5, %v1092_v7, %v1094_v33  ;;  %v1135_v49 = vsel %vm873_vm6, %v1132_v14, %v1134_v42  ;;  %v1175_v59 = vsel %vm906_vm7, %v1172_v23, %v1174_v51  ;;  %v3347_v42 = vld [vmem:[#allocation3 + $0x8] sm:$0xff] }
 0x115   : > { %1058 = vrot.lane.b32.xlu1 %v1055_v30, %s3078_s27  ;;  %1176 = vrot.lane.b32.xlu0 %v1173_v31, %s3078_s27  ;;  %v1391_v1 = vmul.f32 %v1390_v58, %v3212_v32  ;;  %v1215_v5 = vsel %vm939_vm8, %v1212_v28, %v1214_v60  ;;  %v1254_v6 = vrot.slane %v1247_v61, 6  ;;  %v1398_v7 = vrot.slane %v1392_v62, 3 }
 0x116   : > { %v1313_v8 = vmul.f32 %v1310_v37, %v3266_v19  ;;  %v1438_v12 = vrot.slane %v1432_v4, 4  ;;  %v1353_v17 = vmul.f32 %v1350_v46, %v3266_v19  ;;  %v1437_v18 = vrot.slane %v1431_v10, 4  ;;  %v3342_v37 = vld [vmem:[#allocation3] sm:$0xff]  ;;  %v3371_v4 = vld [vmem:[#allocation3 + $0x10] sm:$0x3f] }
 0x117   : > { %v1397_v9 = vrot.slane %v1391_v1, 3  ;;  %v1255_v14 = vsel %vm972_vm9, %v1252_v38, %v1254_v6  ;;  %v1510_v21 = vstv %s2850_s20  ;;  %v1478_v22 = vrot.slane %v1472_v13, 5  ;;  %s2767_s20 = sld [smem:[#allocation4 + $0xa]] }
 0x118   : > { %v1320_v16 = vrot.slane %v1313_v8, 1  ;;  %v1512_v23 = vmul.f32 %v1510_v21, %v3240_v56  ;;  %v1439_v24 = vsel %vm906_vm7, %v1437_v18, %v1438_v12  ;;  %v1360_v25 = vrot.slane %v1353_v17, 2 }
 0x119   : > { %1098 = vrot.lane.b32.xlu1 %v1095_v40, %s3078_s27  ;;  %1216 = vrot.lane.b32.xlu0 %v1213_v41, %s3078_s27  ;;  %v1399_v15 = vsel %vm873_vm6, %v1397_v9, %v1398_v7  ;;  %v1393_v26 = vmul.f32 %v1390_v58, %v3266_v19  ;;  %v1477_v27 = vrot.slane %v1471_v20, 5  ;;  %v1511_v28 = vmul.f32 %v1510_v21, %v3212_v32 }
 0x11a   : > { %v1321_v0 = vsel %vm807_vm4, %v1318_v47, %v1320_v16  ;;  %v1518_v29 = vrot.slane %v1512_v23, 6  ;;  %v1361_v30 = vsel %vm840_vm5, %v1358_v57, %v1360_v25  ;;  %v1433_v34 = vmul.f32 %v1430_v2, %v3266_v19 }
 0x11b   : > { %v1479_v31 = vsel %vm939_vm8, %v1477_v27, %v1478_v22  ;;  %v1400_v33 = vrot.slane %v1393_v26, 3  ;;  %v1517_v35 = vrot.slane %v1511_v28, 6  ;;  %v1473_v41 = vmul.f32 %v1470_v11, %v3266_v19 }
 0x11c   : > { %v1440_v40 = vrot.slane %v1433_v34, 4  ;;  %v999_v43 = vmul.f32 %v998_v36, %v3342_v37  ;;  %v1264_v44 = vstv %s3334_s24  ;;  %v1513_v48 = vmul.f32 %v1510_v21, %v3266_v19  ;;  %s2774_s24 = sld [smem:[#allocation4 + $0x11]] }
 0x11d   : > { %1138 = vrot.lane.b32.xlu1 %v1135_v49, %s3078_s27  ;;  %1256 = vrot.lane.b32.xlu0 %v1253_v50, %s3078_s27  ;;  %v1401_v38 = vsel %vm873_vm6, %v1398_v7, %v1400_v33  ;;  %v1519_v39 = vsel %vm972_vm9, %v1517_v35, %v1518_v29  ;;  %v1480_v47 = vrot.slane %v1473_v41, 5  ;;  %v1026_v49 = vmul.f32 %v1024_v45, %v3347_v42 }
 0x11e   : > { %v1441_v46 = vsel %vm906_vm7, %v1438_v12, %v1440_v40  ;;  %v1025_v50 = vmul.f32 %v1024_v45, %v3342_v37  ;;  %v1265_v51 = vmul.f32 %v1264_v44, %v3342_v37  ;;  %v1064_v52 = vstv %s2772_s26  ;;  %s2823_s26 = sld [smem:[#allocation4 + $0x42]] }
 0x11f   : > { %v1481_v53 = vsel %vm939_vm8, %v1478_v22, %v1480_v47  ;;  %v1520_v54 = vrot.slane %v1513_v48, 6  ;;  %v1066_v57 = vmul.f32 %v1064_v52, %v3347_v42  ;;  %v1104_v60 = vstv %s2779_s29  ;;  %s2781_s29 = sld [smem:[#allocation4 + $0x18]] }
 0x120   : > { %v1031_v58 = vrot.slane %v1025_v50, 1  ;;  %v1106_v1 = vmul.f32 %v1104_v60, %v3347_v42  ;;  %v1144_v6 = vstv %s2786_s30  ;;  %v1027_v10 = vmul.f32 %v1024_v45, %v3371_v4  ;;  %s2830_s30 = sld [smem:[#allocation4 + $0x49]] }
 0x121   : > { %1178 = vrot.lane.b32.xlu1 %v1175_v59, %s3078_s27  ;;  %1322 = vrot.lane.b32.xlu0 %v1319_v55, %s3079_s28  ;;  %v1032_v55 = vrot.slane %v1026_v49, 1  ;;  %v1065_v59 = vmul.f32 %v1064_v52, %v3342_v37  ;;  %v1521_v61 = vsel %vm972_vm9, %v1518_v29, %v1520_v54  ;;  %v1072_v63 = vrot.slane %v1066_v57, 2 }
 0x122   : > { %v1112_v8 = vrot.slane %v1106_v1, 3  ;;  %v1146_v9 = vmul.f32 %v1144_v6, %v3347_v42  ;;  %v1145_v12 = vmul.f32 %v1144_v6, %v3342_v37  ;;  %v1184_v13 = vstv %s2793_s3  ;;  %s2837_s3 = sld [smem:[#allocation4 + $0x50]] }
 0x123   : > { %v1033_v62 = vsel %vm807_vm4, %v1031_v58, %v1032_v55  ;;  %v1071_v2 = vrot.slane %v1065_v59, 2  ;;  %v1034_v18 = vrot.slane %v1027_v10, 1  ;;  %v1067_v20 = vmul.f32 %v1064_v52, %v3371_v4 }
 0x124   : > { %v1152_v17 = vrot.slane %v1146_v9, 4  ;;  %v1185_v21 = vmul.f32 %v1184_v13, %v3342_v37  ;;  %v1151_v22 = vrot.slane %v1145_v12, 4  ;;  %v1224_v23 = vstv %s2800_s4  ;;  %s2795_s4 = sld [smem:[#allocation4 + $0x26]] }
 0x125   : > { %1218 = vrot.lane.b32.xlu1 %v1215_v5, %s3078_s27  ;;  %1362 = vrot.lane.b32.xlu0 %v1359_v3, %s3079_s28  ;;  %v1105_v3 = vmul.f32 %v1104_v60, %v3342_v37  ;;  %v1000_v5 = vmul.f32 %v998_v36, %v3347_v42  ;;  %v1073_v7 = vsel %vm840_vm5, %v1071_v2, %v1072_v63  ;;  %v1074_v27 = vrot.slane %v1067_v20, 2 }
 0x126   : > { %v1153_v25 = vsel %vm906_vm7, %v1151_v22, %v1152_v17  ;;  %v1035_v26 = vsel %vm807_vm4, %v1032_v55, %v1034_v18  ;;  %v1107_v28 = vmul.f32 %v1104_v60, %v3371_v4  ;;  %v1191_v29 = vrot.slane %v1185_v21, 5 }
 0x127   : > { %v1111_v11 = vrot.slane %v1105_v3, 3  ;;  %v1290_v34 = vstv %s2766_s5  ;;  %v1075_v35 = vsel %vm840_vm5, %v1072_v63, %v1074_v27  ;;  %v1187_v49 = vmul.f32 %v1184_v13, %v3371_v4  ;;  %s2844_s5 = sld [smem:[#allocation4 + $0x57]] }
 0x128   : > { %v1114_v36 = vrot.slane %v1107_v28, 3  ;;  %v1291_v41 = vmul.f32 %v1290_v34, %v3342_v37  ;;  %v1370_v52 = vstv %s2780_s7  ;;  %v1227_v59 = vmul.f32 %v1224_v23, %v3371_v4  ;;  %s3572_s7 = sld [smem:[#allocation4 + $0x5e]] }
 0x129   : > { %1258 = vrot.lane.b32.xlu1 %v1255_v14, %s3078_s27  ;;  %1402 = vrot.lane.b32.xlu0 %v1399_v15, %s3079_s28  ;;  %v1266_v14 = vmul.f32 %v1264_v44, %v3347_v42  ;;  %v3382_v15 = vmul.f32 %v1184_v13, %v3347_v42  ;;  %v1113_v16 = vsel %vm873_vm6, %v1111_v11, %v1112_v8  ;;  %v1194_v58 = vrot.slane %v1187_v49, 5 }
 0x12a   : > { %v1297_v50 = vrot.slane %v1291_v41, 1  ;;  %v1372_v54 = vmul.f32 %v1370_v52, %v3347_v42  ;;  %v1371_v60 = vmul.f32 %v1370_v52, %v3342_v37  ;;  %v1450_v11 = vstv %s2794_s15  ;;  %s3596_s15 = sld [smem:[#allocation4 + $0x38]] }
 0x12b   : > { %v1490_v18 = vstv %s2801_s16  ;;  %s3598_s16 = sld [smem:[#allocation4 + $0x3f]] }
 0x12c   : > { %v1378_v63 = vrot.slane %v1372_v54, 3  ;;  %v1492_v21 = vmul.f32 %v1490_v18, %v3347_v42 }
 0x12d   : > { %1324 = vrot.lane.b32.xlu1 %v1321_v0, %s3079_s28  ;;  %1442 = vrot.lane.b32.xlu0 %v1439_v24, %s3079_s28  ;;  %v1192_v0 = vrot.slane %v3382_v15, 5  ;;  %v1226_v24 = vmul.f32 %v1224_v23, %v3347_v42 }
 0x12e   : > { %v1498_v27 = vrot.slane %v1492_v21, 6 }
 0x12f   : > { %v1232_v33 = vrot.slane %v1226_v24, 6  ;;  %v1195_v3 = vsel %vm939_vm8, %v1192_v0, %v1194_v58  ;;  %v1373_v24 = vmul.f32 %v1370_v52, %v3371_v4 }
 0x131   : > { %1364 = vrot.lane.b32.xlu1 %v1361_v30, %s3079_s28  ;;  %1482 = vrot.lane.b32.xlu0 %v1479_v31, %s3079_s28  ;;  %v1225_v30 = vmul.f32 %v1224_v23, %v3342_v37  ;;  %v1193_v31 = vsel %vm939_vm8, %v1191_v29, %v1192_v0 }
 0x133   : > { %v1231_v40 = vrot.slane %v1225_v30, 6  ;;  %v1380_v30 = vrot.slane %v1373_v24, 3 }
 0x135   : > { %1404 = vrot.lane.b32.xlu1 %v1401_v38, %s3079_s28  ;;  %1522 = vrot.lane.b32.xlu0 %v1519_v39, %s3079_s28  ;;  %v1292_v38 = vmul.f32 %v1290_v34, %v3347_v42  ;;  %v1147_v39 = vmul.f32 %v1144_v6, %v3371_v4  ;;  %v1233_v44 = vsel %vm972_vm9, %v1231_v40, %v1232_v33 }
 0x136   : > { %v1293_v6 = vmul.f32 %v1290_v34, %v3371_v4  ;;  %v1530_v34 = vstv %s3434_s18  ;;  %s3609_s18 = sld [smem:[#allocation4 + $0x46]] }
 0x137   : > { %v1298_v47 = vrot.slane %v1292_v38, 1  ;;  %v1154_v48 = vrot.slane %v1147_v39, 4  ;;  %v1453_v39 = vmul.f32 %v1450_v11, %v3371_v4  ;;  %v1531_v40 = vmul.f32 %v1530_v34, %v3342_v37 }
 0x138   : > { %v1300_v13 = vrot.slane %v1293_v6, 1 }
 0x139   : > { %1444 = vrot.lane.b32.xlu1 %v1441_v46, %s3079_s28  ;;  %1003 = vrot.lane.b32.xlu0 %v999_v43, %s3078_s27  ;;  %v1330_v43 = vstv %s2773_s6  ;;  %v1115_v46 = vsel %vm873_vm6, %v1112_v8, %v1114_v36  ;;  %v1299_v55 = vsel %vm807_vm4, %v1297_v50, %v1298_v47  ;;  %v1155_v57 = vsel %vm906_vm7, %v1152_v17, %v1154_v48  ;;  %s2802_s6 = sld [smem:[#allocation4 + $0x2d]] }
 0x13a   : > { %v1332_v45 = vmul.f32 %v1330_v43, %v3347_v42  ;;  %v1333_v15 = vmul.f32 %v1330_v43, %v3371_v4  ;;  %v1451_v17 = vmul.f32 %v1450_v11, %v3342_v37  ;;  %v1301_v22 = vsel %vm807_vm4, %v1298_v47, %v1300_v13 }
 0x13b   : > { %v1381_v36 = vsel %vm873_vm6, %v1378_v63, %v1380_v30  ;;  %v1493_v47 = vmul.f32 %v1490_v18, %v3371_v4 }
 0x13c   : > { %v1340_v0 = vrot.slane %v1333_v15, 2  ;;  %v1636_v15 = vstv %s2781_s29  ;;  %s3644_s29 = sld [smem:[#allocation4 + $0x4]] }
 0x13d   : > { %1484 = vrot.lane.b32.xlu1 %v1481_v53, %s3079_s28  ;;  %1269 = vrot.lane.b32.xlu0 %v1265_v51, %s3079_s28  ;;  %v1331_v51 = vmul.f32 %v1330_v43, %v3342_v37  ;;  %v1338_v53 = vrot.slane %v1332_v45, 2  ;;  %v1556_v43 = vstv %s2767_s20  ;;  %v1460_v45 = vrot.slane %v1453_v39, 5  ;;  %s3618_s20 = sld [smem:[#allocation4 + $0x54]] }
 0x13e   : > { %v1557_v49 = vmul.f32 %v1556_v43, %v3342_v37  ;;  %v1500_v54 = vrot.slane %v1493_v47, 6  ;;  %v1637_v24 = vmul.f32 %v1636_v15, %v3342_v37 }
 0x13f   : > { %v1341_v29 = vsel %vm840_vm5, %v1338_v53, %v1340_v0 }
 0x141   : > { %1524 = vrot.lane.b32.xlu1 %v1521_v61, %s3079_s28  ;;  %1036 = vrot.lane.b32.xlu0 %v1033_v62, %s3078_s27  ;;  %v1337_v61 = vrot.slane %v1331_v51, 2  ;;  %v1410_v62 = vstv %s2787_s8  ;;  %v1576_v51 = vstv %s2816_s23  ;;  %s3592_s8 = sld [smem:[#allocation4 + $0x31]]  ;;  %s3620_s23 = sld [smem:[#allocation4 + $0x5b]] }
 0x142   : > { %v1412_v1 = vmul.f32 %v1410_v62, %v3347_v42  ;;  %v1411_v8 = vmul.f32 %v1410_v62, %v3342_v37  ;;  %v1577_v58 = vmul.f32 %v1576_v51, %v3212_v32 }
 0x143   : > { %v1339_v2 = vsel %vm840_vm5, %v1337_v61, %v1338_v53 }
 0x144   : > { %v1418_v10 = vrot.slane %v1412_v1, 4 }
 0x145   : > { %1076 = vrot.lane.b32.xlu0 %v1073_v7, %s3078_s27  ;;  %1005 = vrot.lane.b32.xlu1 %v1000_v5, %s3078_s27  ;;  %v1234_v5 = vrot.slane %v1227_v59, 6  ;;  %v1377_v7 = vrot.slane %v1371_v60, 3  ;;  %v1596_v60 = vstv %s2774_s24  ;;  %s3629_s24 = sld [smem:[#allocation4 + $0x35]] }
 0x146   : > { %v3481_v1 = vmul.f32 %v1596_v60, %v3347_v42 }
 0x147   : > { %v1379_v9 = vsel %vm873_vm6, %v1377_v7, %v1378_v63  ;;  %v1235_v12 = vsel %vm972_vm9, %v1232_v33, %v1234_v5  ;;  %v1616_v5 = vstv %s2823_s26  ;;  %v1532_v7 = vmul.f32 %v1530_v34, %v3347_v42  ;;  %s3631_s26 = sld [smem:[#allocation4 + $0x3c]] }
 0x148   : > { %v1617_v13 = vmul.f32 %v1616_v5, %v3212_v32  ;;  %v1599_v34 = vmul.f32 %v1596_v60, %v3371_v4  ;;  %v1619_v47 = vmul.f32 %v1616_v5, %v3266_v19 }
 0x149   : > { %1116 = vrot.lane.b32.xlu0 %v1113_v16, %s3078_s27  ;;  %1271 = vrot.lane.b32.xlu1 %v1266_v14, %s3079_s28  ;;  %v1452_v14 = vmul.f32 %v1450_v11, %v3347_v42  ;;  %v1417_v16 = vrot.slane %v1411_v8, 4  ;;  %v3490_v8 = vmul.f32 %v1616_v5, %v3240_v56  ;;  %v1559_v11 = vmul.f32 %v1556_v43, %v3371_v4 }
 0x14a   : > { %v1623_v0 = vrot.slane %v1617_v13, 2 }
 0x14b   : > { %v1419_v20 = vsel %vm906_vm7, %v1417_v16, %v1418_v10  ;;  %v1458_v23 = vrot.slane %v1452_v14, 5 }
 0x14d   : > { %1156 = vrot.lane.b32.xlu0 %v1153_v25, %s3078_s27  ;;  %1038 = vrot.lane.b32.xlu1 %v1035_v26, %s3078_s27  ;;  %v1457_v25 = vrot.slane %v1451_v17, 5  ;;  %v1491_v26 = vmul.f32 %v1490_v18, %v3342_v37  ;;  %v1461_v52 = vsel %vm939_vm8, %v1458_v23, %v1460_v45  ;;  %v1624_v18 = vrot.slane %v3490_v8, 2 }
 0x14f   : > { %v1459_v28 = vsel %vm939_vm8, %v1457_v25, %v1458_v23  ;;  %v1497_v33 = vrot.slane %v1491_v26, 6  ;;  %v1579_v23 = vmul.f32 %v1576_v51, %v3266_v19 }
 0x151   : > { %1196 = vrot.lane.b32.xlu0 %v1193_v31, %s3078_s27  ;;  %1078 = vrot.lane.b32.xlu1 %v1075_v35, %s3078_s27  ;;  %v1413_v31 = vmul.f32 %v1410_v62, %v3371_v4  ;;  %v1499_v35 = vsel %vm972_vm9, %v1497_v33, %v1498_v27  ;;  %v1501_v62 = vsel %vm972_vm9, %v1498_v27, %v1500_v54 }
 0x152   : > { %v1625_v27 = vsel %vm840_vm5, %v1623_v0, %v1624_v18 }
 0x153   : > { %v1420_v38 = vrot.slane %v1413_v31, 4  ;;  %v1586_v31 = vrot.slane %v1579_v23, 1 }
 0x154   : > { %v3461_v48 = vpop.permute.xlu0 %1016 }
 0x155   : > { %1236 = vrot.lane.b32.xlu0 %v1233_v44, %s3078_s27  ;;  %1118 = vrot.lane.b32.xlu1 %v1115_v46, %s3078_s27  ;;  %v1421_v44 = vsel %vm906_vm7, %v1418_v10, %v1420_v38  ;;  %v3458_v46 = vmul.f32 %v1556_v43, %v3347_v42  ;;  %v1604_v10 = vrot.slane %v3481_v1, 2 }
 0x157   : > { %v1564_v53 = vrot.slane %v3458_v46, 1  ;;  %v1606_v46 = vrot.slane %v1599_v34, 2 }
 0x158   : > { %v3475_v59 = vpop.permute.xlu0 %1282 }
 0x159   : > { %1302 = vrot.lane.b32.xlu0 %v1299_v55, %s3079_s28  ;;  %1158 = vrot.lane.b32.xlu1 %v1155_v57, %s3078_s27  ;;  %v3470_v55 = vmul.f32 %v1576_v51, %v3240_v56  ;;  %v1563_v57 = vrot.slane %v1557_v49, 1  ;;  %4949 = vst [vmem:[#allocation11_spill] sm:$0xff] %v3475_v59  ;;  %v1696_v51 = vstv %s2837_s3  ;;  %s3655_s3 = sld [smem:[#allocation4 + $0x51]] }
 0x15b   : > { %v1565_v61 = vsel %vm807_vm4, %v1563_v57, %v1564_v53  ;;  %v1584_v63 = vrot.slane %v3470_v55, 1  ;;  %v3546_v55 = vmul.f32 %v1696_v51, %v3240_v56 }
 0x15d   : > { %1342 = vrot.lane.b32.xlu0 %v1339_v2, %s3079_s28  ;;  %1198 = vrot.lane.b32.xlu1 %v1195_v3, %s3078_s27  ;;  %v1583_v2 = vrot.slane %v1577_v58, 1  ;;  %v1597_v3 = vmul.f32 %v1596_v60, %v3342_v37  ;;  %v1607_v58 = vsel %vm840_vm5, %v1604_v10, %v1606_v46  ;;  %v1626_v60 = vrot.slane %v1619_v47, 2 }
 0x15e   : > { %v1704_v5 = vrot.slane %v3546_v55, 4  ;;  %v3627_v46 = vstv %s3572_s7  ;;  %s3669_s7 = sld [smem:[#allocation4 + $0x15]]  ;;  %v3710_v55 = vstv %s3618_s20  ;;  %s3749_s20 = sld [smem:[#allocation4 + $0x12]] }
 0x15f   : > { %v1603_v14 = vrot.slane %v1597_v3, 2  ;;  %v1627_v8 = vsel %vm840_vm5, %v1624_v18, %v1626_v60 }
 0x161   : > { %1382 = vrot.lane.b32.xlu0 %v1379_v9, %s3079_s28  ;;  %1238 = vrot.lane.b32.xlu1 %v1235_v12, %s3078_s27  ;;  %s3441_s27 = sld [smem:[#allocation4 + $0x34]]  ;;  %v1585_v9 = vsel %vm807_vm4, %v1583_v2, %v1584_v63  ;;  %v1605_v21 = vsel %vm840_vm5, %v1603_v14, %v1604_v10 }
 0x165   : > { %1422 = vrot.lane.b32.xlu0 %v1419_v20, %s3079_s28  ;;  %1304 = vrot.lane.b32.xlu1 %v1301_v22, %s3079_s28  ;;  %v3505_v20 = vmul.f32 %v1636_v15, %v3347_v42  ;;  %v1566_v22 = vrot.slane %v1559_v11, 1 }
 0x167   : > { %v1543_v41 = vstv %s3441_s27  ;;  %v1567_v30 = vsel %vm807_vm4, %v1564_v53, %v1566_v22  ;;  %s3611_s27 = sld [smem:[#allocation4 + $0x4d]] }
 0x168   : > { %v1544_v50 = vmul.f32 %v1543_v41, %v3212_v32  ;;  %v1545_v17 = vmul.f32 %v1543_v41, %v3240_v56 }
 0x169   : > { %1462 = vrot.lane.b32.xlu0 %v1459_v28, %s3079_s28  ;;  %1344 = vrot.lane.b32.xlu1 %v1341_v29, %s3079_s28  ;;  %v1644_v28 = vrot.slane %v3505_v20, 3  ;;  %v1656_v29 = vstv %s2830_s30  ;;  %s3646_s30 = sld [smem:[#allocation4 + $0x43]] }
 0x16a   : > { %v3520_v33 = vmul.f32 %v1656_v29, %v3240_v56  ;;  %v1659_v11 = vmul.f32 %v1656_v29, %v3266_v19 }
 0x16c   : > { %v1664_v45 = vrot.slane %v3520_v33, 3  ;;  %v1666_v0 = vrot.slane %v1659_v11, 3 }
 0x16d   : > { %1502 = vrot.lane.b32.xlu0 %v1499_v35, %s3079_s28  ;;  %1384 = vrot.lane.b32.xlu1 %v1381_v36, %s3079_s28  ;;  %v1643_v35 = vrot.slane %v1637_v24, 3  ;;  %v1657_v36 = vmul.f32 %v1656_v29, %v3212_v32 }
 0x16f   : > { %v1645_v41 = vsel %vm873_vm6, %v1643_v35, %v1644_v28  ;;  %v1667_v35 = vsel %vm873_vm6, %v1664_v45, %v1666_v0 }
 0x171   : > { %1535 = vrot.lane.b32.xlu0 %v1531_v40, %s4928_s25  ;;  %1424 = vrot.lane.b32.xlu1 %v1421_v44, %s3079_s28  ;;  %v1587_v44 = vsel %vm807_vm4, %v1584_v63, %v1586_v31  ;;  %v1697_v63 = vmul.f32 %v1696_v51, %v3212_v32 }
 0x173   : > { %v1703_v13 = vrot.slane %v1697_v63, 4  ;;  %v3676_v63 = vstv %s3598_s16  ;;  %s4964_s16 = smov 125  }
 0x175   : > { %1548 = vrot.lane.b32.xlu0 %v1544_v50, %s4928_s25  ;;  %1464 = vrot.lane.b32.xlu1 %v1461_v52, %s3079_s28  ;;  %v1663_v50 = vrot.slane %v1657_v36, 3  ;;  %v1705_v20 = vsel %vm906_vm7, %v1703_v13, %v1704_v5 }
 0x177   : > { %v1665_v57 = vsel %vm873_vm6, %v1663_v50, %v1664_v45  ;;  %v3642_v50 = vmul.f32 %v3627_v46, %v3240_v56 }
 0x178   : > { %v3495_v12 = vpop.permute.xlu1 %1018 }
 0x179   : > { %1568 = vrot.lane.b32.xlu0 %v1565_v61, %s4928_s25  ;;  %1504 = vrot.lane.b32.xlu1 %v1501_v62, %s3079_s28  ;;  %4950 = vst [vmem:[#allocation12_spill] sm:$0xff] %v3495_v12  ;;  %s2788_s28 = sld [smem:[#allocation4 + $0x1f]]  ;;  %v1639_v61 = vmul.f32 %v1636_v15, %v3371_v4  ;;  %v3570_v15 = vstv %s2844_s5 }
 0x17a   : > { %s3661_s5 = sld [smem:[#allocation4 + $0x7]] }
 0x17b   : > { %v3486_v6 = vpop.permute.xlu0 %1056 }
 0x17c   : > { %v3512_v25 = vpop.permute.xlu1 %1284 }
 0x17d   : > { %1588 = vrot.lane.b32.xlu0 %v1585_v9, %s4928_s25  ;;  %1537 = vrot.lane.b32.xlu1 %v1532_v7, %s4928_s25  ;;  %4951 = vst [vmem:[#allocation13_spill] sm:$0xff] %v3512_v25  ;;  %v1716_v7 = vstv %s2795_s4  ;;  %v1646_v9 = vrot.slane %v1639_v61, 3  ;;  %s3659_s4 = sld [smem:[#allocation4]]  ;;  %v4934_v61 = vstv %s3592_s8 }
 0x17e   : > { %v3564_v10 = vmul.f32 %v1716_v7, %v3347_v42  ;;  %v1717_v14 = vmul.f32 %v1716_v7, %v3342_v37  ;;  %v1719_v60 = vmul.f32 %v1716_v7, %v3371_v4 }
 0x17f   : > { %v3500_v16 = vpop.permute.xlu0 %1096  ;;  %v1676_v38 = vstv %s2788_s28  ;;  %v1647_v22 = vsel %vm873_vm6, %v1644_v28, %v1646_v9  ;;  %s3653_s28 = sld [smem:[#allocation4 + $0x4a]] }
 0x180   : > { %v3532_v43 = vmul.f32 %v1676_v38, %v3347_v42  ;;  %v1677_v49 = vmul.f32 %v1676_v38, %v3342_v37  ;;  %v1724_v23 = vrot.slane %v3564_v10, 5  ;;  %v1679_v24 = vmul.f32 %v1676_v38, %v3371_v4 }
 0x181   : > { %1608 = vrot.lane.b32.xlu0 %v1605_v21, %s4928_s25  ;;  %1550 = vrot.lane.b32.xlu1 %v1545_v17, %s4928_s25  ;;  %v3583_v21 = vmul.f32 %v3570_v15, %v3240_v56  ;;  %v1723_v29 = vrot.slane %v1717_v14, 5  ;;  %v1699_v38 = vmul.f32 %v1696_v51, %v3266_v19  ;;  %v1726_v13 = vrot.slane %v1719_v60, 5 }
 0x182   : > { %v1684_v54 = vrot.slane %v3532_v43, 4  ;;  %v1683_v62 = vrot.slane %v1677_v49, 4  ;;  %v1686_v36 = vrot.slane %v1679_v24, 4  ;;  %v3663_v43 = vld [vmem:[#allocation3 + $0x18] sm:$0xff]  ;;  %v1739_v14 = vmul.f32 %v3570_v15, %v3266_v19  ;;  %v3720_v24 = vld [vmem:[#allocation3 + $0x20] sm:$0xff] }
 0x183   : > { %v3514_v26 = vpop.permute.xlu0 %1136  ;;  %v1744_v33 = vrot.slane %v3583_v21, 5  ;;  %v3755_v10 = vstv %s3655_s3  ;;  %v3794_v0 = vmul.f32 %v3720_v24, %v3676_v63  ;;  %v3801_v21 = vstv %s3705_s1  ;;  %s3855_s1 = sld [smem:[#allocation4 + $0x20]]  ;;  %s4355_s3 = sld [smem:[#allocation4 + $0x4b]] }
 0x184   : > { %v1685_v3 = vsel %vm906_vm7, %v1683_v62, %v1684_v54  ;;  %v1687_v51 = vsel %vm906_vm7, %v1684_v54, %v1686_v36  ;;  %v1777_v54 = vmul.f32 %v3663_v43, %v3627_v46  ;;  %v3673_v62 = vstv %s3596_s15  ;;  %s3695_s15 = sld [smem:[#allocation4 + $0x23]] }
 0x185   : > { %1628 = vrot.lane.b32.xlu0 %v1625_v27, %s4928_s25  ;;  %1570 = vrot.lane.b32.xlu1 %v1567_v30, %s4928_s25  ;;  %v1737_v27 = vmul.f32 %v3570_v15, %v3212_v32  ;;  %v3594_v30 = vstv %s2802_s6  ;;  %v1725_v32 = vsel %vm939_vm8, %v1723_v29, %v1724_v23  ;;  %s3667_s6 = sld [smem:[#allocation4 + $0xe]]  ;;  %v3732_v36 = vstv %s3631_s26 }
 0x186   : > { %v3607_v34 = vmul.f32 %v3594_v30, %v3347_v42  ;;  %v1783_v15 = vrot.slane %v1777_v54, 6  ;;  %v3752_v60 = vstv %s3653_s28  ;;  %v3767_v54 = vstv %s3669_s7  ;;  %s3908_s26 = sld [smem:[#allocation4 + $0x2e]]  ;;  %s4353_s28 = sld [smem:[#allocation4 + $0x44]] }
 0x187   : > { %v3526_v39 = vpop.permute.xlu1 %1058  ;;  %v3528_v40 = vpop.permute.xlu0 %1176  ;;  %s4515_s7 = sld [smem:[#allocation4 + $0x28]] }
 0x188   : > { %4952 = vst [vmem:[#allocation14_spill] sm:$0xff] %v3526_v39 }
 0x189   : > { %1648 = vrot.lane.b32.xlu0 %v1645_v41, %s4928_s25  ;;  %1590 = vrot.lane.b32.xlu1 %v1587_v44, %s4928_s25  ;;  %v1743_v41 = vrot.slane %v1737_v27, 5  ;;  %v1757_v44 = vmul.f32 %v3594_v30, %v3342_v37  ;;  %v3724_v27 = vmul.f32 %v3720_v24, %v3673_v62 }
 0x18b   : > { %v3540_v52 = vpop.permute.xlu1 %1098  ;;  %v3542_v53 = vpop.permute.xlu0 %1216  ;;  %v1745_v49 = vsel %vm939_vm8, %v1743_v41, %v1744_v33  ;;  %v1763_v56 = vrot.slane %v1757_v44, 6  ;;  %v1727_v44 = vsel %vm939_vm8, %v1724_v23, %v1726_v13 }
 0x18c   : > { %4953 = vst [vmem:[#allocation15_spill] sm:$0xff] %v3540_v52 }
 0x18d   : > { %1668 = vrot.lane.b32.xlu0 %v1665_v57, %s4928_s25  ;;  %1610 = vrot.lane.b32.xlu1 %v1607_v58, %s4928_s25  ;;  %v4932_v57 = vrot.slane %v3607_v34, 6  ;;  %v1706_v58 = vrot.slane %v1699_v38, 4  ;;  %v3735_v38 = vstv %s3646_s30  ;;  %s3082_s30 = smov 123  }
 0x18f   : > { %v3554_v1 = vpop.permute.xlu1 %1138  ;;  %v3556_v2 = vpop.permute.xlu0 %1256  ;;  %v1765_v9 = vsel %vm972_vm9, %v1763_v56, %v4932_v57  ;;  %v1707_v11 = vsel %vm906_vm7, %v1704_v5, %v1706_v58  ;;  %v3713_v5 = vstv %s3620_s23  ;;  %v818_v58 = vmul.f32 %v3663_v43, %v3673_v62  ;;  %s3757_s23 = sld [smem:[#allocation4 + $0x3d]] }
 0x190   : > { %4954 = vst [vmem:[#allocation16_spill] sm:$0xff] %v3554_v1  ;;  %4955 = vst [vmem:[#allocation17_spill] sm:$0xff] %v3556_v2  ;;  %v3761_v56 = vstv %s3661_s5  ;;  %v1779_v57 = vmul.f32 %v3627_v46, %v3266_v19  ;;  %v4977_v1 = vrot.slane %v3794_v0, 2  ;;  %s4450_s5 = sld [smem:[#allocation4 + $0x21]] }
 0x191   : > { %1688 = vrot.lane.b32.xlu0 %v1685_v3, %s4928_s25  ;;  %1630 = vrot.lane.b32.xlu1 %v1627_v8, %s4928_s25  ;;  %v4931_v8 = vrot.slane %v3642_v50, 6 }
 0x193   : > { %v3574_v17 = vpop.permute.xlu1 %1178  ;;  %v3576_v18 = vpop.permute.xlu0 %1322  ;;  %v1785_v41 = vsel %vm972_vm9, %v1783_v15, %v4931_v8 }
 0x194   : > { %4956 = vst [vmem:[#allocation18_spill] sm:$0xff] %v3574_v17  ;;  %4957 = vst [vmem:[#allocation19_spill] sm:$0xff] %v3576_v18 }
 0x195   : > { %1708 = vrot.lane.b32.xlu0 %v1705_v20, %s4928_s25  ;;  %1650 = vrot.lane.b32.xlu1 %v1647_v22, %s4928_s25  ;;  %v3698_v20 = vstv %s3609_s18  ;;  %v3701_v22 = vstv %s3611_s27  ;;  %s3715_s18 = sld [smem:[#allocation4 + $0x2a]]  ;;  %s3718_s27 = sld [smem:[#allocation4 + $0x36]] }
 0x197   : > { %v3600_v28 = vpop.permute.xlu1 %1218  ;;  %v3602_v31 = vpop.permute.xlu0 %1362 }
 0x198   : > { %4958 = vst [vmem:[#allocation20_spill] sm:$0xff] %v3600_v28  ;;  %4959 = vst [vmem:[#allocation21_spill] sm:$0xff] %v3602_v31 }
 0x199   : > { %1728 = vrot.lane.b32.xlu0 %v1725_v32, %s4928_s25  ;;  %1670 = vrot.lane.b32.xlu1 %v1667_v35, %s4928_s25  ;;  %v4933_v35 = vstv %s3644_s29 }
 0x19b   : > { %v3633_v45 = vpop.permute.xlu1 %1258  ;;  %v3635_v47 = vpop.permute.xlu0 %1402  ;;  %v3810_v19 = vstv %s3715_s18  ;;  %s4598_s18 = sld [smem:[#allocation4 + $0x60]] }
 0x19c   : > { %4960 = vst [vmem:[#allocation22_spill] sm:$0xff] %v3633_v45  ;;  %4961 = vst [vmem:[#allocation23_spill] sm:$0xff] %v3635_v47  ;;  %v1786_v45 = vrot.slane %v1779_v57, 6  ;;  %v884_v57 = vmul.f32 %v3663_v43, %v3698_v20 }
 0x19d   : > { %1748 = vrot.lane.b32.xlu0 %v1745_v49, %s4928_s25  ;;  %1690 = vrot.lane.b32.xlu1 %v1687_v51, %s4928_s25  ;;  %s3683_s25 = sld [smem:[#allocation4 + $0x1c]]  ;;  %v1746_v49 = vrot.slane %v1739_v14, 5  ;;  %v1759_v51 = vmul.f32 %v3594_v30, %v3371_v4  ;;  %v3764_v30 = vstv %s3667_s6  ;;  %v1797_v14 = vmul.f32 %v4933_v35, %v3342_v37  ;;  %s4480_s6 = sld [smem:[#allocation4 + $0x52]] }
 0x19e   : > { %v824_v35 = vrot.slane %v818_v58, 1  ;;  %v796_v58 = vmul.f32 %v3663_v43, %v4934_v61 }
 0x19f   : > { %v3678_v3 = vpop.permute.xlu1 %1324  ;;  %v3680_v7 = vpop.permute.xlu0 %1442  ;;  %v1766_v23 = vrot.slane %v1759_v51, 6  ;;  %v4971_v51 = vrot.slane %v3607_v34, 6  ;;  %v3846_v34 = vstv %s3749_s20  ;;  %s4678_s20 = sld [smem:[#allocation4 + $0x37]] }
 0x1a0   : > { %4962 = vst [vmem:[#allocation24_spill] sm:$0xff] %v3678_v3  ;;  %4963 = vst [vmem:[#allocation25_spill] sm:$0xff] %v3680_v7  ;;  %v4970_v3 = vstv %s3629_s24  ;;  %v3880_v47 = vmul.f32 %v3846_v34, %v3347_v42 }
 0x1a1   : > { %1768 = vrot.lane.b32.xlu0 %v1765_v9, %s4964_s16  ;;  %1710 = vrot.lane.b32.xlu1 %v1707_v11, %s4964_s16  ;;  %v4935_v9 = vrot.slane %v3724_v27, 1  ;;  %v1810_v25 = vmul.f32 %v3663_v43, %v4970_v3  ;;  %v3849_v3 = vstv %s3757_s23  ;;  %s4686_s23 = sld [smem:[#allocation4 + $0xd]] }
 0x1a2   : > { %4972 = vst [vmem:[#allocation31_spill] sm:$0xff] %v3849_v3  ;;  %v4987_v39 = vrot.slane %v3880_v47, 2 }
 0x1a3   : > { %v3726_v29 = vpop.permute.xlu1 %1364  ;;  %v3728_v32 = vpop.permute.xlu0 %1482  ;;  %v3778_v15 = vstv %s3683_s25  ;;  %s3798_s25 = sld [smem:[#allocation4 + $0x19]] }
 0x1a4   : > { %4965 = vst [vmem:[#allocation26_spill] sm:$0xff] %v3726_v29  ;;  %4966 = vst [vmem:[#allocation27_spill] sm:$0xff] %v3728_v32 }
 0x1a5   : > { %1788 = vrot.lane.b32.xlu0 %v1785_v41, %s4964_s16  ;;  %1730 = vrot.lane.b32.xlu1 %v1727_v44, %s4964_s16  ;;  %v3781_v41 = vstv %s3685_s0  ;;  %v1747_v44 = vsel %vm939_vm8, %v1744_v33, %v1746_v49  ;;  %s3081_s0 = smov 124   ;;  %v3804_v33 = vstv %s3707_s17  ;;  %s3895_s17 = sld [smem:[#allocation4 + $0x27]] }
 0x1a6   : > { %v3788_v8 = vmul.f32 %v3781_v41, %v3347_v42  ;;  %v3807_v49 = vstv %s3695_s15  ;;  %v1823_v46 = vmul.f32 %v3781_v41, %v3342_v37  ;;  %s4540_s15 = sld [smem:[#allocation4 + $0x59]] }
 0x1a7   : > { %v3770_v11 = vpop.permute.xlu1 %1404  ;;  %v3772_v13 = vpop.permute.xlu0 %1522 }
 0x1a8   : > { %4967 = vst [vmem:[#allocation28_spill] sm:$0xff] %v3770_v11  ;;  %4968 = vst [vmem:[#allocation29_spill] sm:$0xff] %v3772_v13  ;;  %v1767_v13 = vsel %vm972_vm9, %v4971_v51, %v1766_v23  ;;  %v1829_v51 = vrot.slane %v1823_v46, 1  ;;  %v4975_v32 = vrot.slane %v3788_v8, 1 }
 0x1a9   : > { %1801 = vrot.lane.b32.xlu0 %v1797_v14, %s3081_s0  ;;  %1750 = vrot.lane.b32.xlu1 %v1747_v44, %s4964_s16  ;;  %v826_v14 = vsel %vm807_vm4, %v824_v35, %v4935_v9  ;;  %v851_v44 = vmul.f32 %v3663_v43, %v3676_v63  ;;  %v3836_v35 = vmul.f32 %v3720_v24, %v3732_v36 }
 0x1aa   : > { %v831_v23 = vadd.f32 %v826_v14, %v796_v58  ;;  %v1843_v9 = vmul.f32 %v3663_v43, %v3732_v36  ;;  %v3865_v58 = vmul.f32 %v3663_v43, %v3713_v5  ;;  %v1831_v28 = vsel %vm807_vm4, %v1829_v51, %v4975_v32 }
 0x1ab   : > { %v3823_v11 = vpop.permute.xlu1 %1444  ;;  %v3825_v29 = vpop.permute.xlu0 %1003  ;;  %v857_v61 = vrot.slane %v851_v44, 2  ;;  %v4976_v44 = vrot.slane %v3642_v50, 6  ;;  %v3888_v32 = vmul.f32 %v3720_v24, %v3701_v22  ;;  %v890_v51 = vrot.slane %v884_v57, 3 }
 0x1ac   : > { %4969 = vst [vmem:[#allocation30_spill] sm:$0xff] %v3823_v11  ;;  %v3841_v11 = vmul.f32 %v3720_v24, %v3698_v20  ;;  %v989_v17 = vrot.slane %v3865_v58, 6  ;;  %v4986_v57 = vstv %s3629_s24  ;;  %s4320_s24 = sld [smem:[#allocation4 + $0x13]] }
 0x1ad   : > { %1814 = vrot.lane.b32.xlu0 %v1810_v25, %s3081_s0  ;;  %1770 = vrot.lane.b32.xlu1 %v1767_v13, %s4964_s16  ;;  %v917_v25 = vmul.f32 %v3663_v43, %v3701_v22  ;;  %v3861_v13 = vmul.f32 %v3663_v43, %v3710_v55  ;;  %v1787_v7 = vsel %vm972_vm9, %v4976_v44, %v1786_v45  ;;  %v3893_v45 = vstv %s3798_s25  ;;  %s2777_s25 = sld [smem:[#allocation4 + $0x14]] }
 0x1ae   : > { %v1849_v44 = vrot.slane %v1843_v9, 1  ;;  %v4981_v9 = vrot.slane %v3836_v35, 1  ;;  %v4982_v58 = vrot.slane %v3841_v11, 3  ;;  %v1811_v18 = vmul.f32 %v3720_v24, %v4986_v57 }
 0x1af   : > { %v3867_v14 = vpop.permute.xlu1 %1484  ;;  %v3869_v46 = vpop.permute.xlu0 %1269  ;;  %v4988_v57 = vrot.slane %v3888_v32, 4 }
 0x1b0   : > { %4973 = vst [vmem:[#allocation32_spill] sm:$0xff] %v3867_v14  ;;  %4974 = vst [vmem:[#allocation33_spill] sm:$0xff] %v3869_v46  ;;  %v859_v14 = vsel %vm840_vm5, %v857_v61, %v4977_v1  ;;  %v1863_v1 = vmul.f32 %v3846_v34, %v3342_v37  ;;  %v923_v61 = vrot.slane %v917_v25, 4  ;;  %v956_v46 = vrot.slane %v3861_v13, 5 }
 0x1b1   : > { %1834 = vrot.lane.b32.xlu0 %v1831_v28, %s3081_s0  ;;  %1790 = vrot.lane.b32.xlu1 %v1787_v7, %s4964_s16  ;;  %v864_v50 = vadd.f32 %v859_v14, %v831_v23  ;;  %v4980_v7 = vstv %s3644_s29  ;;  %v1851_v23 = vsel %vm807_vm4, %v1849_v44, %v4981_v9  ;;  %v3916_v25 = vmul.f32 %v3720_v24, %v3735_v38  ;;  %s3932_s29 = sld [smem:[#allocation4 + $0x5]]  ;;  %s4570_s16 = sld [smem:[#allocation4 + $0x2f]] }
 0x1b2   : > { %v1798_v52 = vmul.f32 %v4980_v7, %v3347_v42  ;;  %v1825_v13 = vmul.f32 %v3781_v41, %v3371_v4  ;;  %v892_v14 = vsel %vm873_vm6, %v890_v51, %v4982_v58  ;;  %v1883_v44 = vmul.f32 %v3663_v43, %v3735_v38 }
 0x1b3   : > { %v3901_v31 = vpop.permute.xlu1 %1524  ;;  %v3903_v28 = vpop.permute.xlu0 %1036  ;;  %v897_v41 = vadd.f32 %v892_v14, %v864_v50  ;;  %v1869_v9 = vrot.slane %v1863_v1, 2  ;;  %v3936_v51 = vmul.f32 %v3663_v43, %v3752_v60  ;;  %v3939_v58 = vstv %s3855_s1  ;;  %v3952_v50 = vld [vmem:[#allocation3 + $0x28] sm:$0x3f]  ;;  %s3083_s1 = smov 122  }
 0x1b4   : > { %4978 = vst [vmem:[#allocation34_spill] sm:$0xff] %v3901_v31  ;;  %4979 = vst [vmem:[#allocation35_spill] sm:$0xff] %v3903_v28  ;;  %v3926_v31 = vmul.f32 %v3720_v24, %v3710_v55  ;;  %v3943_v7 = vmul.f32 %v3720_v24, %v3713_v5  ;;  %v1845_v1 = vmul.f32 %v3952_v50, %v3732_v36  ;;  %v1832_v59 = vrot.slane %v1825_v13, 1 }
 0x1b5   : > { %1854 = vrot.lane.b32.xlu0 %v1851_v23, %s3081_s0  ;;  %1803 = vrot.lane.b32.xlu1 %v1798_v52, %s3081_s0  ;;  %v3958_v14 = vmul.f32 %v3663_v43, %v3755_v10  ;;  %v1871_v12 = vsel %vm840_vm5, %v1869_v9, %v4987_v39  ;;  %v925_v36 = vsel %vm906_vm7, %v923_v61, %v4988_v57  ;;  %v1889_v3 = vrot.slane %v1883_v44, 2 }
 0x1b6   : > { %4983 = vst [vmem:[#allocation36_spill] sm:$0xff] %v3943_v7  ;;  %v3975_v39 = vstv %s3895_s17  ;;  %v930_v9 = vadd.f32 %v925_v36, %v897_v41  ;;  %v1903_v13 = vmul.f32 %v3893_v45, %v3342_v37  ;;  %v3982_v28 = vmul.f32 %v3663_v43, %v3801_v21  ;;  %s2826_s17 = sld [smem:[#allocation4 + $0x45]] }
 0x1b7   : > { %v3945_v23 = vpop.permute.xlu1 %1005  ;;  %v3947_v52 = vpop.permute.xlu0 %1076  ;;  %v1865_v44 = vmul.f32 %v3846_v34, %v3371_v4  ;;  %v3992_v41 = vstv %s3908_s26  ;;  %v4991_v37 = vrot.slane %v3916_v25, 2  ;;  %v4992_v36 = vrot.slane %v3788_v8, 1  ;;  %s2784_s26 = sld [smem:[#allocation4 + $0x1b]] }
 0x1b8   : > { %4984 = vst [vmem:[#allocation37_spill] sm:$0xff] %v3945_v23  ;;  %4985 = vst [vmem:[#allocation38_spill] sm:$0xff] %v3947_v52  ;;  %v3966_v52 = vmul.f32 %v3893_v45, %v3347_v42  ;;  %v1929_v23 = vrot.slane %v3936_v51, 3  ;;  %v4013_v8 = vmul.f32 %v3663_v43, %v3804_v33  ;;  %v1909_v61 = vrot.slane %v1903_v13, 3 }
 0x1b9   : > { %1874 = vrot.lane.b32.xlu0 %v1871_v12, %s3081_s0  ;;  %1816 = vrot.lane.b32.xlu1 %v1811_v18, %s3081_s0  ;;  %v1852_v18 = vrot.slane %v1845_v1, 1  ;;  %v1891_v51 = vsel %vm840_vm5, %v1889_v3, %v4991_v37  ;;  %v1833_v2 = vsel %vm807_vm4, %v4992_v36, %v1832_v59  ;;  %v4993_v1 = vrot.slane %v3926_v31, 5 }
 0x1ba   : > { %v820_v36 = vmul.f32 %v3952_v50, %v3673_v62  ;;  %v1872_v13 = vrot.slane %v1865_v44, 2  ;;  %v4051_v44 = vld [vmem:[#allocation3] sm:$0xff] }
 0x1bb   : > { %v3985_v57 = vpop.permute.xlu1 %1271  ;;  %v3987_v12 = vpop.permute.xlu0 %1116  ;;  %v958_v34 = vsel %vm939_vm8, %v956_v46, %v4993_v1  ;;  %v4994_v46 = vrot.slane %v3943_v7, 6 }
 0x1bc   : > { %4989 = vst [vmem:[#allocation39_spill] sm:$0xff] %v3985_v57  ;;  %4990 = vst [vmem:[#allocation40_spill] sm:$0xff] %v3987_v12  ;;  %v4003_v57 = vmul.f32 %v3720_v24, %v3752_v60  ;;  %v963_v37 = vadd.f32 %v958_v34, %v930_v9  ;;  %v4997_v9 = vrot.slane %v3836_v35, 1  ;;  %v4998_v34 = vrot.slane %v3966_v52, 3 }
 0x1bd   : > { %1894 = vrot.lane.b32.xlu0 %v1891_v51, %s3081_s0  ;;  %1836 = vrot.lane.b32.xlu1 %v1833_v2, %s3081_s0  ;;  %v991_v51 = vsel %vm972_vm9, %v989_v17, %v4994_v46  ;;  %v4024_v2 = vmul.f32 %v3761_v56, %v3347_v42  ;;  %v1885_v42 = vmul.f32 %v3952_v50, %v3735_v38  ;;  %v4039_v46 = vld [vmem:[#allocation3 + $0x8] sm:$0xff]  ;;  %v827_v17 = vrot.slane %v820_v36, 1 }
 0x1be   : > { %v1853_v62 = vsel %vm807_vm4, %v4997_v9, %v1852_v18  ;;  %v1911_v59 = vsel %vm873_vm6, %v1909_v61, %v4998_v34  ;;  %v4043_v12 = vmul.f32 %v4039_v46, %v3939_v58  ;;  %v853_v35 = vmul.f32 %v3952_v50, %v3676_v63 }
 0x1bf   : > { %v4026_v1 = vpop.permute.xlu1 %1038  ;;  %v4028_v3 = vpop.permute.xlu0 %1156  ;;  %v4049_v18 = vmul.f32 %v3952_v50, %v3698_v20  ;;  %v801_v61 = vmul.f32 %v4051_v44, %v3761_v56  ;;  %v4058_v9 = vadd.f32 %v991_v51, %v963_v37  ;;  %v4999_v34 = vstv %s3592_s8  ;;  %s4250_s8 = sld [smem:[#allocation4 + $0xc]] }
 0x1c0   : > { %4995 = vst [vmem:[#allocation41_spill] sm:$0xff] %v4026_v1  ;;  %4996 = vst [vmem:[#allocation42_spill] sm:$0xff] %v4028_v3  ;;  %v797_v63 = vmul.f32 %v3720_v24, %v4999_v34  ;;  %v1943_v20 = vmul.f32 %v4051_v44, %v3939_v58  ;;  %v4067_v1 = vmul.f32 %v3952_v50, %v3701_v22  ;;  %v5002_v37 = vrot.slane %v3880_v47, 2 }
 0x1c1   : > { %1856 = vrot.lane.b32.xlu1 %v1853_v62, %s3081_s0  ;;  %1914 = vrot.lane.b32.xlu0 %v1911_v59, %s3081_s0  ;;  %v1905_v36 = vmul.f32 %v3893_v45, %v3371_v4  ;;  %v5003_v34 = vrot.slane %v4003_v57, 3  ;;  %v1892_v22 = vrot.slane %v1885_v42, 2  ;;  %v4938_v7 = vrot.slane %v4043_v12, 4 }
 0x1c2   : > { %v1873_v51 = vsel %vm840_vm5, %v5002_v37, %v1872_v13  ;;  %v4085_v3 = vmul.f32 %v3720_v24, %v3755_v10  ;;  %v808_v47 = vrot.slane %v801_v61, 1  ;;  %v4090_v13 = vmul.f32 %v4039_v46, %v3764_v30 }
 0x1c3   : > { %v4070_v62 = vpop.permute.xlu1 %1078  ;;  %v4072_v59 = vpop.permute.xlu0 %1196  ;;  %v1931_v38 = vsel %vm873_vm6, %v1929_v23, %v5003_v34  ;;  %v5004_v4 = vrot.slane %v3724_v27, 1  ;;  %v4099_v23 = vmul.f32 %v3952_v50, %v3710_v55  ;;  %v5005_v42 = vstv %s3659_s4 }
 0x1c4   : > { %5000 = vst [vmem:[#allocation43_spill] sm:$0xff] %v4070_v62  ;;  %5001 = vst [vmem:[#allocation44_spill] sm:$0xff] %v4072_v59  ;;  %v860_v62 = vrot.slane %v853_v35, 2  ;;  %v791_v35 = vmul.f32 %v4051_v44, %v5005_v42  ;;  %v1949_v61 = vrot.slane %v1943_v20, 4  ;;  %v5006_v37 = vrot.slane %v4024_v2, 1 }
 0x1c5   : > { %1876 = vrot.lane.b32.xlu1 %v1873_v51, %s3081_s0  ;;  %1934 = vrot.lane.b32.xlu0 %v1931_v38, %s3081_s0  ;;  %v828_v45 = vsel %vm807_vm4, %v5004_v4, %v827_v17  ;;  %v834_v51 = vmul.f32 %v4051_v44, %v3764_v30  ;;  %v1912_v17 = vrot.slane %v1905_v36, 3  ;;  %v1925_v55 = vmul.f32 %v3952_v50, %v3752_v60 }
 0x1c6   : > { %v810_v34 = vsel %vm807_vm4, %v808_v47, %v5006_v37  ;;  %v5008_v4 = vrot.slane %v3916_v25, 2  ;;  %v1951_v20 = vsel %vm906_vm7, %v1949_v61, %v4938_v7  ;;  %v4939_v47 = vrot.slane %v4085_v3, 4  ;;  %v4145_v7 = vld [vmem:[#allocation3 + $0x10] sm:$0x3f] }
 0x1c7   : > { %v4109_v38 = vpop.permute.xlu1 %1118  ;;  %v4111_v27 = vpop.permute.xlu0 %1236  ;;  %v4124_v37 = vmul.f32 %v4039_v46, %v3975_v39  ;;  %v4126_v59 = vadd.f32 %v828_v45, %v797_v63  ;;  %v4132_v25 = vmul.f32 %v4039_v46, %v3767_v54  ;;  %v867_v63 = vmul.f32 %v4051_v44, %v3767_v54 }
 0x1c8   : > { %5007 = vst [vmem:[#allocation45_spill] sm:$0xff] %v4109_v38  ;;  %v1893_v42 = vsel %vm840_vm5, %v5008_v4, %v1892_v22  ;;  %v5009_v22 = vrot.slane %v3794_v0, 2  ;;  %v815_v4 = vadd.f32 %v810_v34, %v791_v35  ;;  %v1983_v45 = vmul.f32 %v4051_v44, %v3975_v39 }
 0x1c9   : > { %1896 = vrot.lane.b32.xlu1 %v1893_v42, %s3081_s0  ;;  %1954 = vrot.lane.b32.xlu0 %v1951_v20, %s3081_s0  ;;  %v841_v36 = vrot.slane %v834_v51, 2  ;;  %v803_v42 = vmul.f32 %v4145_v7, %v3761_v56  ;;  %v5012_v0 = vrot.slane %v3966_v52, 3  ;;  %v1945_v35 = vmul.f32 %v4145_v7, %v3939_v58 }
 0x1ca   : > { %v4139_v61 = vsel %vm840_vm5, %v5009_v22, %v860_v62  ;;  %v5013_v34 = vrot.slane %v3958_v14, 4  ;;  %v1932_v22 = vrot.slane %v1925_v55, 3  ;;  %v5014_v52 = vrot.slane %v4090_v13, 2 }
 0x1cb   : > { %v4149_v60 = vpop.permute.xlu1 %1158  ;;  %v4151_v20 = vpop.permute.xlu0 %1302  ;;  %v1913_v62 = vsel %vm873_vm6, %v5012_v0, %v1912_v17  ;;  %v900_v58 = vmul.f32 %v4051_v44, %v3778_v15  ;;  %v4176_v14 = vmul.f32 %v4039_v46, %v3778_v15  ;;  %v1989_v56 = vrot.slane %v1983_v45, 5 }
 0x1cc   : > { %5010 = vst [vmem:[#allocation46_spill] sm:$0xff] %v4149_v60  ;;  %5011 = vst [vmem:[#allocation47_spill] sm:$0xff] %v4151_v20  ;;  %v1971_v51 = vsel %vm906_vm7, %v5013_v34, %v4939_v47  ;;  %v4166_v60 = vmul.f32 %v3720_v24, %v3801_v21  ;;  %v843_v17 = vsel %vm840_vm5, %v841_v36, %v5014_v52  ;;  %v874_v34 = vrot.slane %v867_v63, 3 }
 0x1cd   : > { %1916 = vrot.lane.b32.xlu1 %v1913_v62, %s3081_s0  ;;  %1974 = vrot.lane.b32.xlu0 %v1971_v51, %s3081_s0  ;;  %v848_v55 = vadd.f32 %v843_v17, %v815_v4  ;;  %v933_v47 = vmul.f32 %v4051_v44, %v3807_v49  ;;  %v811_v36 = vrot.slane %v803_v42, 1  ;;  %v836_v52 = vmul.f32 %v4145_v7, %v3764_v30 }
 0x1ce   : > { %v1952_v38 = vrot.slane %v1945_v35, 4  ;;  %v1965_v62 = vmul.f32 %v3952_v50, %v3755_v10  ;;  %v5017_v4 = vrot.slane %v4003_v57, 3  ;;  %v5018_v51 = vrot.slane %v4124_v37, 5 }
 0x1cf   : > { %v4184_v0 = vpop.permute.xlu1 %1198  ;;  %v4186_v20 = vpop.permute.xlu0 %1342  ;;  %v4199_v30 = vmul.f32 %v4039_v46, %v3992_v41  ;;  %v5019_v17 = vrot.slane %v4132_v25, 3  ;;  %v4207_v57 = vmul.f32 %v4039_v46, %v3807_v49  ;;  %v844_v10 = vrot.slane %v836_v52, 2 }
 0x1d0   : > { %5015 = vst [vmem:[#allocation48_spill] sm:$0xff] %v4184_v0  ;;  %5016 = vst [vmem:[#allocation49_spill] sm:$0xff] %v4186_v20  ;;  %v1933_v63 = vsel %vm873_vm6, %v5017_v4, %v1932_v22  ;;  %v1991_v45 = vsel %vm939_vm8, %v1989_v56, %v5018_v51  ;;  %v907_v20 = vrot.slane %v900_v58, 4  ;;  %v5020_v56 = vstv %s3659_s4  ;;  %s4388_s4 = sld [smem:[#allocation4 + $0x1a]] }
 0x1d1   : > { %v876_v35 = vsel %vm873_vm6, %v874_v34, %v5019_v17  ;;  %1936 = vrot.lane.b32.xlu1 %v1933_v63, %s3081_s0  ;;  %1994 = vrot.lane.b32.xlu0 %v1991_v45, %s3081_s0  ;;  %v792_v4 = vmul.f32 %v4039_v46, %v5020_v56  ;;  %v869_v51 = vmul.f32 %v4145_v7, %v3767_v54  ;;  %v5021_v34 = vrot.slane %v4024_v2, 1 }
 0x1d2   : > { %v881_v22 = vadd.f32 %v876_v35, %v848_v55  ;;  %v2023_v58 = vmul.f32 %v4051_v44, %v3992_v41  ;;  %v5023_v55 = vrot.slane %v4043_v12, 4  ;;  %v1972_v35 = vrot.slane %v1965_v62, 4 }
 0x1d3   : > { %v812_v17 = vsel %vm807_vm4, %v5021_v34, %v811_v36  ;;  %v4221_v42 = vpop.permute.xlu1 %1238  ;;  %v4223_v63 = vpop.permute.xlu0 %1382  ;;  %v5024_v56 = vrot.slane %v4166_v60, 5  ;;  %v5025_v54 = vrot.slane %v3982_v28, 5  ;;  %v1985_v36 = vmul.f32 %v4145_v7, %v3975_v39 }
 0x1d4   : > { %5022 = vst [vmem:[#allocation50_spill] sm:$0xff] %v4223_v63  ;;  %v1953_v45 = vsel %vm906_vm7, %v5023_v55, %v1952_v38  ;;  %v4238_v52 = vmul.f32 %v3720_v24, %v3804_v33  ;;  %v5026_v12 = vrot.slane %v4176_v14, 4  ;;  %v940_v62 = vrot.slane %v933_v47, 5 }
 0x1d5   : > { %v2011_v0 = vsel %vm939_vm8, %v5025_v54, %v5024_v56  ;;  %v4246_v28 = vmul.f32 %v4039_v46, %v3810_v19  ;;  %1956 = vrot.lane.b32.xlu1 %v1953_v45, %s3081_s0  ;;  %v966_v55 = vmul.f32 %v4051_v44, %v3810_v19  ;;  %v2029_v47 = vrot.slane %v2023_v58, 6 }
 0x1d6   : > { %v909_v38 = vsel %vm906_vm7, %v907_v20, %v5026_v12  ;;  %2014 = vrot.lane.b32.xlu0 %v2011_v0, %s3081_s0  ;;  %v902_v20 = vmul.f32 %v4145_v7, %v3778_v15  ;;  %v816_v56 = vadd.f32 %v812_v17, %v792_v4  ;;  %v5027_v54 = vrot.slane %v4090_v13, 2 }
 0x1d7   : > { %v914_v39 = vadd.f32 %v909_v38, %v881_v22  ;;  %v877_v34 = vrot.slane %v869_v51, 3  ;;  %v4259_v2 = vpop.permute.xlu1 %1304  ;;  %v4261_v45 = vpop.permute.xlu0 %1422  ;;  %v5028_v0 = vrot.slane %v4085_v3, 4  ;;  %v5029_v38 = vrot.slane %v4199_v30, 6 }
 0x1d8   : > { %v845_v12 = vsel %vm840_vm5, %v5027_v54, %v844_v10  ;;  %v1992_v15 = vrot.slane %v1985_v36, 5  ;;  %v2050_v4 = vrot.slane %v4238_v52, 6  ;;  %v2005_v13 = vmul.f32 %v3952_v50, %v3801_v21 }
 0x1d9   : > { %v1973_v22 = vsel %vm906_vm7, %v5028_v0, %v1972_v35  ;;  %v2031_v63 = vsel %vm972_vm9, %v2029_v47, %v5029_v38  ;;  %v865_v10 = vadd.f32 %v4139_v61, %v4126_v59  ;;  %v5030_v51 = vrot.slane %v4049_v18, 3 }
 0x1da   : > { %v5031_v58 = vrot.slane %v3841_v11, 3  ;;  %v5032_v17 = vrot.slane %v4207_v57, 5  ;;  %v974_v36 = vrot.slane %v4246_v28, 6  ;;  %1976 = vrot.lane.b32.xlu1 %v1973_v22, %s3081_s0  ;;  %2034 = vrot.lane.b32.xlu0 %v2031_v63, %s3081_s0  ;;  %v1022_v21 = vadd.f32 %v3461_v48, %v4058_v9 }
 0x1db   : > { %v973_v61 = vrot.slane %v966_v55, 6  ;;  %v935_v11 = vmul.f32 %v4145_v7, %v3807_v49  ;;  %v849_v18 = vadd.f32 %v845_v12, %v816_v56  ;;  %v5033_v47 = vrot.slane %v4132_v25, 3  ;;  %v4292_v0 = vpop.permute.xlu1 %1344  ;;  %v4294_v22 = vpop.permute.xlu0 %1462 }
 0x1dc   : > { %v894_v3 = vsel %vm873_vm6, %v5031_v58, %v5030_v51  ;;  %v942_v35 = vsel %vm939_vm8, %v940_v62, %v5032_v17  ;;  %v910_v54 = vrot.slane %v902_v20, 4  ;;  %v2025_v63 = vmul.f32 %v4145_v7, %v3992_v41 }
 0x1dd   : > { %v947_v59 = vadd.f32 %v942_v35, %v914_v39  ;;  %v878_v62 = vsel %vm873_vm6, %v5033_v47, %v877_v34  ;;  %v1062_v48 = vadd.f32 %v3486_v6, %v1022_v21  ;;  %v5034_v9 = vrot.slane %v4124_v37, 5 }
 0x1de   : > { %v5035_v25 = vrot.slane %v4013_v8, 6  ;;  %v2012_v39 = vrot.slane %v2005_v13, 5  ;;  %v898_v55 = vadd.f32 %v894_v3, %v865_v10  ;;  %v5036_v20 = vrot.slane %v4067_v1, 4 }
 0x1df   : > { %v1993_v49 = vsel %vm939_vm8, %v5034_v9, %v1992_v15  ;;  %v5037_v56 = vrot.slane %v3888_v32, 4  ;;  %v975_v6 = vsel %vm972_vm9, %v973_v61, %v974_v36  ;;  %v4318_v8 = vstv %s4250_s8  ;;  %v4325_v15 = vpop.permute.xlu1 %1384  ;;  %v4327_v13 = vpop.permute.xlu0 %1502  ;;  %s4748_s8 = sld [smem:[#allocation4 + $0x22]] }
 0x1e0   : > { %v2051_v34 = vsel %vm972_vm9, %v5035_v25, %v2050_v4  ;;  %1996 = vrot.lane.b32.xlu1 %v1993_v49, %s3081_s0  ;;  %v1102_v37 = vadd.f32 %v3500_v16, %v1062_v48  ;;  %v980_v12 = vadd.f32 %v975_v6, %v947_v59  ;;  %v943_v1 = vrot.slane %v935_v11, 5  ;;  %v5044_v25 = vld [vmem:[#allocation35_spill] sm:$0xff] }
 0x1e1   : > { %v927_v41 = vsel %vm906_vm7, %v5037_v56, %v5036_v20  ;;  %2054 = vrot.lane.b32.xlu0 %v2051_v34, %s3081_s0  ;;  %v968_v32 = vmul.f32 %v4145_v7, %v3810_v19  ;;  %v882_v38 = vadd.f32 %v878_v62, %v849_v18  ;;  %v5038_v10 = vstv %s3932_s29 }
 0x1e2   : > { %v2063_v51 = vmul.f32 %v4051_v44, %v5038_v10  ;;  %v2032_v58 = vrot.slane %v2025_v63, 6  ;;  %v2045_v3 = vmul.f32 %v3952_v50, %v3804_v33  ;;  %v1142_v16 = vadd.f32 %v3514_v26, %v1102_v37  ;;  %v5047_v37 = vld [vmem:[#allocation17_spill] sm:$0xff] }
 0x1e3   : > { %v5039_v17 = vrot.slane %v4176_v14, 4  ;;  %v5040_v19 = vrot.slane %v4166_v60, 5  ;;  %v4343_v59 = vmul.f32 %v4039_v46, %v4318_v8  ;;  %v931_v61 = vadd.f32 %v927_v41, %v898_v55  ;;  %v4364_v63 = vpop.permute.xlu1 %1424  ;;  %v4366_v48 = vpop.permute.xlu0 %1535  ;;  %v5045_v55 = vld [vmem:[#allocation31_spill] sm:$0xff] }
 0x1e4   : > { %v959_v11 = vrot.slane %v4099_v23, 5  ;;  %v985_v33 = vmul.f32 %v3952_v50, %v3713_v5  ;;  %v5041_v26 = vstv %s3718_s27  ;;  %v1182_v14 = vadd.f32 %v3528_v40, %v1142_v16  ;;  %v5049_v16 = vld [vmem:[#allocation40_spill] sm:$0xff] }
 0x1e5   : > { %v911_v35 = vsel %vm906_vm7, %v5039_v17, %v910_v54  ;;  %v2013_v21 = vsel %vm939_vm8, %v5040_v19, %v2012_v39  ;;  %2067 = vrot.lane.b32.xlu0 %v2063_v51, %s3082_s30  ;;  %v2076_v60 = vmul.f32 %v3663_v43, %v5041_v26  ;;  %v1009_v18 = vadd.f32 %v3825_v29, %v980_v12  ;;  %v5052_v26 = vld [vmem:[#allocation11_spill] sm:$0xff] }
 0x1e6   : > { %2016 = vrot.lane.b32.xlu1 %v2013_v21, %s3081_s0  ;;  %v976_v23 = vrot.slane %v968_v32, 6  ;;  %v2089_v5 = vmul.f32 %v4051_v44, %v4318_v8  ;;  %v915_v47 = vadd.f32 %v911_v35, %v882_v38  ;;  %v5042_v62 = vrot.slane %v4207_v57, 5 }
 0x1e7   : > { %v5043_v9 = vrot.slane %v4199_v30, 6  ;;  %v2052_v49 = vrot.slane %v2045_v3, 6  ;;  %v1222_v29 = vadd.f32 %v3542_v53, %v1182_v14  ;;  %v1042_v34 = vadd.f32 %v5044_v25, %v1009_v18  ;;  %v4395_v51 = vpop.permute.xlu1 %1464  ;;  %v5053_v14 = vld [vmem:[#allocation42_spill] sm:$0xff] }
 0x1e8   : > { %v944_v54 = vsel %vm939_vm8, %v5042_v62, %v943_v1  ;;  %v2096_v39 = vrot.slane %v4343_v59, 1  ;;  %v4376_v57 = vmul.f32 %v3720_v24, %v5045_v55  ;;  %v5046_v20 = vrot.slane %v3926_v31, 5  ;;  %v5048_v1 = vld [vmem:[#allocation38_spill] sm:$0xff] }
 0x1e9   : > { %v2033_v40 = vsel %vm972_vm9, %v5043_v9, %v2032_v58  ;;  %v992_v41 = vrot.slane %v985_v33, 6  ;;  %2080 = vrot.lane.b32.xlu0 %v2076_v60, %s3082_s30  ;;  %v2109_v53 = vmul.f32 %v3663_v43, %v5045_v55  ;;  %v4386_v30 = vstv %s4320_s24  ;;  %v4397_v58 = vpop.permute.xlu0 %1548  ;;  %s4765_s24 = sld [smem:[#allocation4 + $0x53]] }
 0x1ea   : > { %v960_v56 = vsel %vm939_vm8, %v5046_v20, %v959_v11  ;;  %2036 = vrot.lane.b32.xlu1 %v2033_v40, %s3081_s0  ;;  %v1262_v12 = vadd.f32 %v5047_v37, %v1222_v29  ;;  %v1082_v31 = vadd.f32 %v5048_v1, %v1042_v34  ;;  %v2095_v32 = vrot.slane %v2089_v5, 1  ;;  %v5055_v29 = vld [vmem:[#allocation12_spill] sm:$0xff] }
 0x1eb   : > { %v964_v6 = vadd.f32 %v960_v56, %v931_v61  ;;  %v948_v38 = vadd.f32 %v944_v54, %v915_v47  ;;  %v977_v10 = vsel %vm972_vm9, %v974_v36, %v976_v23  ;;  %v2053_v3 = vsel %vm972_vm9, %v2050_v4, %v2052_v49  ;;  %v5050_v36 = vld [vmem:[#allocation36_spill] sm:$0xff]  ;;  %v4424_v47 = vpop.permute.xlu1 %1504 }
 0x1ec   : > { %v1122_v17 = vadd.f32 %v5049_v16, %v1082_v31  ;;  %v2097_v35 = vsel %vm807_vm4, %v2095_v32, %v2096_v39  ;;  %v2116_v19 = vrot.slane %v4376_v57, 1  ;;  %v4409_v28 = vmul.f32 %v4039_v46, %v4386_v30  ;;  %v5056_v34 = vld [vmem:[#allocation44_spill] sm:$0xff]  ;;  %v5058_v31 = vld [vmem:[#allocation19_spill] sm:$0xff] }
 0x1ed   : > { %v5051_v21 = vrot.slane %v5050_v36, 6  ;;  %2100 = vrot.lane.b32.xlu0 %v2097_v35, %s3082_s30  ;;  %v2129_v52 = vmul.f32 %v4051_v44, %v4386_v30  ;;  %v2148_v4 = vstv %s4353_s28  ;;  %v4420_v11 = vstv %s4355_s3  ;;  %v4426_v62 = vpop.permute.xlu0 %1568  ;;  %s4798_s28 = sld [smem:[#allocation4 + $0x5a]]  ;;  %s4813_s3 = sld [smem:[#allocation4 + $0x30]] }
 0x1ee   : > { %2056 = vrot.lane.b32.xlu1 %v2053_v3, %s3081_s0  ;;  %v1288_v60 = vadd.f32 %v5052_v26, %v1262_v12  ;;  %v1162_v18 = vadd.f32 %v5053_v14, %v1122_v17  ;;  %v2115_v23 = vrot.slane %v2109_v53, 1  ;;  %v981_v5 = vadd.f32 %v977_v10, %v948_v38  ;;  %v5057_v12 = vld [vmem:[#allocation14_spill] sm:$0xff]  ;;  %v5059_v38 = vld [vmem:[#allocation37_spill] sm:$0xff]  ;;  %s2819_s0 = sld [smem:[#allocation4 + $0x3e]] }
 0x1ef   : > { %v993_v61 = vsel %vm972_vm9, %v5051_v21, %v992_v41  ;;  %v5054_v54 = vstv %s3932_s29  ;;  %v2091_v40 = vmul.f32 %v4145_v7, %v4318_v8  ;;  %v4434_v49 = vmul.f32 %v3720_v24, %v2148_v4  ;;  %v4456_v16 = vpop.permute.xlu1 %1537  ;;  %v5062_v26 = vld [vmem:[#allocation21_spill] sm:$0xff]  ;;  %s4736_s29 = sld [smem:[#allocation4 + $0x4c]] }
 0x1f0   : > { %v997_v33 = vadd.f32 %v993_v61, %v964_v6  ;;  %v2064_v9 = vmul.f32 %v4039_v46, %v5054_v54  ;;  %v1202_v20 = vadd.f32 %v5056_v34, %v1162_v18  ;;  %v2117_v56 = vsel %vm807_vm4, %v2115_v23, %v2116_v19  ;;  %v5063_v14 = vld [vmem:[#allocation41_spill] sm:$0xff] }
 0x1f1   : > { %v2136_v41 = vrot.slane %v4409_v28, 2  ;;  %2120 = vrot.lane.b32.xlu0 %v2117_v56, %s3082_s30  ;;  %v2135_v53 = vrot.slane %v2129_v52, 2  ;;  %v2149_v8 = vmul.f32 %v3663_v43, %v2148_v4  ;;  %v2111_v6 = vmul.f32 %v3952_v50, %v5045_v55  ;;  %v4458_v17 = vpop.permute.xlu0 %1588  ;;  %v5061_v52 = vld [vmem:[#allocation15_spill] sm:$0xff] }
 0x1f2   : > { %v1023_v25 = vadd.f32 %v5055_v29, %v997_v33  ;;  %2069 = vrot.lane.b32.xlu1 %v2064_v9, %s3082_s30  ;;  %v4448_v37 = vstv %s4388_s4  ;;  %v1328_v32 = vadd.f32 %v5058_v31, %v1288_v60  ;;  %v1010_v10 = vadd.f32 %v5059_v38, %v981_v5  ;;  %s2854_s4 = sld [smem:[#allocation4 + $0x61]] }
 0x1f3   : > { %v1242_v3 = vadd.f32 %v4111_v27, %v1202_v20  ;;  %v5060_v35 = vstv %s3718_s27  ;;  %v2098_v55 = vrot.slane %v2091_v40, 1  ;;  %v2156_v21 = vrot.slane %v4434_v49, 2  ;;  %v5064_v40 = vld [vmem:[#allocation16_spill] sm:$0xff]  ;;  %v5066_v20 = vld [vmem:[#allocation43_spill] sm:$0xff]  ;;  %s4668_s27 = sld [smem:[#allocation4 + $0x6]] }
 0x1f4   : > { %v1063_v1 = vadd.f32 %v5057_v12, %v1023_v25  ;;  %v2077_v36 = vmul.f32 %v3720_v24, %v5060_v35  ;;  %v4466_v61 = vmul.f32 %v4039_v46, %v4448_v37  ;;  %v1368_v60 = vadd.f32 %v5062_v26, %v1328_v32  ;;  %v5065_v25 = vld [vmem:[#allocation23_spill] sm:$0xff]  ;;  %v5069_v35 = vld [vmem:[#allocation25_spill] sm:$0xff] }
 0x1f5   : > { %v1043_v27 = vadd.f32 %v5063_v14, %v1010_v10  ;;  %v2137_v18 = vsel %vm840_vm5, %v2135_v53, %v2136_v41  ;;  %v2155_v23 = vrot.slane %v2149_v8, 2  ;;  %v2118_v5 = vrot.slane %v2111_v6, 1  ;;  %v5067_v53 = vld [vmem:[#allocation33_spill] sm:$0xff]  ;;  %v4488_v8 = vpop.permute.xlu0 %1608  ;;  %v5068_v10 = vld [vmem:[#allocation18_spill] sm:$0xff] }
 0x1f6   : > { %v1103_v33 = vadd.f32 %v5061_v52, %v1063_v1  ;;  %2082 = vrot.lane.b32.xlu1 %v2077_v36, %s3082_s30  ;;  %2140 = vrot.lane.b32.xlu0 %v2137_v18, %s3082_s30  ;;  %v2169_v54 = vmul.f32 %v4051_v44, %v4448_v37  ;;  %v2189_v9 = vmul.f32 %v3663_v43, %v4420_v11  ;;  %v4486_v1 = vpop.permute.xlu1 %1550  ;;  %v2176_v31 = vrot.slane %v4466_v61, 3  ;;  %v5070_v52 = vld [vmem:[#allocation45_spill] sm:$0xff] }
 0x1f7   : > { %v1408_v34 = vadd.f32 %v5065_v25, %v1368_v60  ;;  %v1083_v56 = vadd.f32 %v5066_v20, %v1043_v27  ;;  %v1275_v12 = vadd.f32 %v5067_v53, %v1242_v3  ;;  %v2099_v6 = vsel %vm807_vm4, %v2096_v39, %v2098_v55  ;;  %v5071_v60 = vld [vmem:[#allocation20_spill] sm:$0xff]  ;;  %v5072_v27 = vld [vmem:[#allocation27_spill] sm:$0xff]  ;;  %v5075_v20 = vld [vmem:[#allocation22_spill] sm:$0xff] }
 0x1f8   : > { %v1143_v29 = vadd.f32 %v5064_v40, %v1103_v33  ;;  %v2131_v32 = vmul.f32 %v4145_v7, %v4386_v30  ;;  %v4498_v38 = vmul.f32 %v3720_v24, %v4420_v11  ;;  %v2157_v59 = vsel %vm840_vm5, %v2155_v23, %v2156_v21  ;;  %v5073_v23 = vld [vmem:[#allocation46_spill] sm:$0xff]  ;;  %v5076_v53 = vld [vmem:[#allocation29_spill] sm:$0xff] }
 0x1f9   : > { %v1448_v36 = vadd.f32 %v5069_v35, %v1408_v34  ;;  %v1123_v33 = vadd.f32 %v5070_v52, %v1083_v56  ;;  %v2119_v39 = vsel %vm807_vm4, %v2116_v19, %v2118_v5  ;;  %v2175_v30 = vrot.slane %v2169_v54, 3  ;;  %v1629_v57 = vpop.permute.xlu0 %1628 }
 0x1fa   : > { %v1183_v3 = vadd.f32 %v5068_v10, %v1143_v29  ;;  %2102 = vrot.lane.b32.xlu1 %v2099_v6, %s3082_s30  ;;  %2160 = vrot.lane.b32.xlu0 %v2157_v59, %s3082_s30  ;;  %v2151_v55 = vmul.f32 %v3952_v50, %v2148_v4  ;;  %v4513_v26 = vstv %s4450_s5  ;;  %v5074_v29 = vld [vmem:[#allocation47_spill] sm:$0xff]  ;;  %v4521_v34 = vpop.permute.xlu1 %1570  ;;  %v2138_v4 = vrot.slane %v2131_v32, 2  ;;  %v5077_v10 = vld [vmem:[#allocation48_spill] sm:$0xff]  ;;  %v5079_v59 = vld [vmem:[#allocation50_spill] sm:$0xff]  ;;  %s173_s5 = sand.u32 1, %s3049_s10  }
 0x1fb   : > { %v1488_v18 = vadd.f32 %v5072_v27, %v1448_v36  ;;  %v1163_v40 = vadd.f32 %v5073_v23, %v1123_v33  ;;  %v1308_v25 = vadd.f32 %v5074_v29, %v1275_v12  ;;  %v2177_v19 = vsel %vm873_vm6, %v2175_v30, %v2176_v31 }
 0x1fc   : > { %v1223_v14 = vadd.f32 %v5071_v60, %v1183_v3  ;;  %v2196_v5 = vrot.slane %v4498_v38, 3  ;;  %v4529_v54 = vmul.f32 %v4039_v46, %v4513_v26  ;;  %v5078_v3 = vld [vmem:[#allocation49_spill] sm:$0xff]  ;;  %v2195_v36 = vrot.slane %v2189_v9, 3 }
 0x1fd   : > { %v1528_v6 = vadd.f32 %v5076_v53, %v1488_v18  ;;  %v1203_v12 = vadd.f32 %v5077_v10, %v1163_v40  ;;  %v1348_v35 = vadd.f32 %v5078_v3, %v1308_v25  ;;  %v2209_v32 = vmul.f32 %v4051_v44, %v4513_v26  ;;  %v4549_v27 = vpop.permute.xlu0 %1648 }
 0x1fe   : > { %v1263_v56 = vadd.f32 %v5075_v20, %v1223_v14  ;;  %2122 = vrot.lane.b32.xlu1 %v2119_v39, %s3082_s30  ;;  %2180 = vrot.lane.b32.xlu0 %v2177_v19, %s3082_s30  ;;  %v2228_v52 = vstv %s4480_s6  ;;  %v2171_v14 = vmul.f32 %v4145_v7, %v4448_v37  ;;  %v4547_v39 = vpop.permute.xlu1 %1590  ;;  %v2139_v9 = vsel %vm840_vm5, %v2136_v41, %v2138_v4  ;;  %s2723_s6 = sshll.u32 %s173_s5, 4 }
 0x1ff   : > { %v1243_v33 = vadd.f32 %v4221_v42, %v1203_v12  ;;  %v1388_v30 = vadd.f32 %v5079_v59, %v1348_v35  ;;  %v1554_v60 = vadd.f32 %v4397_v58, %v1528_v6  ;;  %v2197_v42 = vsel %vm873_vm6, %v2195_v36, %v2196_v5  ;;  %v5080_v58 = vld [vmem:[#allocation13_spill] sm:$0xff] }
 0x200   : > { %v2158_v18 = vrot.slane %v2151_v55, 2  ;;  %v4558_v23 = vmul.f32 %v3720_v24, %v2228_v52  ;;  %v1289_v40 = vadd.f32 %v5080_v58, %v1263_v56  ;;  %v2216_v25 = vrot.slane %v4529_v54, 4  ;;  %v5081_v55 = vld [vmem:[#allocation39_spill] sm:$0xff] }
 0x201   : > { %v1428_v37 = vadd.f32 %v4261_v45, %v1388_v30  ;;  %v1594_v29 = vadd.f32 %v4458_v17, %v1554_v60  ;;  %v2215_v28 = vrot.slane %v2209_v32, 4  ;;  %v2229_v41 = vmul.f32 %v3663_v43, %v2228_v52  ;;  %v1669_v53 = vpop.permute.xlu0 %1668  ;;  %v5083_v32 = vld [vmem:[#allocation26_spill] sm:$0xff] }
 0x202   : > { %2142 = vrot.lane.b32.xlu1 %v2139_v9, %s3082_s30  ;;  %2200 = vrot.lane.b32.xlu0 %v2197_v42, %s3082_s30  ;;  %v4568_v19 = vstv %s4515_s7  ;;  %v1276_v4 = vadd.f32 %v5081_v55, %v1243_v33  ;;  %v2191_v17 = vmul.f32 %v3952_v50, %v4420_v11  ;;  %v4576_v56 = vpop.permute.xlu1 %1610  ;;  %v2159_v43 = vsel %vm840_vm5, %v2156_v21, %v2158_v18  ;;  %s175_s7 = scalar_lea.vmem [#allocation7], %s2723_s6 }
 0x203   : > { %v1468_v20 = vadd.f32 %v4294_v22, %v1428_v37  ;;  %v1634_v45 = vadd.f32 %v1629_v57, %v1594_v29  ;;  %v2178_v6 = vrot.slane %v2171_v14, 3  ;;  %v2236_v10 = vrot.slane %v4558_v23, 4  ;;  %v5082_v22 = vld [vmem:[#allocation24_spill] sm:$0xff] }
 0x204   : > { %v4584_v12 = vmul.f32 %v4039_v46, %v4568_v19  ;;  %v1329_v57 = vadd.f32 %v5082_v22, %v1289_v40  ;;  %v2217_v11 = vsel %vm906_vm7, %v2215_v28, %v2216_v25  ;;  %v2235_v49 = vrot.slane %v2229_v41, 4 }
 0x205   : > { %v1508_v3 = vadd.f32 %v4327_v13, %v1468_v20  ;;  %v1674_v35 = vadd.f32 %v1669_v53, %v1634_v45  ;;  %v2249_v21 = vmul.f32 %v4051_v44, %v4568_v19  ;;  %v4596_v36 = vstv %s4540_s15  ;;  %v1689_v14 = vpop.permute.xlu0 %1688  ;;  %s2863_s15 = sshll.u32 %s3057_s12, 8  ;;  %s3084_s12 = smov [#allocation7]  }
 0x206   : > { %2162 = vrot.lane.b32.xlu1 %v2159_v43, %s3082_s30  ;;  %2220 = vrot.lane.b32.xlu0 %v2217_v11, %s3082_s30  ;;  %v1369_v33 = vadd.f32 %v5083_v32, %v1329_v57  ;;  %v1309_v13 = vadd.f32 %v4259_v2, %v1276_v4  ;;  %v2198_v30 = vrot.slane %v2191_v17, 3  ;;  %v4603_v60 = vpop.permute.xlu1 %1630  ;;  %v2179_v9 = vsel %vm873_vm6, %v2176_v31, %v2178_v6  ;;  %v5084_v2 = vld [vmem:[#allocation28_spill] sm:$0xff]  ;;  %v5087_v11 = vld [vmem:[#allocation34_spill] sm:$0xff] }
 0x207   : > { %v1541_v59 = vadd.f32 %v4366_v48, %v1508_v3  ;;  %v2256_v42 = vrot.slane %v4584_v12, 5  ;;  %v2211_v18 = vmul.f32 %v4145_v7, %v4513_v26  ;;  %v4613_v58 = vmul.f32 %v3720_v24, %v4596_v36  ;;  %v4623_v26 = vld [vmem:[#allocation3 + $0x18] sm:$0xff] }
 0x208   : > { %v1409_v48 = vadd.f32 %v5084_v2, %v1369_v33  ;;  %v1349_v40 = vadd.f32 %v4292_v0, %v1309_v13  ;;  %v2237_v61 = vsel %vm906_vm7, %v2235_v49, %v2236_v10  ;;  %v2255_v31 = vrot.slane %v2249_v21, 5  ;;  %v5085_v0 = vld [vmem:[#allocation30_spill] sm:$0xff] }
 0x209   : > { %v1574_v37 = vadd.f32 %v4426_v62, %v1541_v59  ;;  %v2269_v24 = vmul.f32 %v4623_v26, %v4596_v36  ;;  %v2231_v29 = vmul.f32 %v3952_v50, %v2228_v52  ;;  %v4629_v28 = vstv %s4570_s16  ;;  %v1709_v45 = vpop.permute.xlu0 %1708  ;;  %s2625_s16 = sshll.u32 %s175_s7, 4  ;;  %s4877_s16 = int_to_ptr.vmem [resolvable:$true] %s2625_s16 }
 0x20a   : > { %2182 = vrot.lane.b32.xlu1 %v2179_v9, %s3082_s30  ;;  %2240 = vrot.lane.b32.xlu0 %v2237_v61, %s3082_s30  ;;  %v1449_v62 = vadd.f32 %v5085_v0, %v1409_v48  ;;  %v1389_v41 = vadd.f32 %v4325_v15, %v1349_v40  ;;  %v2199_v4 = vsel %vm873_vm6, %v2196_v5, %v2198_v30  ;;  %v1651_v20 = vpop.permute.xlu1 %1650  ;;  %v2218_v52 = vrot.slane %v2211_v18, 4  ;;  %v5086_v15 = vld [vmem:[#allocation32_spill] sm:$0xff]  ;;  %v4663_v30 = vld [vmem:[#allocation3 + $0x20] sm:$0xff] }
 0x20b   : > { %v1614_v55 = vadd.f32 %v4488_v8, %v1574_v37  ;;  %v2257_v17 = vsel %vm939_vm8, %v2255_v31, %v2256_v42  ;;  %v2276_v53 = vrot.slane %v4613_v58, 5  ;;  %v4643_v43 = vmul.f32 %v4039_v46, %v4629_v28 }
 0x20c   : > { %v1489_v8 = vadd.f32 %v5086_v15, %v1449_v62  ;;  %v1429_v38 = vadd.f32 %v4364_v63, %v1389_v41  ;;  %v1714_v5 = vadd.f32 %v1709_v45, %v1674_v35  ;;  %v2275_v22 = vrot.slane %v2269_v24, 5 }
 0x20d   : > { %v1654_v6 = vadd.f32 %v4549_v27, %v1614_v55  ;;  %v2289_v57 = vmul.f32 %v4051_v44, %v4629_v28  ;;  %v2308_v3 = vstv %s4598_s18  ;;  %v2238_v33 = vrot.slane %v2231_v29, 4  ;;  %v1729_v63 = vpop.permute.xlu0 %1728 }
 0x20e   : > { %2202 = vrot.lane.b32.xlu1 %v2199_v4, %s3082_s30  ;;  %2260 = vrot.lane.b32.xlu0 %v2257_v17, %s3082_s30  ;;  %v1529_v49 = vadd.f32 %v5087_v11, %v1489_v8  ;;  %v1469_v21 = vadd.f32 %v4395_v51, %v1429_v38  ;;  %v1671_v13 = vpop.permute.xlu1 %1670  ;;  %v2219_v27 = vsel %vm906_vm7, %v2216_v25, %v2218_v52  ;;  %v2296_v25 = vrot.slane %v4643_v43, 6 }
 0x20f   : > { %v1694_v32 = vadd.f32 %v1689_v14, %v1654_v6  ;;  %v2277_v35 = vsel %vm939_vm8, %v2275_v22, %v2276_v53  ;;  %v2251_v59 = vmul.f32 %v4145_v7, %v4568_v19  ;;  %v4666_v9 = vmul.f32 %v4663_v30, %v2308_v3 }
 0x210   : > { %v1509_v51 = vadd.f32 %v4424_v47, %v1469_v21  ;;  %v1555_v54 = vadd.f32 %v4486_v1, %v1529_v49  ;;  %v2295_v2 = vrot.slane %v2289_v57, 6  ;;  %v2309_v48 = vmul.f32 %v4623_v26, %v2308_v3 }
 0x211   : > { %v1734_v14 = vadd.f32 %v1729_v63, %v1694_v32  ;;  %v1749_v47 = vpop.permute.xlu0 %1748  ;;  %v2239_v1 = vsel %vm906_vm7, %v2236_v10, %v2238_v33  ;;  %v2258_v37 = vrot.slane %v2251_v59, 5  ;;  %v2316_v61 = vrot.slane %v4666_v9, 6 }
 0x212   : > { %2222 = vrot.lane.b32.xlu1 %v2219_v27, %s3082_s30  ;;  %2280 = vrot.lane.b32.xlu0 %v2277_v35, %s3082_s30  ;;  %v1542_v19 = vadd.f32 %v4456_v16, %v1509_v51  ;;  %v1595_v18 = vadd.f32 %v4547_v39, %v1555_v54  ;;  %v1691_v40 = vpop.permute.xlu1 %1690  ;;  %v2271_v16 = vmul.f32 %v3952_v50, %v4596_v36  ;;  %v2315_v0 = vrot.slane %v2309_v48, 6 }
 0x213   : > { %v1754_v24 = vadd.f32 %v1749_v47, %v1714_v5  ;;  %v2297_v29 = vsel %vm972_vm9, %v2295_v2, %v2296_v25  ;;  %v2291_v55 = vmul.f32 %v4145_v7, %v4629_v28  ;;  %v2341_v12 = vstv %s4678_s20  ;;  %s4875_s20 = scalar_lea.hbm %s4927_s2, %s2863_s15 }
 0x214   : > { %v1575_v39 = vadd.f32 %v4521_v34, %v1542_v19  ;;  %v1635_v31 = vadd.f32 %v4603_v60, %v1595_v18  ;;  %v2259_v34 = vsel %vm939_vm8, %v2256_v42, %v2258_v37  ;;  %v2278_v41 = vrot.slane %v2271_v16, 5 }
 0x215   : > { %v1769_v36 = vpop.permute.xlu0 %1768  ;;  %v2328_v60 = vstv %s4668_s27  ;;  %v2298_v28 = vrot.slane %v2291_v55, 6  ;;  %v2311_v8 = vmul.f32 %v3952_v50, %v2308_v3  ;;  %v2342_v58 = vmul.f32 %v4623_v26, %v2341_v12 }
 0x216   : > { %2242 = vrot.lane.b32.xlu1 %v2239_v1, %s3082_s30  ;;  %2300 = vrot.lane.b32.xlu0 %v2297_v29, %s3082_s30  ;;  %v1615_v23 = vadd.f32 %v4576_v56, %v1575_v39  ;;  %v1675_v10 = vadd.f32 %v1671_v13, %v1635_v31  ;;  %v1711_v62 = vpop.permute.xlu1 %1710  ;;  %v1774_v17 = vadd.f32 %v1769_v36, %v1734_v14  ;;  %v2394_v35 = vstv %s2777_s25  ;;  %s2987_s25 = sshll.u32 %s3084_s12, 4  ;;  %s2988_s25 = int_to_ptr.vmem [resolvable:$false] %s2987_s25 }
 0x217   : > { %v2317_v56 = vsel %vm972_vm9, %v2315_v0, %v2316_v61  ;;  %v2329_v15 = vmul.f32 %v4051_v44, %v2328_v60  ;;  %v2279_v5 = vsel %vm939_vm8, %v2276_v53, %v2278_v41  ;;  %v2299_v3 = vsel %vm972_vm9, %v2296_v25, %v2298_v28  ;;  %p2990_p0 = scmp.lt.s32.totalorder %s4877_s16, %s2988_s25 }
 0x218   : > { %v1655_v4 = vadd.f32 %v1651_v20, %v1615_v23  ;;  %v1715_v45 = vadd.f32 %v1711_v62, %v1675_v10  ;;  %v2354_v20 = vstv %s4686_s23  ;;  %v2318_v49 = vrot.slane %v2311_v8, 6  ;;  %s4879_s23 = scalar_lea.sflag [#allocation5], %s173_s5 }
 0x219   : > { %v1789_v43 = vpop.permute.xlu0 %1788  ;;  %v4711_v22 = vmul.f32 %v4039_v46, %v2354_v20  ;;  %v2355_v57 = vmul.f32 %v4051_v44, %v2354_v20  ;;  %v2374_v53 = vstv %s2819_s0  ;;  %v4729_v54 = vmul.f32 %v4039_v46, %v2394_v35  ;;  %s2983_s0 = scalar_lea.vmem %s4877_s16, 256 }
 0x21a   : > { %2262 = vrot.lane.b32.xlu1 %v2259_v34, %s3082_s30  ;;  %2320 = vrot.lane.b32.xlu0 %v2317_v56, %s3082_s30  ;;  %v1695_v52 = vadd.f32 %v1691_v40, %v1655_v4  ;;  %v1731_v42 = vpop.permute.xlu1 %1730  ;;  %v1794_v6 = vadd.f32 %v1789_v43, %v1754_v24  ;;  %v4722_v13 = vmul.f32 %v4663_v30, %v2374_v53  ;;  %v2414_v40 = vstv %s2826_s17  ;;  %p2984_p10 = scmp.ne.s32.totalorder %s4877_s16, %s2983_s0 }
 0x21b   : > { %v2362_v33 = vrot.slane %v4711_v22, 1  ;;  %v2361_v63 = vrot.slane %v2355_v57, 1  ;;  %v2375_v27 = vmul.f32 %v4623_v26, %v2374_v53  ;;  %v2319_v51 = vsel %vm972_vm9, %v2316_v61, %v2318_v49 }
 0x21c   : > { %v1735_v38 = vadd.f32 %v1731_v42, %v1695_v52  ;;  %v2382_v18 = vrot.slane %v4722_v13, 1  ;;  %v2395_v48 = vmul.f32 %v4051_v44, %v2394_v35  ;;  %v2330_v37 = vmul.f32 %v4039_v46, %v2328_v60  ;;  %v4753_v60 = vld [vmem:[#allocation3 + $0x28] sm:$0x3f]  ;;  %p2985_p11 = pnand %p2984_p10, %p3142_p4 }
 0x21d   : > { %v1802_v50 = vpop.permute.xlu0 %1801  ;;  %v2363_v19 = vsel %vm807_vm4, %v2361_v63, %v2362_v33  ;;  %v2381_v2 = vrot.slane %v2375_v27, 1  ;;  %v2357_v61 = vmul.f32 %v4145_v7, %v2354_v20  ;;  %v4741_v16 = vmul.f32 %v4663_v30, %v2414_v40  ;;  %v4786_v27 = vld [vmem:[#allocation3 + $0x8] sm:$0xff] }
 0x21e   : > { %2282 = vrot.lane.b32.xlu1 %v2279_v5, %s3082_s30  ;;  %2333 = vrot.lane.b32.xlu0 %v2329_v15, %s3083_s1  ;;  %v1751_v11 = vpop.permute.xlu1 %1750  ;;  %v1807_v32 = vadd.f32 %v1802_v50, %v1774_v17  ;;  %v2402_v29 = vrot.slane %v4729_v54, 2  ;;  %v2401_v23 = vrot.slane %v2395_v48, 2  ;;  %v2415_v10 = vmul.f32 %v4623_v26, %v2414_v40  ;;  %p2986_p13 = pneg %p2985_p11 }
 0x21f   : > { %v1755_v21 = vadd.f32 %v1751_v11, %v1715_v45  ;;  %v2383_v24 = vsel %vm807_vm4, %v2381_v2, %v2382_v18  ;;  %v2434_v0 = vstv %s2784_s26  ;;  %v2343_v34 = vmul.f32 %v4663_v30, %v2341_v12 }
 0x220   : > { %v2364_v41 = vrot.slane %v2357_v61, 1  ;;  %v2377_v55 = vmul.f32 %v4753_v60, %v2374_v53  ;;  %v4757_v4 = vmul.f32 %v4039_v46, %v2434_v0  ;;  %v2403_v56 = vsel %vm840_vm5, %v2401_v23, %v2402_v29 }
 0x221   : > { %v1815_v9 = vpop.permute.xlu0 %1814  ;;  %v2422_v52 = vrot.slane %v4741_v16, 2  ;;  %v2435_v12 = vmul.f32 %v4051_v44, %v2434_v0  ;;  %v2421_v42 = vrot.slane %v2415_v10, 2  ;;  %v2454_v43 = vstv %s4736_s29 }
 0x222   : > { %2302 = vrot.lane.b32.xlu1 %v2299_v3, %s3082_s30  ;;  %2346 = vrot.lane.b32.xlu0 %v2342_v58, %s3083_s1  ;;  %v1771_v59 = vpop.permute.xlu1 %1770  ;;  %v1820_v25 = vadd.f32 %v1815_v9, %v1794_v6  ;;  %v2365_v28 = vsel %vm807_vm4, %v2362_v33, %v2364_v41  ;;  %v2384_v8 = vrot.slane %v2377_v55, 1  ;;  %v2442_v20 = vrot.slane %v4757_v4, 3  ;;  %v4793_v9 = vld [vmem:[#allocation3] sm:$0xff] }
 0x223   : > { %v1775_v14 = vadd.f32 %v1771_v59, %v1735_v38  ;;  %v2397_v38 = vmul.f32 %v4145_v7, %v2394_v35  ;;  %v2423_v22 = vsel %vm840_vm5, %v2421_v42, %v2422_v52  ;;  %v4772_v44 = vmul.f32 %v4663_v30, %v2454_v43 }
 0x224   : > { %v2441_v57 = vrot.slane %v2435_v12, 3  ;;  %v2455_v11 = vmul.f32 %v4623_v26, %v2454_v43  ;;  %v2474_v50 = vstv %s4748_s8  ;;  %v2385_v49 = vsel %vm807_vm4, %v2382_v18, %v2384_v8 }
 0x225   : > { %v1835_v1 = vpop.permute.xlu0 %1834  ;;  %v2462_v63 = vrot.slane %v4772_v44, 3  ;;  %v4789_v35 = vmul.f32 %v4786_v27, %v2474_v50  ;;  %v2437_v54 = vmul.f32 %v4145_v7, %v2434_v0  ;;  %v2457_v23 = vmul.f32 %v4753_v60, %v2454_v43 }
 0x226   : > { %2322 = vrot.lane.b32.xlu1 %v2319_v51, %s3082_s30  ;;  %2366 = vrot.lane.b32.xlu0 %v2363_v19, %s3083_s1  ;;  %v1791_v47 = vpop.permute.xlu1 %1790  ;;  %v1840_v31 = vadd.f32 %v1835_v1, %v1807_v32  ;;  %v2443_v53 = vsel %vm873_vm6, %v2441_v57, %v2442_v20  ;;  %v2417_v32 = vmul.f32 %v4753_v60, %v2414_v40  ;;  %s4783_s30 = sld [smem:[#allocation4 + $0x29]]  ;;  %v2461_v59 = vrot.slane %v2455_v11, 3 }
 0x227   : > { %v1795_v39 = vadd.f32 %v1791_v47, %v1755_v21  ;;  %v2404_v21 = vrot.slane %v2397_v38, 2  ;;  %v2475_v51 = vmul.f32 %v4793_v9, %v2474_v50  ;;  %v2444_v61 = vrot.slane %v2437_v54, 3 }
 0x228   : > { %v2424_v2 = vrot.slane %v2417_v32, 2  ;;  %v2463_v1 = vsel %vm873_vm6, %v2461_v59, %v2462_v63  ;;  %v2464_v43 = vrot.slane %v2457_v23, 3 }
 0x229   : > { %v1855_v36 = vpop.permute.xlu0 %1854  ;;  %v2405_v18 = vsel %vm840_vm5, %v2402_v29, %v2404_v21  ;;  %v2481_v7 = vrot.slane %v2475_v51, 4  ;;  %v2445_v42 = vsel %vm873_vm6, %v2442_v20, %v2444_v61 }
 0x22a   : > { %2335 = vrot.lane.b32.xlu1 %v2330_v37, %s3083_s1  ;;  %2386 = vrot.lane.b32.xlu0 %v2383_v24, %s3083_s1  ;;  %v1804_v62 = vpop.permute.xlu1 %1803  ;;  %v1860_v17 = vadd.f32 %v1855_v36, %v1820_v25  ;;  %v2482_v37 = vrot.slane %v4789_v35, 4  ;;  %v2425_v24 = vsel %vm840_vm5, %v2422_v52, %v2424_v2  ;;  %v2465_v44 = vsel %vm873_vm6, %v2462_v63, %v2464_v43 }
 0x22b   : > { %v1808_v45 = vadd.f32 %v1804_v62, %v1775_v14  ;;  %v2494_v14 = vstv %s4765_s24 }
 0x22c   : > { %v4802_v48 = vmul.f32 %v4663_v30, %v2494_v14  ;;  %v2495_v16 = vmul.f32 %v4623_v26, %v2494_v14  ;;  %v2514_v10 = vstv %s4783_s30  ;;  %v2483_v36 = vsel %vm906_vm7, %v2481_v7, %v2482_v37 }
 0x22d   : > { %v1875_v46 = vpop.permute.xlu0 %1874  ;;  %v2515_v55 = vmul.f32 %v4793_v9, %v2514_v10  ;;  %v2497_v11 = vmul.f32 %v4753_v60, %v2494_v14 }
 0x22e   : > { %2348 = vrot.lane.b32.xlu1 %v2343_v34, %s3083_s1  ;;  %2406 = vrot.lane.b32.xlu0 %v2403_v56, %s3083_s1  ;;  %v1817_v15 = vpop.permute.xlu1 %1816  ;;  %v1880_v5 = vadd.f32 %v1875_v46, %v1840_v31  ;;  %v2502_v29 = vrot.slane %v4802_v48, 4  ;;  %v4817_v34 = vmul.f32 %v4786_v27, %v2514_v10  ;;  %v2501_v41 = vrot.slane %v2495_v16, 4 }
 0x22f   : > { %v1821_v6 = vadd.f32 %v1817_v15, %v1795_v39  ;;  %v2534_v56 = vstv %s4798_s28  ;;  %v2521_v4 = vrot.slane %v2515_v55, 5  ;;  %v2504_v51 = vrot.slane %v2497_v11, 4 }
 0x230   : > { %v4830_v15 = vmul.f32 %v4663_v30, %v2534_v56  ;;  %v2503_v8 = vsel %vm906_vm7, %v2501_v41, %v2502_v29  ;;  %v2522_v38 = vrot.slane %v4817_v34, 5 }
 0x231   : > { %v1895_v58 = vpop.permute.xlu0 %1894 }
 0x232   : > { %2368 = vrot.lane.b32.xlu1 %v2365_v28, %s3083_s1  ;;  %2426 = vrot.lane.b32.xlu0 %v2423_v22, %s3083_s1  ;;  %v1837_v3 = vpop.permute.xlu1 %1836  ;;  %v1900_v13 = vadd.f32 %v1895_v58, %v1860_v17  ;;  %v2542_v57 = vrot.slane %v4830_v15, 5 }
 0x233   : > { %v1841_v33 = vadd.f32 %v1837_v3, %v1808_v45  ;;  %v4822_v45 = vld [vmem:[#allocation3 + $0x10] sm:$0x3f] }
 0x234   : > { %v2477_v17 = vmul.f32 %v4822_v45, %v2474_v50  ;;  %v2554_v50 = vstv %s4813_s3  ;;  %v2517_v54 = vmul.f32 %v4822_v45, %v2514_v10 }
 0x235   : > { %v1915_v19 = vpop.permute.xlu0 %1914  ;;  %v2555_v32 = vmul.f32 %v4793_v9, %v2554_v50 }
 0x236   : > { %2388 = vrot.lane.b32.xlu1 %v2385_v49, %s3083_s1  ;;  %2446 = vrot.lane.b32.xlu0 %v2443_v53, %s3083_s1  ;;  %v1857_v25 = vpop.permute.xlu1 %1856  ;;  %v1920_v47 = vadd.f32 %v1915_v19, %v1880_v5  ;;  %v2484_v5 = vrot.slane %v2477_v17, 4  ;;  %v2523_v49 = vsel %vm939_vm8, %v2521_v4, %v2522_v38  ;;  %v2556_v53 = vmul.f32 %v4786_v27, %v2554_v50 }
 0x237   : > { %v1861_v40 = vadd.f32 %v1857_v25, %v1821_v6  ;;  %v2535_v6 = vmul.f32 %v4623_v26, %v2534_v56  ;;  %v2561_v9 = vrot.slane %v2555_v32, 6 }
 0x238   : > { %v2485_v35 = vsel %vm906_vm7, %v2482_v37, %v2484_v5  ;;  %v2562_v27 = vrot.slane %v2556_v53, 6 }
 0x239   : > { %v1935_v31 = vpop.permute.xlu0 %1934  ;;  %v2541_v21 = vrot.slane %v2535_v6, 5 }
 0x23a   : > { %2408 = vrot.lane.b32.xlu1 %v2405_v18, %s3083_s1  ;;  %2466 = vrot.lane.b32.xlu0 %v2463_v1, %s3083_s1  ;;  %v1877_v39 = vpop.permute.xlu1 %1876  ;;  %v1940_v62 = vadd.f32 %v1935_v31, %v1900_v13  ;;  %v2537_v1 = vmul.f32 %v4753_v60, %v2534_v56  ;;  %v2563_v61 = vsel %vm972_vm9, %v2561_v9, %v2562_v27 }
 0x23b   : > { %v1881_v0 = vadd.f32 %v1877_v39, %v1841_v33  ;;  %v2574_v33 = vstv %s2854_s4  ;;  %v2543_v59 = vsel %vm939_vm8, %v2541_v21, %v2542_v57 }
 0x23c   : > { %v2576_v19 = vmul.f32 %v4663_v30, %v2574_v33  ;;  %v2575_v18 = vmul.f32 %v4623_v26, %v2574_v33  ;;  %v2577_v34 = vmul.f32 %v4753_v60, %v2574_v33 }
 0x23d   : > { %v1955_v12 = vpop.permute.xlu0 %1954 }
 0x23e   : > { %2428 = vrot.lane.b32.xlu1 %v2425_v24, %s3083_s1  ;;  %2486 = vrot.lane.b32.xlu0 %v2483_v36, %s3083_s1  ;;  %v1897_v52 = vpop.permute.xlu1 %1896  ;;  %v1960_v28 = vadd.f32 %v1955_v12, %v1920_v47  ;;  %v2524_v47 = vrot.slane %v2517_v54, 5  ;;  %v2582_v16 = vrot.slane %v2576_v19, 6  ;;  %v2581_v30 = vrot.slane %v2575_v18, 6 }
 0x23f   : > { %v1901_v46 = vadd.f32 %v1897_v52, %v1861_v40  ;;  %v2505_v40 = vsel %vm906_vm7, %v2502_v29, %v2504_v51  ;;  %v2557_v24 = vmul.f32 %v4822_v45, %v2554_v50  ;;  %v2584_v15 = vrot.slane %v2577_v34, 6 }
 0x240   : > { %v2525_v26 = vsel %vm939_vm8, %v2522_v38, %v2524_v47  ;;  %v2583_v10 = vsel %vm972_vm9, %v2581_v30, %v2582_v16 }
 0x241   : > { %v1975_v22 = vpop.permute.xlu0 %1974  ;;  %v2564_v56 = vrot.slane %v2557_v24, 6  ;;  %v2585_v38 = vsel %vm972_vm9, %v2582_v16, %v2584_v15 }
 0x242   : > { %2448 = vrot.lane.b32.xlu1 %v2445_v42, %s3083_s1  ;;  %2506 = vrot.lane.b32.xlu0 %v2503_v8, %s3083_s1  ;;  %v1917_v20 = vpop.permute.xlu1 %1916  ;;  %v1980_v58 = vadd.f32 %v1975_v22, %v1940_v62 }
 0x243   : > { %v1921_v3 = vadd.f32 %v1917_v20, %v1881_v0  ;;  %v2544_v0 = vrot.slane %v2537_v1, 5  ;;  %v2565_v43 = vsel %vm972_vm9, %v2562_v27, %v2564_v56 }
 0x245   : > { %v1995_v63 = vpop.permute.xlu0 %1994  ;;  %v2545_v17 = vsel %vm939_vm8, %v2542_v57, %v2544_v0 }
 0x246   : > { %2468 = vrot.lane.b32.xlu1 %v2465_v44, %s3083_s1  ;;  %2526 = vrot.lane.b32.xlu0 %v2523_v49, %s3083_s1  ;;  %v1937_v13 = vpop.permute.xlu1 %1936  ;;  %v2000_v25 = vadd.f32 %v1995_v63, %v1960_v28 }
 0x247   : > { %v1941_v14 = vadd.f32 %v1937_v13, %v1901_v46 }
 0x249   : > { %v2015_v48 = vpop.permute.xlu0 %2014 }
 0x24a   : > { %2488 = vrot.lane.b32.xlu1 %v2485_v35, %s3083_s1  ;;  %2546 = vrot.lane.b32.xlu0 %v2543_v59, %s3083_s1  ;;  %v1957_v2 = vpop.permute.xlu1 %1956  ;;  %v2020_v7 = vadd.f32 %v2015_v48, %v1980_v58 }
 0x24b   : > { %v1961_v37 = vadd.f32 %v1957_v2, %v1921_v3 }
 0x24d   : > { %v2035_v31 = vpop.permute.xlu0 %2034 }
 0x24e   : > { %2508 = vrot.lane.b32.xlu1 %v2505_v40, %s3083_s1  ;;  %2566 = vrot.lane.b32.xlu0 %v2563_v61, %s3083_s1  ;;  %v1977_v39 = vpop.permute.xlu1 %1976  ;;  %v2040_v23 = vadd.f32 %v2035_v31, %v2000_v25 }
 0x24f   : > { %v1981_v29 = vadd.f32 %v1977_v39, %v1941_v14 }
 0x252   : > { %2528 = vrot.lane.b32.xlu1 %v2525_v26, %s3083_s1  ;;  %2586 = vrot.lane.b32.xlu0 %v2583_v10, %s3083_s1  ;;  %v1997_v62 = vpop.permute.xlu1 %1996 }
 0x253   : > { %v2055_v36 = vpop.permute.xlu0 %2054  ;;  %v2001_v41 = vadd.f32 %v1997_v62, %v1961_v37 }
 0x254   : > { %v2060_v55 = vadd.f32 %v2055_v36, %v2020_v7 }
 0x256   : > { %2548 = vrot.lane.b32.xlu1 %v2545_v17, %s3083_s1 }
 0x257   : > { %v2068_v52 = vpop.permute.xlu0 %2067 }
 0x258   : > { %v2017_v45 = vpop.permute.xlu1 %2016  ;;  %v2073_v42 = vadd.f32 %v2068_v52, %v2040_v23 }
 0x259   : > { %v2021_v12 = vadd.f32 %v2017_v45, %v1981_v29 }
 0x25a   : > { %2568 = vrot.lane.b32.xlu1 %v2565_v43, %s3083_s1 }
 0x25b   : > { %v2081_v28 = vpop.permute.xlu0 %2080 }
 0x25c   : > { %v2037_v46 = vpop.permute.xlu1 %2036  ;;  %v2086_v60 = vadd.f32 %v2081_v28, %v2060_v55 }
 0x25d   : > { %v2041_v8 = vadd.f32 %v2037_v46, %v2001_v41 }
 0x25e   : > { %2588 = vrot.lane.b32.xlu1 %v2585_v38, %s3083_s1  ;;  %s2989_s1 = scalar_lea.vmem %s2988_s25, 512 }
 0x25f   : > { %v2101_v4 = vpop.permute.xlu0 %2100  ;;  %p2991_p1 = scmp.lt.s32.totalorder %s2989_s1, %s2983_s0 }
 0x260   : > { %v2057_v6 = vpop.permute.xlu1 %2056  ;;  %v2106_v20 = vadd.f32 %v2101_v4, %v2073_v42 }
 0x261   : > { %v2061_v5 = vadd.f32 %v2057_v6, %v2021_v12  ;;  %p2992_p2 = por %p2991_p1, %p2990_p0 }
 0x263   : > { %v2121_v44 = vpop.permute.xlu0 %2120  ;;  %p2993_p3 = pnand %p2992_p2, %p2986_p13 }
 0x264   : > { %v2070_v22 = vpop.permute.xlu1 %2069  ;;  %v2126_v11 = vadd.f32 %v2121_v44, %v2086_v60 }
 0x265   : > { %v2074_v57 = vadd.f32 %v2070_v22, %v2041_v8 }
 0x268   : > { %v2083_v50 = vpop.permute.xlu1 %2082  ;;  %v2141_v3 = vpop.permute.xlu0 %2140 }
 0x269   : > { %v2087_v58 = vadd.f32 %v2083_v50, %v2061_v5  ;;  %v2146_v49 = vadd.f32 %v2141_v3, %v2106_v20 }
 0x26c   : > { %v2103_v53 = vpop.permute.xlu1 %2102  ;;  %v2161_v21 = vpop.permute.xlu0 %2160 }
 0x26d   : > { %v2107_v32 = vadd.f32 %v2103_v53, %v2074_v57  ;;  %v2166_v33 = vadd.f32 %v2161_v21, %v2126_v11 }
 0x270   : > { %v2123_v13 = vpop.permute.xlu1 %2122  ;;  %v2181_v63 = vpop.permute.xlu0 %2180 }
 0x271   : > { %v2127_v35 = vadd.f32 %v2123_v13, %v2087_v58  ;;  %v2186_v59 = vadd.f32 %v2181_v63, %v2146_v49 }
 0x274   : > { %v2143_v51 = vpop.permute.xlu1 %2142  ;;  %v2201_v54 = vpop.permute.xlu0 %2200 }
 0x275   : > { %v2147_v14 = vadd.f32 %v2143_v51, %v2107_v32  ;;  %v2206_v12 = vadd.f32 %v2201_v54, %v2166_v33 }
 0x278   : > { %v2163_v25 = vpop.permute.xlu1 %2162  ;;  %v2221_v27 = vpop.permute.xlu0 %2220 }
 0x279   : > { %v2167_v19 = vadd.f32 %v2163_v25, %v2127_v35  ;;  %v2226_v42 = vadd.f32 %v2221_v27, %v2186_v59 }
 0x27c   : > { %v2183_v9 = vpop.permute.xlu1 %2182  ;;  %v2241_v18 = vpop.permute.xlu0 %2240 }
 0x27d   : > { %v2187_v2 = vadd.f32 %v2183_v9, %v2147_v14  ;;  %v2246_v43 = vadd.f32 %v2241_v18, %v2206_v12 }
 0x280   : > { %v2203_v48 = vpop.permute.xlu1 %2202  ;;  %v2261_v40 = vpop.permute.xlu0 %2260 }
 0x281   : > { %v2266_v28 = vadd.f32 %v2261_v40, %v2226_v42  ;;  %v2207_v50 = vadd.f32 %v2203_v48, %v2167_v19 }
 0x284   : > { %v2223_v47 = vpop.permute.xlu1 %2222  ;;  %v2281_v1 = vpop.permute.xlu0 %2280 }
 0x285   : > { %v2286_v8 = vadd.f32 %v2281_v1, %v2246_v43  ;;  %v2227_v49 = vadd.f32 %v2223_v47, %v2187_v2 }
 0x288   : > { %v2243_v37 = vpop.permute.xlu1 %2242  ;;  %v2301_v7 = vpop.permute.xlu0 %2300 }
 0x289   : > { %v2306_v60 = vadd.f32 %v2301_v7, %v2266_v28  ;;  %v2247_v53 = vadd.f32 %v2243_v37, %v2207_v50 }
 0x28c   : > { %v2263_v61 = vpop.permute.xlu1 %2262  ;;  %v2321_v16 = vpop.permute.xlu0 %2320 }
 0x28d   : > { %v2326_v38 = vadd.f32 %v2321_v16, %v2286_v8  ;;  %v2267_v63 = vadd.f32 %v2263_v61, %v2227_v49 }
 0x290   : > { %v2283_v30 = vpop.permute.xlu1 %2282  ;;  %v2334_v39 = vpop.permute.xlu0 %2333 }
 0x291   : > { %v2339_v5 = vadd.f32 %v2334_v39, %v2306_v60  ;;  %v2287_v35 = vadd.f32 %v2283_v30, %v2247_v53 }
 0x294   : > { %v2303_v31 = vpop.permute.xlu1 %2302  ;;  %v2347_v26 = vpop.permute.xlu0 %2346 }
 0x295   : > { %v2352_v20 = vadd.f32 %v2347_v26, %v2326_v38  ;;  %v2307_v54 = vadd.f32 %v2303_v31, %v2267_v63 }
 0x298   : > { %v2323_v24 = vpop.permute.xlu1 %2322  ;;  %v2367_v29 = vpop.permute.xlu0 %2366 }
 0x299   : > { %v2372_v22 = vadd.f32 %v2367_v29, %v2339_v5  ;;  %v2327_v14 = vadd.f32 %v2323_v24, %v2287_v35 }
 0x29c   : > { %v2336_v23 = vpop.permute.xlu1 %2335  ;;  %v2387_v10 = vpop.permute.xlu0 %2386 }
 0x29d   : > { %v2392_v44 = vadd.f32 %v2387_v10, %v2352_v20  ;;  %v2340_v40 = vadd.f32 %v2336_v23, %v2307_v54 }
 0x2a0   : > { %v2349_v0 = vpop.permute.xlu1 %2348  ;;  %v2407_v62 = vpop.permute.xlu0 %2406 }
 0x2a1   : > { %v2412_v3 = vadd.f32 %v2407_v62, %v2372_v22  ;;  %v2353_v19 = vadd.f32 %v2349_v0, %v2327_v14 }
 0x2a4   : > { %v2369_v36 = vpop.permute.xlu1 %2368  ;;  %v2427_v34 = vpop.permute.xlu0 %2426 }
 0x2a5   : > { %v2432_v58 = vadd.f32 %v2427_v34, %v2392_v44  ;;  %v2373_v2 = vadd.f32 %v2369_v36, %v2340_v40 }
 0x2a8   : > { %v2389_v41 = vpop.permute.xlu1 %2388  ;;  %v2447_v55 = vpop.permute.xlu0 %2446 }
 0x2a9   : > { %v2452_v21 = vadd.f32 %v2447_v55, %v2412_v3  ;;  %v2393_v47 = vadd.f32 %v2389_v41, %v2353_v19 }
 0x2ac   : > { %v2409_v17 = vpop.permute.xlu1 %2408  ;;  %v2467_v56 = vpop.permute.xlu0 %2466 }
 0x2ad   : > { %v2472_v32 = vadd.f32 %v2467_v56, %v2432_v58  ;;  %v2413_v16 = vadd.f32 %v2409_v17, %v2373_v2 }
 0x2b0   : > { %v2429_v45 = vpop.permute.xlu1 %2428  ;;  %v2487_v52 = vpop.permute.xlu0 %2486 }
 0x2b1   : > { %v2492_v59 = vadd.f32 %v2487_v52, %v2452_v21  ;;  %v2433_v39 = vadd.f32 %v2429_v45, %v2393_v47 }
 0x2b4   : > { %v2449_v15 = vpop.permute.xlu1 %2448  ;;  %v2507_v46 = vpop.permute.xlu0 %2506 }
 0x2b5   : > { %v2512_v51 = vadd.f32 %v2507_v46, %v2472_v32  ;;  %v2453_v30 = vadd.f32 %v2449_v15, %v2413_v16 }
 0x2b8   : > { %v2469_v6 = vpop.permute.xlu1 %2468  ;;  %v2527_v4 = vpop.permute.xlu0 %2526 }
 0x2b9   : > { %v2532_v25 = vadd.f32 %v2527_v4, %v2492_v59  ;;  %v2473_v26 = vadd.f32 %v2469_v6, %v2433_v39 }
 0x2bc   : > { %v2489_v57 = vpop.permute.xlu1 %2488  ;;  %v2547_v11 = vpop.permute.xlu0 %2546 }
 0x2bd   : > { %v2552_v27 = vadd.f32 %v2547_v11, %v2512_v51  ;;  %v2493_v24 = vadd.f32 %v2489_v57, %v2453_v30 }
 0x2c0   : > { %v2509_v33 = vpop.permute.xlu1 %2508  ;;  %v2567_v13 = vpop.permute.xlu0 %2566 }
 0x2c1   : > { %v2572_v48 = vadd.f32 %v2567_v13, %v2532_v25  ;;  %v2513_v29 = vadd.f32 %v2509_v33, %v2473_v26 }
 0x2c4   : > { %v2529_v9 = vpop.permute.xlu1 %2528  ;;  %v2587_v18 = vpop.permute.xlu0 %2586 }
 0x2c5   : > { %v2592_v1 = vadd.f32 %v2587_v18, %v2552_v27  ;;  %v2533_v10 = vadd.f32 %v2529_v9, %v2493_v24 }
 0x2c7   : > { %v2594_v37 = vadd.f32 %v2592_v1, %v2572_v48 }
 0x2c8   : > { %v2549_v7 = vpop.permute.xlu1 %2548 }
 0x2c9   : > { %v2855_v61 = vmul.f32 -1.442695, %v2594_v37  ;;  %v2553_v62 = vadd.f32 %v2549_v7, %v2513_v29 }
 0x2cb   : > { %2948 = vpow2.f32 %v2855_v61 }
 0x2cc   : > { %v2569_v31 = vpop.permute.xlu1 %2568 }
 0x2cd   : > { %v2573_v0 = vadd.f32 %v2569_v31, %v2533_v10 }
 0x2d0   : > { %v2589_v23 = vpop.permute.xlu1 %2588 }
 0x2d1   : > { %v2593_v34 = vadd.f32 %v2589_v23, %v2553_v62 }
 0x2d3   : > { %v2595_v36 = vadd.f32 %v2593_v34, %v2573_v0 }
 0x2d5   : > { %v2949_v41 = vpop.eup %2948  ;;  %v2856_v55 = vmul.f32 -1.442695, %v2595_v36 }
 0x2d6   : > { %v2602_v56 = vadd.f32 1.0, %v2949_v41 }
 0x2d7   : > { %2950 = vpow2.f32 %v2856_v55 }
 0x2d8   : > { %2952 = vrcp.f32 %v2602_v56 }
 0x2e1   : > { %v2951_v17 = vpop.eup %2950 }
 0x2e2   : > { %v2953_v45 = vpop.eup %2952  ;;  %v2603_v52 = vadd.f32 1.0, %v2951_v17 }
 0x2e3   : > { %2609 = vst.msk [vmem:[%s175_s7] sm:$0xff] %vm2608_vm10, %v2953_v45 }
 0x2e4   : > { %2954 = vrcp.f32 %v2603_v52 }
 0x2ee   : > { %v2955_v12 = vpop.eup %2954 }
 0x2ef   : > { %2610 = vst.msk [vmem:[%s175_s7 + $0x8] sm:$0xff] %vm2608_vm10, %v2955_v12 }
 0x2f0   : > { %2996 = shalt.err (!%p2993_p3)
}
 0x2f1   : > { %s2997_s17 = scalar_lea.hbm %s4875_s20, 256  ;;  %s3001_s8 = scalar_lea.hbm %s4927_s2, 512 }
 0x2f2   : > { %p2998_p5 = scmp.ne.s32.totalorder %s4875_s20, %s2997_s17  ;;  %p3002_p9 = scmp.lt.u32.totalorder %s4875_s20, %s4927_s2 }
 0x2f3   : > { %p3003_p12 = scmp.lt.u32.totalorder %s3001_s8, %s2997_s17  ;;  %p3005_p11 = scmp.lt.u32.totalorder %s2997_s17, %s4875_s20 }
 0x2f4   : > { %p2999_p6 = pnand %p2998_p5, %p3142_p4 }
 0x2f5   : > { %p3004_p10 = por %p3003_p12, %p3002_p9 }
 0x2f6   : > { %p3000_p7 = pneg %p2999_p6 }
 0x2f7   : > { %p3006_p13 = por %p3005_p11, %p3004_p10 }
 0x2f9   : > { %p3007_p0 = pnand %p3006_p13, %p3000_p7 }
 0x2fb   : > { %3010 = shalt.err (!%p3007_p0)
}
 0x2fc   : > { %s3085_s28 = smov 128   ;;  %s3086_s3 = smov 8  }
 0x2fd   : > { %2868 = dma.vmem_to_hbm [thread:$0]  (%p3142_p4), %s4877_s16, 256, %s4875_s20, %s4879_s23, %s3085_s28, %s3085_s28, %s3086_s3  }
 0x2fe PF: > { %p2880_p1 = scmp.ge.s32.totalorder %s3065_s14, 2  ;;  %s2640_s4 = sand.u32 1, %s3045_s9  }
 0x2ff   : > { %s2641_s5 = scalar_lea.sflag [#allocation5], %s2640_s4 }
 0x300   : > { %p2875_p2 = pnand %p2880_p1, %p3149_p8 }
 0x302   : > { %3040 = dma.done.wait (!%p2875_p2), %s2641_s5, 256  }
 0x303   : > { %3042 = vsyncadd (!%p2875_p2), %s2641_s5, 4294967040  ;;  %s16_s14 = sadd.s32 1, %s3065_s14   ;;  %s5088_s19 = sld [smem:[#allocation10_spill]] }
 0x304   : > { %p13_p3 = scmp.ge.s32.totalorder %s16_s14, 4   ;;  %s5089_s9 = smov %s3049_s10 }
 0x305   : > { %s5090_s10 = smov %s3053_s11  ;;  %s5091_s11 = smov %s3155_s22 }
 0x306   : > { %s5092_s12 = smov %s3061_s13  ;;  %15 = sbr.rel (!%p13_p3) target bundleno = 8 (0x8), region = 83 }
 0x309   : > { %s5093_s13 = smov %s5088_s19 }
 0x30d   :  { %2646 = vsyncpa [#allocation5], 1 }
 0x30e   :  { %2648 = vsyncpa [#allocation5 + $0x1], 1 }
 0x30f   :  { %2649 = vsyncpa [#allocation6], 1 }
 0x310   :  { %2651 = vsyncpa [#allocation6 + $0x1], 1 }

</bundles_post_ra>
